<compile_context>
chip_gen: v6e
topology: v6e:2x2x1
jax: 0.10.0
libtpu: 0.0.40
codegen_flags: <defaults>
</compile_context>

<pallas_src>
import jax
import jax.numpy as jnp
from jax import lax
from jax.experimental import pallas as pl
from jax.experimental.pallas import tpu as pltpu

NORMALIZED_SHAPE = (2, 2, 3)
EPS = 0.5

_N = 12                       # elements per LayerNorm row (2*2*3)
_GROUPS = 32                  # rows packed per lane-dense row: 32*12 = 384 = 3*128
_LANES = _GROUPS * _N         # 384
_MAX_BLOCK_ROWS = 1024        # packed rows per block -> 32768 LayerNorm rows/step


def _round_up(v, m):
    return ((v + m - 1) // m) * m


def _layer_norm_kernel(x_ref, w_ref, b_ref, seg_ref, segt_ref,
                       out_ref, mean_ref, rstd_ref):
    # x_ref   : (TR, 384)  -- 32 independent LayerNorm rows of 12 per packed row
    # w_ref   : (1, 384)   -- weight tiled 32x  (resident across grid steps)
    # b_ref   : (1, 384)   -- bias tiled 32x    (resident)
    # seg_ref : (384, 32)  -- 0/1 segment matrix, seg[l, g] = (l // 12 == g)
    # segt_ref: (32, 384)  -- its transpose (broadcast-back)
    # out_ref : (TR, 384); mean_ref / rstd_ref : (TR, 32)
    f32 = jnp.float32
    hi = jax.lax.Precision.HIGHEST
    x = x_ref[...].astype(f32)
    seg = seg_ref[...]
    segt = segt_ref[...]
    inv_n = 1.0 / _N

    # Segmented reduce / broadcast over the 12-lane groups on the (idle) MXU;
    # all remaining work is dense 384-lane VPU/EUP work.
    mean = jnp.dot(x, seg, precision=hi, preferred_element_type=f32) * inv_n   # (TR, 32)
    mean_b = jnp.dot(mean, segt, precision=hi, preferred_element_type=f32)     # (TR, 384)
    xc = x - mean_b
    var = jnp.dot(xc * xc, seg, precision=hi, preferred_element_type=f32) * inv_n
    rstd = lax.rsqrt(var + EPS)                                                 # (TR, 32)
    rstd_b = jnp.dot(rstd, segt, precision=hi, preferred_element_type=f32)      # (TR, 384)

    out_ref[...] = (xc * rstd_b * w_ref[...] + b_ref[...]).astype(out_ref.dtype)
    mean_ref[...] = mean
    rstd_ref[...] = rstd


@jax.jit
def native_layer_norm(x, weight, bias):
    """Pallas implementation of aten.native_layer_norm(x, [2,2,3], w, b, eps=0.5)."""
    lead_shape = x.shape[: x.ndim - len(NORMALIZED_SHAPE)]
    batch = 1
    for d in lead_shape:
        batch *= d

    # ---- layout plumbing: contiguous reshapes only (no HBM transposes) ------
    x2 = x.reshape(batch, _N)
    # Pad batch so rows pack into (rows, 384) with rows a multiple of 8
    # (sublane-aligned blocks, non-degenerate matmul shapes).  Padded rows are
    # zeros -> finite stats -> sliced away below; no-op when already aligned.
    bp = _round_up(batch, _GROUPS * 8)
    if bp != batch:
        x2 = jnp.pad(x2, ((0, bp - batch), (0, 0)))
    rows = bp // _GROUPS
    xp = x2.reshape(rows, _LANES)

    wf = jnp.tile(weight.reshape(-1).astype(jnp.float32), _GROUPS).reshape(1, _LANES)
    bf = jnp.tile(bias.reshape(-1).astype(jnp.float32), _GROUPS).reshape(1, _LANES)

    lane_grp = jnp.arange(_LANES, dtype=jnp.int32) // _N
    seg = (lane_grp[:, None] == jnp.arange(_GROUPS, dtype=jnp.int32)[None, :]
           ).astype(jnp.float32)                      # (384, 32)
    segt = seg.T                                      # (32, 384)

    # ---- tiling: big blocks, but >= 2 grid steps once there is enough work,
    # so the "parallel" axis uses both TensorCores on v7x ---------------------
    tr = min(_MAX_BLOCK_ROWS, _round_up(pl.cdiv(rows, 2), 8))
    grid = (pl.cdiv(rows, tr),)

    out_p, mean_p, rstd_p = pl.pallas_call(
        _layer_norm_kernel,
        out_shape=(
            jax.ShapeDtypeStruct((rows, _LANES), x.dtype),
            jax.ShapeDtypeStruct((rows, _GROUPS), jnp.float32),
            jax.ShapeDtypeStruct((rows, _GROUPS), jnp.float32),
        ),
        grid=grid,
        in_specs=[
            pl.BlockSpec((tr, _LANES), lambda i: (i, 0)),
            pl.BlockSpec((1, _LANES), lambda i: (0, 0)),         # resident
            pl.BlockSpec((1, _LANES), lambda i: (0, 0)),         # resident
            pl.BlockSpec((_LANES, _GROUPS), lambda i: (0, 0)),   # resident
            pl.BlockSpec((_GROUPS, _LANES), lambda i: (0, 0)),   # resident
        ],
        out_specs=(
            pl.BlockSpec((tr, _LANES), lambda i: (i, 0)),
            pl.BlockSpec((tr, _GROUPS), lambda i: (i, 0)),
            pl.BlockSpec((tr, _GROUPS), lambda i: (i, 0)),
        ),
        compiler_params=pltpu.CompilerParams(
            dimension_semantics=("parallel",),
            vmem_limit_bytes=32 * 1024 * 1024,
        ),
    )(xp, wf, bf, seg, segt)

    stat_shape = lead_shape + (1,) * len(NORMALIZED_SHAPE)
    out = out_p.reshape(bp, _N)[:batch].reshape(x.shape)
    mean = mean_p.reshape(bp)[:batch].reshape(stat_shape)
    rstd = rstd_p.reshape(bp)[:batch].reshape(stat_shape)
    return out, mean, rstd


if __name__ == "__main__":
    key = jax.random.PRNGKey(0)
    kx, kw, kb = jax.random.split(key, 3)

    # x has leading batch dim 2 and trailing dims equal to normalized_shape [2,2,3]
    x = jax.random.normal(kx, (2, 2, 2, 3), dtype=jnp.float32)
    weight = jax.random.normal(kw, NORMALIZED_SHAPE, dtype=jnp.float32)
    bias = jax.random.normal(kb, NORMALIZED_SHAPE, dtype=jnp.float32)

    out, mean, rstd = native_layer_norm(x, weight, bias)
    jax.block_until_ready((out, mean, rstd))

    # Reference: plain-JAX layer norm with biased variance and eps = 0.5.
    xf = x.reshape(2, -1)
    m = xf.mean(-1, keepdims=True)
    v = ((xf - m) ** 2).mean(-1, keepdims=True)
    r = 1.0 / jnp.sqrt(v + EPS)
    ref = ((xf - m) * r).reshape(x.shape) * weight + bias
    assert jnp.allclose(out, ref, atol=1e-5, rtol=1e-5)
    assert jnp.allclose(mean.reshape(2, 1), m, atol=1e-5, rtol=1e-5)
    assert jnp.allclose(rstd.reshape(2, 1), r, atol=1e-5, rtol=1e-5)

    print("KERNEL_OK")
</pallas_src>

<mosaic_0001>
module attributes {stable_mosaic.version = 11 : i64} {
  func.func @_layer_norm_kernel(%arg0: i32, %arg1: memref<8x384xf32, #tpu.memory_space<vmem>>, %arg2: memref<1x384xf32, #tpu.memory_space<vmem>>, %arg3: memref<1x384xf32, #tpu.memory_space<vmem>>, %arg4: memref<384x32xf32, #tpu.memory_space<vmem>>, %arg5: memref<32x384xf32, #tpu.memory_space<vmem>>, %arg6: memref<8x384xf32, #tpu.memory_space<vmem>>, %arg7: memref<8x32xf32, #tpu.memory_space<vmem>>, %arg8: memref<8x32xf32, #tpu.memory_space<vmem>>) attributes {dimension_semantics = [#tpu.dimension_semantics<parallel>], iteration_bounds = array<i64: 1>, scalar_prefetch = 0 : i64, scratch_operands = 0 : i64, tpu.core_type = #tpu.core_type<tc>, window_params = [{transform_indices = @transform_0, window_bounds = array<i64: 8, 384>}, {pipeline_mode = #tpu.pipeline_mode<synchronous>, transform_indices = @transform_1, window_bounds = array<i64: 1, 384>}, {pipeline_mode = #tpu.pipeline_mode<synchronous>, transform_indices = @transform_2, window_bounds = array<i64: 1, 384>}, {pipeline_mode = #tpu.pipeline_mode<synchronous>, transform_indices = @transform_3, window_bounds = array<i64: 384, 32>}, {pipeline_mode = #tpu.pipeline_mode<synchronous>, transform_indices = @transform_4, window_bounds = array<i64: 32, 384>}, {transform_indices = @transform_5, window_bounds = array<i64: 8, 384>}, {transform_indices = @transform_6, window_bounds = array<i64: 8, 32>}, {transform_indices = @transform_7, window_bounds = array<i64: 8, 32>}]} {
    %c0 = arith.constant 0 : index
    %c0_0 = arith.constant 0 : index
    %0 = vector.load %arg1[%c0, %c0_0] : memref<8x384xf32, #tpu.memory_space<vmem>>, vector<8x384xf32>
    %c0_1 = arith.constant 0 : index
    %c0_2 = arith.constant 0 : index
    %1 = vector.load %arg4[%c0_1, %c0_2] : memref<384x32xf32, #tpu.memory_space<vmem>>, vector<384x32xf32>
    %c0_3 = arith.constant 0 : index
    %c0_4 = arith.constant 0 : index
    %2 = vector.load %arg5[%c0_3, %c0_4] : memref<32x384xf32, #tpu.memory_space<vmem>>, vector<32x384xf32>
    %cst = arith.constant dense<0.000000e+00> : vector<8x32xf32>
    %3 = tpu.matmul %0, %1, %cst {dimension_numbers = #tpu.dot_dimension_numbers<[1], [0], [0], [1], [0, 0, 1, 1], [], []>, precision = #tpu.contract_precision<fp32>} : vector<8x384xf32>, vector<384x32xf32>, vector<8x32xf32> -> vector<8x32xf32>
    %cst_5 = arith.constant 0.0833333358 : f32
    %4 = vector.broadcast %cst_5 : f32 to vector<8x32xf32>
    %5 = arith.mulf %3, %4 : vector<8x32xf32>
    %cst_6 = arith.constant dense<0.000000e+00> : vector<8x384xf32>
    %6 = tpu.matmul %5, %2, %cst_6 {dimension_numbers = #tpu.dot_dimension_numbers<[1], [0], [0], [1], [0, 0, 1, 1], [], []>, precision = #tpu.contract_precision<fp32>} : vector<8x32xf32>, vector<32x384xf32>, vector<8x384xf32> -> vector<8x384xf32>
    %7 = arith.subf %0, %6 : vector<8x384xf32>
    %8 = arith.mulf %7, %7 : vector<8x384xf32>
    %cst_7 = arith.constant dense<0.000000e+00> : vector<8x32xf32>
    %9 = tpu.matmul %8, %1, %cst_7 {dimension_numbers = #tpu.dot_dimension_numbers<[1], [0], [0], [1], [0, 0, 1, 1], [], []>, precision = #tpu.contract_precision<fp32>} : vector<8x384xf32>, vector<384x32xf32>, vector<8x32xf32> -> vector<8x32xf32>
    %cst_8 = arith.constant 0.0833333358 : f32
    %10 = vector.broadcast %cst_8 : f32 to vector<8x32xf32>
    %11 = arith.mulf %9, %10 : vector<8x32xf32>
    %cst_9 = arith.constant 5.000000e-01 : f32
    %12 = vector.broadcast %cst_9 : f32 to vector<8x32xf32>
    %13 = arith.addf %11, %12 : vector<8x32xf32>
    %14 = math.rsqrt %13 : vector<8x32xf32>
    %cst_10 = arith.constant dense<0.000000e+00> : vector<8x384xf32>
    %15 = tpu.matmul %14, %2, %cst_10 {dimension_numbers = #tpu.dot_dimension_numbers<[1], [0], [0], [1], [0, 0, 1, 1], [], []>, precision = #tpu.contract_precision<fp32>} : vector<8x32xf32>, vector<32x384xf32>, vector<8x384xf32> -> vector<8x384xf32>
    %16 = arith.mulf %7, %15 : vector<8x384xf32>
    %c0_11 = arith.constant 0 : index
    %c0_12 = arith.constant 0 : index
    %17 = vector.load %arg2[%c0_11, %c0_12] : memref<1x384xf32, #tpu.memory_space<vmem>>, vector<1x384xf32>
    %18 = vector.broadcast %17 : vector<1x384xf32> to vector<8x384xf32>
    %19 = arith.mulf %16, %18 : vector<8x384xf32>
    %c0_13 = arith.constant 0 : index
    %c0_14 = arith.constant 0 : index
    %20 = vector.load %arg3[%c0_13, %c0_14] : memref<1x384xf32, #tpu.memory_space<vmem>>, vector<1x384xf32>
    %21 = vector.broadcast %20 : vector<1x384xf32> to vector<8x384xf32>
    %22 = arith.addf %19, %21 : vector<8x384xf32>
    %c0_15 = arith.constant 0 : index
    %c0_16 = arith.constant 0 : index
    %23 = vector.load %arg6[%c0_15, %c0_16] : memref<8x384xf32, #tpu.memory_space<vmem>>, vector<8x384xf32>
    tpu.vector_store %arg6[%c0_15, %c0_16], %22 {strides = array<i32>} : memref<8x384xf32, #tpu.memory_space<vmem>>, vector<8x384xf32>,
    %c0_17 = arith.constant 0 : index
    %c0_18 = arith.constant 0 : index
    %24 = vector.load %arg7[%c0_17, %c0_18] : memref<8x32xf32, #tpu.memory_space<vmem>>, vector<8x32xf32>
    tpu.vector_store %arg7[%c0_17, %c0_18], %5 {strides = array<i32>} : memref<8x32xf32, #tpu.memory_space<vmem>>, vector<8x32xf32>,
    %c0_19 = arith.constant 0 : index
    %c0_20 = arith.constant 0 : index
    %25 = vector.load %arg8[%c0_19, %c0_20] : memref<8x32xf32, #tpu.memory_space<vmem>>, vector<8x32xf32>
    tpu.vector_store %arg8[%c0_19, %c0_20], %14 {strides = array<i32>} : memref<8x32xf32, #tpu.memory_space<vmem>>, vector<8x32xf32>,
    return
  }
  func.func @transform_0(%arg0: i32) -> (i32, i32) {
    %c0_i32 = arith.constant 0 : i32
    %c0_i32_0 = arith.constant 0 : i32
    return %arg0, %c0_i32 : i32, i32
  }
  func.func @transform_1(%arg0: i32) -> (i32, i32) {
    %c0_i32 = arith.constant 0 : i32
    %c0_i32_0 = arith.constant 0 : i32
    %c0_i32_1 = arith.constant 0 : i32
    return %c0_i32, %c0_i32_0 : i32, i32
  }
  func.func @transform_2(%arg0: i32) -> (i32, i32) {
    %c0_i32 = arith.constant 0 : i32
    %c0_i32_0 = arith.constant 0 : i32
    %c0_i32_1 = arith.constant 0 : i32
    return %c0_i32, %c0_i32_0 : i32, i32
  }
  func.func @transform_3(%arg0: i32) -> (i32, i32) {
    %c0_i32 = arith.constant 0 : i32
    %c0_i32_0 = arith.constant 0 : i32
    %c0_i32_1 = arith.constant 0 : i32
    return %c0_i32, %c0_i32_0 : i32, i32
  }
  func.func @transform_4(%arg0: i32) -> (i32, i32) {
    %c0_i32 = arith.constant 0 : i32
    %c0_i32_0 = arith.constant 0 : i32
    %c0_i32_1 = arith.constant 0 : i32
    return %c0_i32, %c0_i32_0 : i32, i32
  }
  func.func @transform_5(%arg0: i32) -> (i32, i32) {
    %c0_i32 = arith.constant 0 : i32
    %c0_i32_0 = arith.constant 0 : i32
    return %arg0, %c0_i32 : i32, i32
  }
  func.func @transform_6(%arg0: i32) -> (i32, i32) {
    %c0_i32 = arith.constant 0 : i32
    %c0_i32_0 = arith.constant 0 : i32
    return %arg0, %c0_i32 : i32, i32
  }
  func.func @transform_7(%arg0: i32) -> (i32, i32) {
    %c0_i32 = arith.constant 0 : i32
    %c0_i32_0 = arith.constant 0 : i32
    return %arg0, %c0_i32 : i32, i32
  }
}

</mosaic_0001>

<bundles_post_ra>
// kernel: tile.13
= control target key start
LH: loop header
LB: loop body
LE: loop exit
PB: predicated region body
PF: predicated region fallthrough
CT: control target
= control target key end

     0   :  { %vm12_vm0 = vcmask 23552   ;;  %s45_s10 = smov 3   ;;  %s46_s11 = smov 6   ;;  %vm18_vm1 = vcmask 97352   ;;  %vm24_vm2 = vcmask 72752   ;;  %vm30_vm3 = vcmask 48152   ;;  %s66_s0 = inlined_call_operand.vmem [shape: f32[2,2,3], index: 0, kind: input, shape index: {}]   ;;  %s67_s1 = inlined_call_operand.vmem [shape: f32[12], index: 1, kind: output, shape index: {}]  }
   0x1   :  { %v40_v0 = vld [vmem:[%s66_s0 + $0x2] sm:$0x3]  ;;  %v9_v1 = vld [vmem:[%s66_s0] sm:$0x3]  ;;  %s44_s0 = smov 9  }
   0x2   :  { %8 = vst [vmem:[#allocation1 + $0x8] sm:$0x3] %v40_v0  ;;  %10 = vst [vmem:[#allocation1] sm:$0x3] %v9_v1 }
   0x9   :  { %v15_v2 = vld [vmem:[#allocation1 + $0x9] sm:$0x1]   ;;  %v27_v3 = vld [vmem:[#allocation1 + $0x1] sm:$0x1]   ;;  %v11_v4 = vld [vmem:[#allocation1] sm:$0x1]  }
   0xa   :  { %16 = vrot.lane.b32.xlu0 %v15_v2, %s44_s0  ;;  %28 = vrot.lane.b32.xlu1 %v27_v3, %s45_s10  ;;  %v21_v5 = vld [vmem:[#allocation1 + $0x8] sm:$0x1]   ;;  %13 = vst.msk [vmem:[#allocation0] sm:$0x1] %vm12_vm0, %v11_v4  }
   0xe   :  { %22 = vrot.lane.b32.xlu0 %v21_v5, %s46_s11 }
  0x7c   :  { %v17_v6 = vpop.permute.xlu0 %16   ;;  %v29_v7 = vpop.permute.xlu1 %28  }
  0x7d   :  { %19 = vst.msk [vmem:[#allocation0] sm:$0x1] %vm18_vm1, %v17_v6  }
  0x80   :  { %v23_v8 = vpop.permute.xlu0 %22  }
  0x81   :  { %25 = vst.msk [vmem:[#allocation0] sm:$0x1] %vm24_vm2, %v23_v8  }
  0x82   :  { %31 = vst.msk [vmem:[#allocation0] sm:$0x1] %vm30_vm3, %v29_v7  }
  0x89   :  { %v36_v9 = vld [vmem:[#allocation0] sm:$0x1] }
  0x8a   :  { %39 = vst [vmem:[%s67_s1] sm:$0x1] %v36_v9 }

// kernel: tile.9
= control target key start
LH: loop header
LB: loop body
LE: loop exit
PB: predicated region body
PF: predicated region fallthrough
CT: control target
= control target key end

     0   :  { %2 = vsyncpa [#allocation1], 0  ;;  %s77_s6 = smov [#allocation0]   ;;  %s97_s0 = inlined_call_operand.hbm [shape: f32[2,2,3], index: 0, kind: input, shape index: {}]   ;;  %s98_s1 = inlined_call_operand.vmem [shape: f32[12], index: 1, kind: output, shape index: {}]  }
   0x1   :  { %s7_s7 = sshll.u32 %s77_s6, 4  ;;  %s8_s7 = int_to_ptr.vmem [resolvable:$true] %s7_s7 }
   0x2   :  { %s63_s8 = scalar_lea.vmem %s8_s7, 64  ;;  %p68_p1 = scmp.lt.s32.totalorder %s8_s7, %s8_s7 }
   0x3   :  { %p64_p0 = scmp.ne.s32.totalorder %s8_s7, %s63_s8  ;;  %p69_p2 = scmp.lt.s32.totalorder %s63_s8, %s63_s8 }
   0x5   :  { %p70_p3 = por %p69_p2, %p68_p1 }
   0x7   :  { %p71_p4 = pnand %p70_p3, %p64_p0 }
   0x9   :  { %74 = shalt.err (!%p71_p4)
}
   0xa   :  { %10 = dma.hbm_to_vmem [thread:$0]  %s97_s0, 64, %s8_s7, [#allocation1]  }
   0xb   :  { %75 = dma.done.wait [#allocation1], 64  }
   0xc   :  { %76 = vsyncadd [#allocation1], 4294967232  ;;  %v16_v0 = vld [vmem:[#allocation0 + $0x2] sm:$0x3]  ;;  %v19_v1 = vld [vmem:[#allocation0] sm:$0x3] }
   0xd   :  { %18 = vst [vmem:[#allocation3 + $0x8] sm:$0x3] %v16_v0  ;;  %20 = vst [vmem:[#allocation3] sm:$0x3] %v19_v1  ;;  %vm22_vm0 = vcmask 23552   ;;  %s78_s0 = smov 9  }
   0xe   :  { %s79_s11 = smov 3   ;;  %s80_s12 = smov 6   ;;  %vm28_vm1 = vcmask 97352   ;;  %vm34_vm2 = vcmask 72752   ;;  %vm40_vm3 = vcmask 48152  }
  0x14   :  { %v25_v2 = vld [vmem:[#allocation3 + $0x9] sm:$0x1]   ;;  %v37_v3 = vld [vmem:[#allocation3 + $0x1] sm:$0x1]   ;;  %v21_v4 = vld [vmem:[#allocation3] sm:$0x1]  }
  0x15   :  { %26 = vrot.lane.b32.xlu0 %v25_v2, %s78_s0  ;;  %38 = vrot.lane.b32.xlu1 %v37_v3, %s79_s11  ;;  %v31_v5 = vld [vmem:[#allocation3 + $0x8] sm:$0x1]   ;;  %23 = vst.msk [vmem:[#allocation2] sm:$0x1] %vm22_vm0, %v21_v4  }
  0x19   :  { %32 = vrot.lane.b32.xlu0 %v31_v5, %s80_s12 }
  0x87   :  { %v27_v6 = vpop.permute.xlu0 %26   ;;  %v39_v7 = vpop.permute.xlu1 %38  }
  0x88   :  { %29 = vst.msk [vmem:[#allocation2] sm:$0x1] %vm28_vm1, %v27_v6  }
  0x8b   :  { %v33_v8 = vpop.permute.xlu0 %32  }
  0x8c   :  { %35 = vst.msk [vmem:[#allocation2] sm:$0x1] %vm34_vm2, %v33_v8  }
  0x8d   :  { %41 = vst.msk [vmem:[#allocation2] sm:$0x1] %vm40_vm3, %v39_v7  }
  0x94   :  { %v46_v9 = vld [vmem:[#allocation2] sm:$0x1] }
  0x95   :  { %49 = vst [vmem:[%s98_s1] sm:$0x1] %v46_v9 }
  0x96   :  { %50 = vsyncpa [#allocation1], 1 }

// kernel: tile.14
= control target key start
LH: loop header
LB: loop body
LE: loop exit
PB: predicated region body
PF: predicated region fallthrough
CT: control target
= control target key end

     0   :  { %s40_s0 = inlined_call_operand.vmem [shape: f32[12], index: 0, kind: input, shape index: {}]   ;;  %s41_s1 = inlined_call_operand.vmem [shape: f32[32,12], index: 1, kind: output, shape index: {}]  }
   0x1   :  { %v4_v0 = vld [vmem:[%s40_s0] ss:$0 sm:$0xff] }
   0x2   :  { %5 = vst [vmem:[%s41_s1] sm:$0xff] %v4_v0  ;;  %12 = vst [vmem:[%s41_s1 + $0x8] sm:$0xff] %v4_v0 }
   0x3   :  { %13 = vst [vmem:[%s41_s1 + $0x10] sm:$0xff] %v4_v0  ;;  %14 = vst [vmem:[%s41_s1 + $0x18] sm:$0xff] %v4_v0 }

// kernel: tile.15
= control target key start
LH: loop header
LB: loop body
LE: loop exit
PB: predicated region body
PF: predicated region fallthrough
CT: control target
= control target key end

     0   :  { %vm9_vm0 = vcmask 31744   ;;  %vm13_vm1 = vcmask 64512   ;;  %s314_s14 = smov 124   ;;  %s315_s15 = smov 116   ;;  %vm3_vm2 = vcmask 97280   ;;  %vm16_vm3 = vcmask 1048544   ;;  %s470_s0 = inlined_call_operand.vmem [shape: f32[32,12], index: 0, kind: input, shape index: {}]   ;;  %s471_s1 = inlined_call_operand.vmem [shape: f32[1,384], index: 1, kind: output, shape index: {}]  }
   0x1   :  { %v248_v0 = vld [vmem:[%s470_s0 + $0x15] sm:$0x1]   ;;  %v252_v3 = vld [vmem:[%s470_s0 + $0x1f] sm:$0x1]   ;;  %v250_v4 = vld [vmem:[%s470_s0 + $0xa] sm:$0x1]  }
   0x2   :  { %v249_v1 = vld [vmem:[%s470_s0 + $0x15] sm:$0x1]   ;;  %34 = vrot.lane.b32.xlu1 %v252_v3, %s315_s15  ;;  %v251_v5 = vld [vmem:[%s470_s0 + $0xa] sm:$0x1]   ;;  %v253_v7 = vld [vmem:[%s470_s0 + $0x14] sm:$0x1]  }
   0x3   :  { %v10_v2 = vsel %vm9_vm0, %v249_v1, %v248_v0  ;;  %v24_v6 = vsel %vm13_vm1, %v251_v5, %v250_v4  ;;  %s316_s20 = smov 120   ;;  %s317_s21 = smov 112   ;;  %v254_v8 = vld [vmem:[%s470_s0 + $0x9] sm:$0x1]   ;;  %v255_v9 = vld [vmem:[%s470_s0 + $0x1e] sm:$0x1]  }
   0x4   :  { %11 = vrot.lane.b32.xlu0 %v10_v2, %s314_s14  ;;  %s318_s26 = smov 108   ;;  %s319_s27 = smov 104   ;;  %v256_v10 = vld [vmem:[%s470_s0 + $0x13] sm:$0x1]   ;;  %v257_v11 = vld [vmem:[%s470_s0 + $0x8] sm:$0x1]  }
   0x5   :  { %s320_s3 = smov 100   ;;  %s321_s4 = smov 96   ;;  %v258_v12 = vld [vmem:[%s470_s0 + $0x1d] sm:$0x1]   ;;  %v259_v13 = vld [vmem:[%s470_s0 + $0x12] sm:$0x1]  }
   0x6   :  { %41 = vrot.lane.b32.xlu1 %v253_v7, %s317_s21  ;;  %v2_v14 = vld [vmem:[%s470_s0] sm:$0x1]   ;;  %s322_s11 = smov 92   ;;  %s323_s12 = smov 88   ;;  %v260_v15 = vld [vmem:[%s470_s0 + $0x7] sm:$0x1]  }
   0x7   :  { %4 = vst.msk [vmem:[#allocation0] sm:$0x1] %vm3_vm2, %v2_v14   ;;  %v261_v16 = vld [vmem:[%s470_s0 + $0x1c] sm:$0x1]   ;;  %s324_s17 = smov 84   ;;  %s325_s18 = smov 80  }
   0x8   :  { %25 = vrot.lane.b32.xlu0 %v24_v6, %s316_s20  ;;  %v262_v17 = vld [vmem:[%s470_s0 + $0x11] sm:$0x1]   ;;  %v263_v18 = vld [vmem:[%s470_s0 + $0x6] sm:$0x1]   ;;  %s326_s23 = smov 76   ;;  %s327_s24 = smov 72  }
   0x9   :  { %v264_v19 = vld [vmem:[%s470_s0 + $0x1b] sm:$0x1]   ;;  %v265_v20 = vld [vmem:[%s470_s0 + $0x10] sm:$0x1]   ;;  %s328_s29 = smov 68   ;;  %s329_s30 = smov 64  }
   0xa   :  { %54 = vrot.lane.b32.xlu1 %v255_v9, %s319_s27  ;;  %v266_v21 = vld [vmem:[%s470_s0 + $0x5] sm:$0x1]   ;;  %v267_v22 = vld [vmem:[%s470_s0 + $0x1a] sm:$0x1]   ;;  %s330_s6 = smov 60   ;;  %s331_s7 = smov 56  }
   0xb   :  { %v268_v23 = vld [vmem:[%s470_s0 + $0xf] sm:$0x1]   ;;  %v269_v24 = vld [vmem:[%s470_s0 + $0x4] sm:$0x1]   ;;  %s333_s13 = smov 48   ;;  %s335_s19 = smov 40  }
   0xc   :  { %48 = vrot.lane.b32.xlu0 %v254_v8, %s318_s26  ;;  %v270_v25 = vld [vmem:[%s470_s0 + $0x19] sm:$0x1]   ;;  %v271_v26 = vld [vmem:[%s470_s0 + $0xe] sm:$0x1]   ;;  %v272_v27 = vld [vmem:[%s470_s0 + $0x3] sm:$0x1]  }
   0xd   :  { %v273_v28 = vld [vmem:[%s470_s0 + $0x18] sm:$0x1]   ;;  %s337_s25 = smov 32   ;;  %v274_v29 = vld [vmem:[%s470_s0 + $0xd] sm:$0x1]   ;;  %s339_s2 = smov 24  }
   0xe   :  { %68 = vrot.lane.b32.xlu1 %v257_v11, %s321_s4  ;;  %v275_v30 = vld [vmem:[%s470_s0 + $0x2] sm:$0x1]   ;;  %v276_v31 = vld [vmem:[%s470_s0 + $0x17] sm:$0x1]   ;;  %v277_v32 = vld [vmem:[%s470_s0 + $0xc] sm:$0x1]  }
   0xf   :  { %s341_s8 = smov 16   ;;  %v278_v33 = vld [vmem:[%s470_s0 + $0x1] sm:$0x1]   ;;  %v279_v34 = vld [vmem:[%s470_s0 + $0x16] sm:$0x1]   ;;  %s343_s14 = smov 8  }
  0x10   :  { %61 = vrot.lane.b32.xlu0 %v256_v10, %s320_s3  ;;  %v280_v35 = vld [vmem:[%s470_s0 + $0xb] sm:$0x1]   ;;  %s344_s0 = smov 4   ;;  %vm36_vm4 = vcmask 1048480   ;;  %vm30_vm5 = vcmask 1048512   ;;  %vm43_vm6 = vcmask 1015680  }
  0x11   :  { %vm50_vm7 = vcmask 982880   ;;  %vm56_vm8 = vcmask 950080   ;;  %vm63_vm9 = vcmask 917280   ;;  %vm70_vm10 = vcmask 884480  }
  0x12   :  { %81 = vrot.lane.b32.xlu1 %v259_v13, %s323_s12  ;;  %s332_s12 = smov 52   ;;  %vm76_vm11 = vcmask 851680   ;;  %vm83_vm12 = vcmask 818880   ;;  %vm90_vm13 = vcmask 786080   ;;  %vm96_vm14 = vcmask 753280  }
  0x13   :  { %vm103_vm15 = vcmask 720480   ;;  %vm123_vm2 = vcmask 622080  }
  0x14   :  { %74 = vrot.lane.b32.xlu0 %v258_v12, %s322_s11 }
  0x16   :  { %94 = vrot.lane.b32.xlu1 %v261_v16, %s325_s18  ;;  %s334_s18 = smov 44  }
  0x18   :  { %88 = vrot.lane.b32.xlu0 %v260_v15, %s324_s17 }
  0x1a   :  { %108 = vrot.lane.b32.xlu1 %v263_v18, %s327_s24  ;;  %s336_s24 = smov 36  }
  0x1c   :  { %101 = vrot.lane.b32.xlu0 %v262_v17, %s326_s23 }
  0x1e   :  { %121 = vrot.lane.b32.xlu1 %v265_v20, %s329_s30  ;;  %s338_s30 = smov 28  }
  0x20   :  { %114 = vrot.lane.b32.xlu0 %v264_v19, %s328_s29 }
  0x22   :  { %134 = vrot.lane.b32.xlu1 %v267_v22, %s331_s7  ;;  %s340_s7 = smov 20  }
  0x24   :  { %128 = vrot.lane.b32.xlu0 %v266_v21, %s330_s6 }
  0x26   :  { %148 = vrot.lane.b32.xlu1 %v269_v24, %s333_s13  ;;  %s342_s13 = smov 12  }
  0x28   :  { %141 = vrot.lane.b32.xlu0 %v268_v23, %s332_s12 }
  0x2a   :  { %161 = vrot.lane.b32.xlu1 %v271_v26, %s335_s19 }
  0x2c   :  { %154 = vrot.lane.b32.xlu0 %v270_v25, %s334_s18 }
  0x2e   :  { %174 = vrot.lane.b32.xlu1 %v273_v28, %s337_s25 }
  0x30   :  { %168 = vrot.lane.b32.xlu0 %v272_v27, %s336_s24 }
  0x32   :  { %188 = vrot.lane.b32.xlu1 %v275_v30, %s339_s2 }
  0x34   :  { %181 = vrot.lane.b32.xlu0 %v274_v29, %s338_s30 }
  0x36   :  { %201 = vrot.lane.b32.xlu1 %v277_v32, %s341_s8 }
  0x38   :  { %194 = vrot.lane.b32.xlu0 %v276_v31, %s340_s7 }
  0x3a   :  { %214 = vrot.lane.b32.xlu1 %v279_v34, %s343_s14 }
  0x3c   :  { %208 = vrot.lane.b32.xlu0 %v278_v33, %s342_s13 }
  0x40   :  { %221 = vrot.lane.b32.xlu0 %v280_v35, %s344_s0 }
  0x74   :  { %v35_v37 = vpop.permute.xlu1 %34  }
  0x76   :  { %v12_v36 = vpop.permute.xlu0 %11  }
  0x77   :  { %15 = vst.msk [vmem:[#allocation0 + $0x10] sm:$0x1] %vm13_vm1, %v12_v36   ;;  %vm116_vm1 = vcmask 654880  }
  0x78   :  { %18 = vst.msk [vmem:[#allocation0 + $0x8] sm:$0x1] %vm16_vm3, %v12_v36   ;;  %v42_v39 = vpop.permute.xlu1 %41   ;;  %vm130_vm3 = vcmask 589280  }
  0x79   :  { %38 = vst.msk [vmem:[#allocation0 + $0x10] sm:$0x1] %vm36_vm4, %v35_v37   ;;  %vm136_vm4 = vcmask 556480  }
  0x7a   :  { %v26_v38 = vpop.permute.xlu0 %25  }
  0x7b   :  { %29 = vst.msk [vmem:[#allocation0 + $0x8] sm:$0x1] %vm9_vm0, %v26_v38   ;;  %vm110_vm0 = vcmask 687680  }
  0x7c   :  { %31 = vst.msk [vmem:[#allocation0] sm:$0x1] %vm30_vm5, %v26_v38   ;;  %v55_v41 = vpop.permute.xlu1 %54   ;;  %vm143_vm5 = vcmask 523680  }
  0x7d   :  { %45 = vst.msk [vmem:[#allocation0 + $0x8] sm:$0x1] %vm43_vm6, %v42_v39   ;;  %vm150_vm6 = vcmask 490880  }
  0x7e   :  { %v49_v40 = vpop.permute.xlu0 %48   ;;  %58 = vst.msk [vmem:[#allocation0 + $0x10] sm:$0x1] %vm56_vm8, %v55_v41   ;;  %vm163_vm8 = vcmask 425280  }
  0x7f   :  { %51 = vst.msk [vmem:[#allocation0] sm:$0x1] %vm50_vm7, %v49_v40   ;;  %vm156_vm7 = vcmask 458080  }
  0x80   :  { %v69_v43 = vpop.permute.xlu1 %68  }
  0x81   :  { %71 = vst.msk [vmem:[#allocation0] sm:$0x1] %vm70_vm10, %v69_v43   ;;  %vm176_vm10 = vcmask 359680  }
  0x82   :  { %v62_v42 = vpop.permute.xlu0 %61  }
  0x83   :  { %65 = vst.msk [vmem:[#allocation0 + $0x8] sm:$0x1] %vm63_vm9, %v62_v42   ;;  %vm170_vm9 = vcmask 392480  }
  0x84   :  { %v82_v45 = vpop.permute.xlu1 %81  }
  0x85   :  { %85 = vst.msk [vmem:[#allocation0 + $0x8] sm:$0x1] %vm83_vm12, %v82_v45   ;;  %vm190_vm12 = vcmask 294080  }
  0x86   :  { %v75_v44 = vpop.permute.xlu0 %74  }
  0x87   :  { %78 = vst.msk [vmem:[#allocation0 + $0x10] sm:$0x1] %vm76_vm11, %v75_v44   ;;  %vm183_vm11 = vcmask 326880  }
  0x88   :  { %v95_v47 = vpop.permute.xlu1 %94  }
  0x89   :  { %98 = vst.msk [vmem:[#allocation0 + $0x10] sm:$0x1] %vm96_vm14, %v95_v47   ;;  %vm203_vm14 = vcmask 228480  }
  0x8a   :  { %v89_v46 = vpop.permute.xlu0 %88  }
  0x8b   :  { %91 = vst.msk [vmem:[#allocation0] sm:$0x1] %vm90_vm13, %v89_v46   ;;  %vm196_vm13 = vcmask 261280  }
  0x8c   :  { %v109_v49 = vpop.permute.xlu1 %108  }
  0x8d   :  { %111 = vst.msk [vmem:[#allocation0] sm:$0x1] %vm110_vm0, %v109_v49   ;;  %vm216_vm0 = vcmask 162880  }
  0x8e   :  { %v102_v48 = vpop.permute.xlu0 %101  }
  0x8f   :  { %105 = vst.msk [vmem:[#allocation0 + $0x8] sm:$0x1] %vm103_vm15, %v102_v48   ;;  %vm210_vm15 = vcmask 195680  }
  0x90   :  { %v122_v51 = vpop.permute.xlu1 %121  }
  0x91   :  { %125 = vst.msk [vmem:[#allocation0 + $0x8] sm:$0x1] %vm123_vm2, %v122_v51  }
  0x92   :  { %v115_v50 = vpop.permute.xlu0 %114  }
  0x93   :  { %118 = vst.msk [vmem:[#allocation0 + $0x10] sm:$0x1] %vm116_vm1, %v115_v50   ;;  %vm223_vm1 = vcmask 130080  }
  0x94   :  { %v135_v53 = vpop.permute.xlu1 %134  }
  0x95   :  { %138 = vst.msk [vmem:[#allocation0 + $0x10] sm:$0x1] %vm136_vm4, %v135_v53  }
  0x96   :  { %v129_v52 = vpop.permute.xlu0 %128  }
  0x97   :  { %131 = vst.msk [vmem:[#allocation0] sm:$0x1] %vm130_vm3, %v129_v52  }
  0x98   :  { %v149_v55 = vpop.permute.xlu1 %148  }
  0x99   :  { %151 = vst.msk [vmem:[#allocation0] sm:$0x1] %vm150_vm6, %v149_v55  }
  0x9a   :  { %v142_v54 = vpop.permute.xlu0 %141  }
  0x9b   :  { %145 = vst.msk [vmem:[#allocation0 + $0x8] sm:$0x1] %vm143_vm5, %v142_v54  }
  0x9c   :  { %v162_v57 = vpop.permute.xlu1 %161  }
  0x9d   :  { %165 = vst.msk [vmem:[#allocation0 + $0x8] sm:$0x1] %vm163_vm8, %v162_v57  }
  0x9e   :  { %v155_v56 = vpop.permute.xlu0 %154  }
  0x9f   :  { %158 = vst.msk [vmem:[#allocation0 + $0x10] sm:$0x1] %vm156_vm7, %v155_v56  }
  0xa0   :  { %v175_v59 = vpop.permute.xlu1 %174  }
  0xa1   :  { %178 = vst.msk [vmem:[#allocation0 + $0x10] sm:$0x1] %vm176_vm10, %v175_v59  }
  0xa2   :  { %v169_v58 = vpop.permute.xlu0 %168  }
  0xa3   :  { %171 = vst.msk [vmem:[#allocation0] sm:$0x1] %vm170_vm9, %v169_v58  }
  0xa4   :  { %v189_v61 = vpop.permute.xlu1 %188  }
  0xa5   :  { %191 = vst.msk [vmem:[#allocation0] sm:$0x1] %vm190_vm12, %v189_v61  }
  0xa6   :  { %v182_v60 = vpop.permute.xlu0 %181  }
  0xa7   :  { %185 = vst.msk [vmem:[#allocation0 + $0x8] sm:$0x1] %vm183_vm11, %v182_v60  }
  0xa8   :  { %v202_v63 = vpop.permute.xlu1 %201  }
  0xa9   :  { %205 = vst.msk [vmem:[#allocation0 + $0x8] sm:$0x1] %vm203_vm14, %v202_v63  }
  0xaa   :  { %v195_v62 = vpop.permute.xlu0 %194  }
  0xab   :  { %198 = vst.msk [vmem:[#allocation0 + $0x10] sm:$0x1] %vm196_vm13, %v195_v62  }
  0xac   :  { %v215_v1 = vpop.permute.xlu1 %214  }
  0xad   :  { %218 = vst.msk [vmem:[#allocation0 + $0x10] sm:$0x1] %vm216_vm0, %v215_v1  }
  0xae   :  { %v209_v0 = vpop.permute.xlu0 %208  }
  0xaf   :  { %211 = vst.msk [vmem:[#allocation0] sm:$0x1] %vm210_vm15, %v209_v0  }
  0xb2   :  { %v222_v2 = vpop.permute.xlu0 %221  }
  0xb3   :  { %225 = vst.msk [vmem:[#allocation0 + $0x8] sm:$0x1] %vm223_vm1, %v222_v2  }
  0xb4   :  { %v241_v4 = vld [vmem:[#allocation0 + $0x10] sm:$0x1] }
  0xb5   :  { %282 = vst [vmem:[%s471_s1 + $0x2] sm:$0x1] %v241_v4 }
  0xb6   :  { %v230_v3 = vld [vmem:[#allocation0] sm:$0x1] }
  0xb7   :  { %233 = vst [vmem:[%s471_s1] sm:$0x1] %v230_v3 }
  0xba   :  { %v235_v5 = vld [vmem:[#allocation0 + $0x8] sm:$0x1] }
  0xbb   :  { %281 = vst [vmem:[%s471_s1 + $0x1] sm:$0x1] %v235_v5 }

// kernel: native_layer_norm.1
= control target key start
LH: loop header
LB: loop body
LE: loop exit
PB: predicated region body
PF: predicated region fallthrough
CT: control target
= control target key end

     0   :  { %vm6469_vm0 = vmmov 0   ;;  %vm1590_vm1 = vcmask 261120   ;;  %s8711_s3 = inlined_call_operand.vmem [shape: f32[384,32], index: 3, kind: input, shape index: {}]   ;;  %s8712_s0 = inlined_call_operand.vmem [shape: f32[8,384], index: 0, kind: input, shape index: {}]   ;;  %s8713_s4 = inlined_call_operand.vmem [shape: f32[32,384], index: 4, kind: input, shape index: {}]   ;;  %s8714_s6 = inlined_call_operand.vmem [shape: f32[8,32], index: 6, kind: output, shape index: {1}]   ;;  %s8715_s7 = inlined_call_operand.vmem [shape: f32[8,32], index: 7, kind: output, shape index: {2}]   ;;  %s8716_s1 = inlined_call_operand.vmem [shape: f32[1,384], index: 1, kind: input, shape index: {}]   ;;  %s8717_s2 = inlined_call_operand.vmem [shape: f32[1,384], index: 2, kind: input, shape index: {}]   ;;  %s8718_s5 = inlined_call_operand.vmem [shape: f32[8,384], index: 5, kind: output, shape index: {0}]  }
   0x1   :  { %v57_v0 = vld [vmem:[%s8711_s3 + $0xf8] sm:$0xff]  ;;  %v56_v2 = vld [vmem:[%s8711_s3 + $0xf0] sm:$0xff]  ;;  %v55_v7 = vld [vmem:[%s8711_s3 + $0xe8] sm:$0xff] }
   0x2   :  { %v41_v1 = vld [vmem:[%s8711_s3 + $0x78] sm:$0xff]  ;;  %v6519_v3 = vand.u32 4294901760, %v57_v0  ;;  %v6523_v5 = vand.u32 4294901760, %v56_v2  ;;  %v40_v6 = vld [vmem:[%s8711_s3 + $0x70] sm:$0xff]  ;;  %v39_v8 = vld [vmem:[%s8711_s3 + $0x68] sm:$0xff]  ;;  %v6536_v10 = vand.u32 4294901760, %v55_v7 }
   0x3   :  { %v6521_v4 = vand.u32 4294901760, %v41_v1  ;;  %v6534_v9 = vand.u32 4294901760, %v40_v6  ;;  %v6538_v11 = vand.u32 4294901760, %v39_v8  ;;  %v54_v12 = vld [vmem:[%s8711_s3 + $0xe0] sm:$0xff]  ;;  %v53_v14 = vld [vmem:[%s8711_s3 + $0xd8] sm:$0xff]  ;;  %v6567_v20 = vld [vmem:[%s8711_s3 + $0xd0] sm:$0xff] }
   0x4   :  { %v38_v13 = vld [vmem:[%s8711_s3 + $0x60] sm:$0xff]  ;;  %5225 = vmatprep.subr.mxu0 %v6519_v3  ;;  %v6550_v15 = vand.u32 4294901760, %v54_v12  ;;  %v6554_v17 = vand.u32 4294901760, %v53_v14  ;;  %v6557_v18 = vsub.f32 %v57_v0, %v6519_v3  ;;  %v6562_v19 = vld [vmem:[%s8711_s3 + $0x58] sm:$0xff]  ;;  %v6572_v21 = vld [vmem:[%s8711_s3 + $0x50] sm:$0xff]  ;;  %v6582_v24 = vand.u32 4294901760, %v6567_v20 }
   0x5   :  { %9042 = vst [vmem:[#allocation2_spill] sm:$0xff] %v6538_v11  ;;  %v6552_v16 = vand.u32 4294901760, %v38_v13  ;;  %5226 = vmatpush3.msra.mxu0 %v6521_v4  ;;  %v6576_v22 = vand.u32 4294901760, %v6562_v19  ;;  %v6579_v23 = vsub.f32 %v41_v1, %v6521_v4  ;;  %v6585_v25 = vsub.f32 %v56_v2, %v6523_v5  ;;  %v6590_v26 = vld [vmem:[%s8711_s3 + $0xc8] sm:$0xff]  ;;  %v6600_v28 = vld [vmem:[%s8711_s3 + $0xc0] sm:$0xff]  ;;  %v6659_v46 = vld [vmem:[%s8711_s3 + $0xb8] sm:$0xff] }
   0x6   :  { %9043 = vst [vmem:[#allocation3_spill] sm:$0xff] %v6550_v15  ;;  %9045 = vst [vmem:[#allocation5_spill] sm:$0xff] %v6554_v17  ;;  %v6595_v27 = vld [vmem:[%s8711_s3 + $0x48] sm:$0xff]  ;;  %5227 = vmatprep.subr.mxu0 %v6523_v5  ;;  %v6604_v29 = vand.u32 4294901760, %v6557_v18  ;;  %v6607_v30 = vand.u32 4294901760, %v6572_v21  ;;  %v6610_v31 = vsub.f32 %v40_v6, %v6534_v9  ;;  %v6613_v32 = vand.u32 4294901760, %v6590_v26 }
   0x7   :  { %9044 = vst [vmem:[#allocation4_spill] sm:$0xff] %v6552_v16  ;;  %9046 = vst [vmem:[#allocation6_spill] sm:$0xff] %v6557_v18  ;;  %5228 = vmatpush3.msra.mxu0 %v6534_v9  ;;  %v6617_v33 = vand.u32 4294901760, %v6579_v23  ;;  %v6620_v34 = vand.u32 4294901760, %v6585_v25  ;;  %v6623_v35 = vsub.f32 %v55_v7, %v6536_v10  ;;  %v6626_v36 = vand.u32 4294901760, %v6595_v27  ;;  %v6631_v37 = vld [vmem:[%s8711_s3 + $0x40] sm:$0xff] }
   0x8   :  { %9047 = vst [vmem:[#allocation7_spill] sm:$0xff] %v6576_v22  ;;  %9048 = vst [vmem:[#allocation8_spill] sm:$0xff] %v6579_v23  ;;  %5229 = vmatprep.subr.mxu0 %v6536_v10  ;;  %v314_v38 = vsub.f32 %v6557_v18, %v6604_v29  ;;  %v6637_v39 = vand.u32 4294901760, %v6610_v31  ;;  %v6640_v40 = vsub.f32 %v39_v8, %v6538_v11  ;;  %v6643_v41 = vand.u32 4294901760, %v6600_v28  ;;  %v6675_v51 = vld [vmem:[%s8711_s3 + $0x38] sm:$0xff]  ;;  %v6690_v56 = vld [vmem:[%s8711_s3 + $0xb0] sm:$0xff] }
   0x9   :  { %9049 = vst [vmem:[#allocation9_spill] sm:$0xff] %v6582_v24  ;;  %9050 = vst [vmem:[#allocation10_spill] sm:$0xff] %v6585_v25  ;;  %5230 = vmatpush3.msra.mxu0 %v6538_v11  ;;  %v202_v42 = vsub.f32 %v6579_v23, %v6617_v33  ;;  %v321_v43 = vsub.f32 %v6585_v25, %v6620_v34  ;;  %v6651_v44 = vand.u32 4294901760, %v6623_v35  ;;  %v6670_v50 = vand.u32 4294901760, %v6631_v37  ;;  %v6707_v61 = vld [vmem:[%s8711_s3 + $0x30] sm:$0xff]  ;;  %v6724_v2 = vld [vmem:[%s8711_s3 + $0xa8] sm:$0xff] }
   0xa   :  { %9051 = vst [vmem:[#allocation11_spill] sm:$0xff] %v6604_v29  ;;  %9052 = vst [vmem:[#allocation12_spill] sm:$0xff] %v6607_v30  ;;  %v6654_v45 = vsub.f32 %v54_v12, %v6550_v15  ;;  %5231 = vmatprep.subr.mxu0 %v6550_v15  ;;  %v6662_v47 = vand.u32 4294901760, %v314_v38  ;;  %v209_v48 = vsub.f32 %v6610_v31, %v6637_v39  ;;  %v6667_v49 = vand.u32 4294901760, %v6640_v40 }
   0xb   :  { %9053 = vst [vmem:[#allocation13_spill] sm:$0xff] %v6610_v31  ;;  %9054 = vst [vmem:[#allocation14_spill] sm:$0xff] %v6613_v32  ;;  %5232 = vmatpush3.msra.mxu0 %v6552_v16  ;;  %v6678_v52 = vand.u32 4294901760, %v202_v42  ;;  %v6680_v53 = vand.u32 4294901760, %v321_v43  ;;  %v328_v54 = vsub.f32 %v6623_v35, %v6651_v44  ;;  %v6699_v59 = vsub.f32 %v38_v13, %v6552_v16  ;;  %v6743_v13 = vld [vmem:[%s8711_s3 + $0x28] sm:$0xff] }
   0xc   :  { %9055 = vst [vmem:[#allocation15_spill] sm:$0xff] %v6617_v33  ;;  %9056 = vst [vmem:[#allocation16_spill] sm:$0xff] %v6620_v34  ;;  %v6685_v55 = vand.u32 4294901760, %v6654_v45  ;;  %5233 = vmatprep.subr.mxu0 %v6554_v17  ;;  %5260 = vmatprep.subr.mxu1 %v6662_v47  ;;  %v6694_v57 = vand.u32 4294901760, %v209_v48  ;;  %v216_v58 = vsub.f32 %v6640_v40, %v6667_v49  ;;  %v6702_v60 = vand.u32 4294901760, %v6659_v46  ;;  %v6896_v33 = vld [vmem:[%s8711_s3 + $0x88] sm:$0xff] }
   0xd   :  { %9057 = vst [vmem:[#allocation17_spill] sm:$0xff] %v6623_v35  ;;  %9058 = vst [vmem:[#allocation18_spill] sm:$0xff] %v6626_v36  ;;  %5234 = vmatpush3.msra.mxu0 %v6576_v22  ;;  %5261 = vmatpush3.msra.mxu1 %v6678_v52  ;;  %v6711_v62 = vand.u32 4294901760, %v328_v54  ;;  %v6716_v0 = vsub.f32 %v53_v14, %v6554_v17  ;;  %v6719_v1 = vand.u32 4294901760, %v6675_v51  ;;  %v6731_v7 = vand.u32 4294901760, %v6699_v59 }
   0xe   :  { %9059 = vst [vmem:[#allocation19_spill] sm:$0xff] %v6637_v39  ;;  %9060 = vst [vmem:[#allocation20_spill] sm:$0xff] %v6640_v40  ;;  %v335_v63 = vsub.f32 %v6654_v45, %v6685_v55  ;;  %5235 = vmatprep.subr.mxu0 %v6582_v24  ;;  %5262 = vmatprep.subr.mxu1 %v6680_v53  ;;  %v6728_v6 = vand.u32 4294901760, %v216_v58  ;;  %v6735_v8 = vsub.f32 %v6562_v19, %v6576_v22  ;;  %v6776_v58 = vld [vmem:[%s8711_s3 + $0xa0] sm:$0xff]  ;;  %v6877_v39 = vld [vmem:[%s8711_s3 + $0x10] sm:$0xff] }
   0xf   :  { %9061 = vst [vmem:[#allocation21_spill] sm:$0xff] %v6643_v41  ;;  %9062 = vst [vmem:[#allocation22_spill] sm:$0xff] %v6651_v44  ;;  %v6738_v12 = vand.u32 4294901760, %v6690_v56  ;;  %5236 = vmatpush3.msra.mxu0 %v6607_v30  ;;  %5263 = vmatpush3.msra.mxu1 %v6694_v57  ;;  %v6750_v38 = vand.u32 4294901760, %v6716_v0  ;;  %v6754_v19 = vsub.f32 %v6567_v20, %v6582_v24  ;;  %v6757_v42 = vand.u32 4294901760, %v6707_v61  ;;  %v6860_v44 = vld [vmem:[%s8711_s3 + $0x90] sm:$0xff] }
  0x10   :  { %9063 = vst [vmem:[#allocation23_spill] sm:$0xff] %v6654_v45  ;;  %9064 = vst [vmem:[#allocation24_spill] sm:$0xff] %v6662_v47  ;;  %v6747_v14 = vand.u32 4294901760, %v335_v63  ;;  %5237 = vmatprep.subr.mxu0 %v6613_v32  ;;  %5264 = vmatprep.subr.mxu1 %v6711_v62  ;;  %v223_v43 = vsub.f32 %v6699_v59, %v6731_v7  ;;  %v6764_v48 = vand.u32 4294901760, %v6735_v8  ;;  %v6771_v20 = vand.u32 4294901760, %v6724_v2 }
  0x11   :  { %9065 = vst [vmem:[#allocation25_spill] sm:$0xff] %v6667_v49  ;;  %9066 = vst [vmem:[#allocation26_spill] sm:$0xff] %v6670_v50  ;;  %v6768_v54 = vsub.f32 %v6572_v21, %v6607_v30  ;;  %5238 = vmatpush3.msra.mxu0 %v6626_v36  ;;  %5265 = vmatpush3.msra.mxu1 %v6728_v6  ;;  %v342_v63 = vsub.f32 %v6716_v0, %v6750_v38  ;;  %v6842_v49 = vld [vmem:[%s8711_s3 + $0x18] sm:$0xff]  ;;  %v6909_v29 = vand.u32 4294901760, %v6860_v44 }
  0x12   :  { %9067 = vst [vmem:[#allocation27_spill] sm:$0xff] %v6678_v52  ;;  %9068 = vst [vmem:[#allocation28_spill] sm:$0xff] %v6680_v53  ;;  %v6787_v21 = vsub.f32 %v6590_v26, %v6613_v32  ;;  %5239 = vmatprep.subr.mxu0 %v6643_v41  ;;  %5266 = vmatprep.subr.mxu1 %v6747_v14  ;;  %v6794_v53 = vand.u32 4294901760, %v223_v43  ;;  %v6803_v47 = vsub.f32 %v6595_v27, %v6626_v36  ;;  %v6808_v26 = vld [vmem:[%s8711_s3 + $0x20] sm:$0xff]  ;;  %v6824_v27 = vld [vmem:[%s8711_s3 + $0x98] sm:$0xff] }
  0x13   :  { %9069 = vst [vmem:[#allocation29_spill] sm:$0xff] %v6685_v55  ;;  %9070 = vst [vmem:[#allocation30_spill] sm:$0xff] %v6694_v57  ;;  %v6790_v57 = vand.u32 4294901760, %v6743_v13  ;;  %v6799_v52 = vand.u32 4294901760, %v6768_v54  ;;  %5240 = vmatpush3.msra.mxu0 %v6670_v50  ;;  %v6837_v55 = vsub.f32 %v6600_v28, %v6643_v41  ;;  %v6855_v28 = vsub.f32 %v6631_v37, %v6670_v50 }
  0x14   :  { %9071 = vst [vmem:[#allocation31_spill] sm:$0xff] %v6699_v59  ;;  %9072 = vst [vmem:[#allocation32_spill] sm:$0xff] %v6702_v60  ;;  %5267 = vmatpush3.msra.mxu1 %v6794_v53  ;;  %5241 = vmatprep.subr.mxu0 %v6702_v60  ;;  %v6872_v37 = vand.u32 4294901760, %v6824_v27  ;;  %v6891_v34 = vand.u32 4294901760, %v6842_v49 }
  0x15   :  { %9073 = vst [vmem:[#allocation33_spill] sm:$0xff] %v6711_v62  ;;  %9074 = vst [vmem:[#allocation34_spill] sm:$0xff] %v6716_v0  ;;  %v6783_v62 = vand.u32 4294901760, %v6754_v19  ;;  %5242 = vmatpush3.msra.mxu0 %v6719_v1 }
  0x16   :  { %9075 = vst [vmem:[#allocation35_spill] sm:$0xff] %v6719_v1  ;;  %9076 = vst [vmem:[#allocation36_spill] sm:$0xff] %v6728_v6  ;;  %v230_v6 = vsub.f32 %v6735_v8, %v6764_v48  ;;  %5243 = vmatprep.subr.mxu0 %v6738_v12 }
  0x17   :  { %9077 = vst [vmem:[#allocation37_spill] sm:$0xff] %v6731_v7  ;;  %9078 = vst [vmem:[#allocation38_spill] sm:$0xff] %v6735_v8  ;;  %v349_v43 = vsub.f32 %v6754_v19, %v6783_v62  ;;  %v6833_v7 = vand.u32 4294901760, %v6803_v47  ;;  %5244 = vmatpush3.msra.mxu0 %v6757_v42 }
  0x18   :  { %9079 = vst [vmem:[#allocation39_spill] sm:$0xff] %v6738_v12  ;;  %9080 = vst [vmem:[#allocation40_spill] sm:$0xff] %v6747_v14  ;;  %v6811_v14 = vand.u32 4294901760, %v342_v63  ;;  %v6828_v63 = vand.u32 4294901760, %v230_v6  ;;  %5245 = vmatprep.subr.mxu0 %v6771_v20 }
  0x19   :  { %9081 = vst [vmem:[#allocation41_spill] sm:$0xff] %v6750_v38  ;;  %9082 = vst [vmem:[#allocation42_spill] sm:$0xff] %v6754_v19  ;;  %v6819_v38 = vand.u32 4294901760, %v6776_v58  ;;  %v6846_v6 = vand.u32 4294901760, %v349_v43  ;;  %5246 = vmatpush3.msra.mxu0 %v6790_v57 }
  0x1a   :  { %9083 = vst [vmem:[#allocation43_spill] sm:$0xff] %v6757_v42  ;;  %9084 = vst [vmem:[#allocation44_spill] sm:$0xff] %v6764_v48  ;;  %v6816_v48 = vand.u32 4294901760, %v6787_v21  ;;  %5268 = vmatprep.subr.mxu1 %v6811_v14 }
  0x1b   :  { %9085 = vst [vmem:[#allocation45_spill] sm:$0xff] %v6768_v54  ;;  %9086 = vst [vmem:[#allocation46_spill] sm:$0xff] %v6771_v20  ;;  %5269 = vmatpush3.msra.mxu1 %v6828_v63  ;;  %5247 = vmatprep.subr.mxu0 %v6819_v38 }
  0x1c   :  { %9087 = vst [vmem:[#allocation47_spill] sm:$0xff] %v6783_v62  ;;  %9088 = vst [vmem:[#allocation48_spill] sm:$0xff] %v6787_v21  ;;  %v237_v62 = vsub.f32 %v6768_v54, %v6799_v52  ;;  %5270 = vmatprep.subr.mxu1 %v6846_v6 }
  0x1d   :  { %9089 = vst [vmem:[#allocation49_spill] sm:$0xff] %v6790_v57  ;;  %9090 = vst [vmem:[#allocation50_spill] sm:$0xff] %v6794_v53  ;;  %v356_v53 = vsub.f32 %v6787_v21, %v6816_v48 }
  0x1e   :  { %9091 = vst [vmem:[#allocation51_spill] sm:$0xff] %v6799_v52  ;;  %9092 = vst [vmem:[#allocation52_spill] sm:$0xff] %v6803_v47  ;;  %v6851_v52 = vand.u32 4294901760, %v6808_v26  ;;  %v6864_v43 = vand.u32 4294901760, %v237_v62 }
  0x1f   :  { %9093 = vst [vmem:[#allocation53_spill] sm:$0xff] %v6811_v14  ;;  %9094 = vst [vmem:[#allocation54_spill] sm:$0xff] %v6816_v48  ;;  %v244_v14 = vsub.f32 %v6803_v47, %v6833_v7  ;;  %v6869_v48 = vand.u32 4294901760, %v6837_v55  ;;  %v6881_v62 = vand.u32 4294901760, %v356_v53 }
  0x20   :  { %9095 = vst [vmem:[#allocation55_spill] sm:$0xff] %v6819_v38  ;;  %9096 = vst [vmem:[#allocation56_spill] sm:$0xff] %v6828_v63  ;;  %v6884_v63 = vand.u32 4294901760, %v6855_v28  ;;  %5271 = vmatpush3.msra.mxu1 %v6864_v43  ;;  %5248 = vmatpush3.msra.mxu0 %v6851_v52 }
  0x21   :  { %9097 = vst [vmem:[#allocation57_spill] sm:$0xff] %v6833_v7  ;;  %9098 = vst [vmem:[#allocation58_spill] sm:$0xff] %v6837_v55  ;;  %v6888_v7 = vsub.f32 %v6659_v46, %v6702_v60  ;;  %v6900_v53 = vand.u32 4294901760, %v244_v14  ;;  %v6906_v46 = vsub.f32 %v6675_v51, %v6719_v1  ;;  %5272 = vmatprep.subr.mxu1 %v6881_v62  ;;  %v6923_v51 = vand.u32 4294901760, %v6877_v39  ;;  %v6928_v1 = vld [vmem:[%s8711_s3 + $0x8] sm:$0xff]  ;;  %v6947_v60 = vld [vmem:[%s8711_s3 + $0x80] sm:$0xff] }
  0x22   :  { %9099 = vst [vmem:[#allocation59_spill] sm:$0xff] %v6846_v6  ;;  %9100 = vst [vmem:[#allocation60_spill] sm:$0xff] %v6851_v52  ;;  %v363_v6 = vsub.f32 %v6837_v55, %v6869_v48  ;;  %5249 = vmatprep.subr.mxu0 %v6872_v37  ;;  %v6969_v41 = vand.u32 4294901760, %v6928_v1 }
  0x23   :  { %9101 = vst [vmem:[#allocation61_spill] sm:$0xff] %v6855_v28  ;;  %9102 = vst [vmem:[#allocation62_spill] sm:$0xff] %v6864_v43  ;;  %v251_v43 = vsub.f32 %v6855_v28, %v6884_v63  ;;  %v6916_v14 = vand.u32 4294901760, %v6888_v7  ;;  %5273 = vmatpush3.msra.mxu1 %v6900_v53  ;;  %5250 = vmatpush3.msra.mxu0 %v6891_v34 }
  0x24   :  { %9103 = vst [vmem:[#allocation63_spill] sm:$0xff] %v6869_v48  ;;  %9104 = vst [vmem:[#allocation64_spill] sm:$0xff] %v6872_v37  ;;  %v6920_v48 = vsub.f32 %v6690_v56, %v6738_v12  ;;  %v6939_v56 = vsub.f32 %v6707_v61, %v6757_v42  ;;  %v6942_v12 = vand.u32 4294901760, %v6896_v33  ;;  %v6959_v61 = vsub.f32 %v6724_v2, %v6771_v20  ;;  %v6978_v2 = vld [vmem:[%s8711_s3] sm:$0xff] }
  0x25   :  { %9105 = vst [vmem:[#allocation65_spill] sm:$0xff] %v6881_v62  ;;  %9106 = vst [vmem:[#allocation66_spill] sm:$0xff] %v6884_v63  ;;  %v6932_v62 = vand.u32 4294901760, %v363_v6  ;;  %v6935_v63 = vand.u32 4294901760, %v6906_v46  ;;  %v370_v6 = vsub.f32 %v6888_v7, %v6916_v14  ;;  %5251 = vmatprep.subr.mxu0 %v6909_v29  ;;  %v7014_v30 = vand.u32 4294901760, %v6978_v2 }
  0x26   :  { %9107 = vst [vmem:[#allocation67_spill] sm:$0xff] %v6888_v7  ;;  %9108 = vst [vmem:[#allocation68_spill] sm:$0xff] %v6891_v34  ;;  %v6955_v50 = vand.u32 4294901760, %v6920_v48  ;;  %v6987_v20 = vand.u32 4294901760, %v6959_v61  ;;  %5252 = vmatpush3.msra.mxu0 %v6923_v51 }
  0x27   :  { %9109 = vst [vmem:[#allocation69_spill] sm:$0xff] %v6900_v53  ;;  %9110 = vst [vmem:[#allocation70_spill] sm:$0xff] %v6906_v46  ;;  %v6950_v53 = vand.u32 4294901760, %v251_v43  ;;  %5274 = vmatprep.subr.mxu1 %v6932_v62  ;;  %v258_v42 = vsub.f32 %v6906_v46, %v6935_v63  ;;  %v6966_v43 = vand.u32 4294901760, %v6939_v56  ;;  %5253 = vmatprep.subr.mxu0 %v6942_v12 }
  0x28   :  { %9111 = vst [vmem:[#allocation71_spill] sm:$0xff] %v6909_v29  ;;  %9112 = vst [vmem:[#allocation72_spill] sm:$0xff] %v6916_v14  ;;  %v6973_v14 = vsub.f32 %v6743_v13, %v6790_v57  ;;  %v6990_v13 = vand.u32 4294901760, %v6947_v60  ;;  %v24_v57 = vld [vmem:[%s8712_s0 + $0x8] sm:$0xff]  ;;  %5254 = vmatpush3.msra.mxu0 %v6969_v41 }
  0x29   :  { %9113 = vst [vmem:[#allocation73_spill] sm:$0xff] %v6920_v48  ;;  %9114 = vst [vmem:[#allocation74_spill] sm:$0xff] %v6923_v51  ;;  %5275 = vmatpush3.msra.mxu1 %v6950_v53  ;;  %v6995_v36 = vand.u32 4294901760, %v258_v42  ;;  %v384_v42 = vsub.f32 %v6959_v61, %v6987_v20 }
  0x2a   :  { %9115 = vst [vmem:[#allocation75_spill] sm:$0xff] %v6932_v62  ;;  %9116 = vst [vmem:[#allocation76_spill] sm:$0xff] %v6935_v63  ;;  %v6981_v62 = vand.u32 4294901760, %v370_v6  ;;  %v377_v63 = vsub.f32 %v6920_v48, %v6955_v50  ;;  %v265_v6 = vsub.f32 %v6939_v56, %v6966_v43  ;;  %5255 = vmatprep.subr.mxu0 %v6990_v13 }
  0x2b   :  { %9117 = vst [vmem:[#allocation77_spill] sm:$0xff] %v6939_v56  ;;  %9118 = vst [vmem:[#allocation78_spill] sm:$0xff] %v6942_v12  ;;  %5256 = vmatpush3.msra.mxu0 %v7014_v30 }
  0x2c   :  { %9119 = vst [vmem:[#allocation79_spill] sm:$0xff] %v6950_v53  ;;  %9120 = vst [vmem:[#allocation80_spill] sm:$0xff] %v6955_v50  ;;  %v7001_v53 = vand.u32 4294901760, %v6973_v14  ;;  %v7005_v50 = vsub.f32 %v6776_v58, %v6819_v38  ;;  %5276 = vmatprep.subr.mxu1 %v6981_v62  ;;  %v7008_v32 = vand.u32 4294901760, %v377_v63  ;;  %v23_v58 = vld [vmem:[%s8712_s0] sm:$0xff]  ;;  %v7024_v63 = vand.u32 4294901760, %v265_v6  ;;  %5295 = vmatprep.subr.mxu0 %v6557_v18 }
  0x2d   :  { %9121 = vst [vmem:[#allocation81_spill] sm:$0xff] %v6959_v61  ;;  %9122 = vst [vmem:[#allocation82_spill] sm:$0xff] %v6966_v43  ;;  %v7018_v43 = vsub.f32 %v6808_v26, %v6851_v52  ;;  %5277 = vmatpush3.msra.mxu1 %v6995_v36  ;;  %v7032_v38 = vand.u32 4294901760, %v24_v57  ;;  %v7035_v26 = vand.u32 4294901760, %v384_v42  ;;  %v7043_v6 = vsub.f32 %v6824_v27, %v6872_v37 }
  0x2e   :  { %9123 = vst [vmem:[#allocation83_spill] sm:$0xff] %v6969_v41  ;;  %9124 = vst [vmem:[#allocation84_spill] sm:$0xff] %v6973_v14  ;;  %5278 = vmatprep.subr.mxu1 %v7008_v32  ;;  %v7054_v52 = vand.u32 4294901760, %v23_v58  ;;  %v7081_v37 = vsub.f32 %v6877_v39, %v6923_v51  ;;  %v7104_v18 = vsub.f32 %v6896_v33, %v6942_v12 }
  0x2f   :  { %9125 = vst [vmem:[#allocation85_spill] sm:$0xff] %v6981_v62  ;;  %9126 = vst [vmem:[#allocation86_spill] sm:$0xff] %v6987_v20  ;;  %v272_v62 = vsub.f32 %v6973_v14, %v7001_v53  ;;  %v7030_v20 = vand.u32 4294901760, %v7005_v50  ;;  %5279 = vmatpush3.msra.mxu1 %v7024_v63  ;;  %v7052_v42 = vsub.f32 %v24_v57, %v7032_v38  ;;  %423 = vmatprep.mubr.f32.mxu1 %v7032_v38 }
  0x30   :  { %9127 = vst [vmem:[#allocation87_spill] sm:$0xff] %v6990_v13  ;;  %9128 = vst [vmem:[#allocation88_spill] sm:$0xff] %v6995_v36  ;;  %v7039_v36 = vand.u32 4294901760, %v7018_v43  ;;  %5280 = vmatprep.subr.mxu1 %v7035_v26  ;;  %v7069_v57 = vsub.f32 %v6860_v44, %v6909_v29 }
  0x31   :  { %9129 = vst [vmem:[#allocation89_spill] sm:$0xff] %v7001_v53  ;;  %9130 = vst [vmem:[#allocation90_spill] sm:$0xff] %v7005_v50  ;;  %v7046_v53 = vand.u32 4294901760, %v272_v62  ;;  %v7061_v62 = vand.u32 4294901760, %v7043_v6 }
  0x32   :  { %9131 = vst [vmem:[#allocation91_spill] sm:$0xff] %v7008_v32  ;;  %9132 = vst [vmem:[#allocation92_spill] sm:$0xff] %v7014_v30  ;;  %v391_v32 = vsub.f32 %v7005_v50, %v7030_v20  ;;  %v279_v27 = vsub.f32 %v7018_v43, %v7039_v36 }
  0x33   :  { %9133 = vst [vmem:[#allocation93_spill] sm:$0xff] %v7018_v43  ;;  %9134 = vst [vmem:[#allocation94_spill] sm:$0xff] %v7024_v63  ;;  %v7065_v63 = vsub.f32 %v6842_v49, %v6891_v34  ;;  %5281 = vmatpush3.msra.mxu1 %v7046_v53  ;;  %v398_v44 = vsub.f32 %v7043_v6, %v7061_v62 }
  0x34   :  { %9135 = vst [vmem:[#allocation95_spill] sm:$0xff] %v7030_v20  ;;  %9136 = vst [vmem:[#allocation96_spill] sm:$0xff] %v7032_v38  ;;  %v7072_v20 = vand.u32 4294901760, %v391_v32  ;;  %v7083_v49 = vand.u32 4294901760, %v279_v27  ;;  %v7091_v32 = vand.u32 4294901760, %v7069_v57  ;;  %v7100_v27 = vand.u32 4294901760, %v7081_v37 }
  0x35   :  { %9137 = vst [vmem:[#allocation97_spill] sm:$0xff] %v7035_v26  ;;  %9138 = vst [vmem:[#allocation98_spill] sm:$0xff] %v7039_v36  ;;  %v8823_v26 = vand.u32 4294901760, %v7052_v42  ;;  %v7077_v36 = vsub.f32 %v23_v58, %v7054_v52 }
  0x36   :  { %9139 = vst [vmem:[#allocation99_spill] sm:$0xff] %v7043_v6  ;;  %9140 = vst [vmem:[#allocation100_spill] sm:$0xff] %v7046_v53  ;;  %v7088_v53 = vand.u32 4294901760, %v7065_v63  ;;  %5282 = vmatprep.subr.mxu1 %v7072_v20  ;;  %v405_v38 = vsub.f32 %v7069_v57, %v7091_v32 }
  0x37   :  { %9141 = vst [vmem:[#allocation101_spill] sm:$0xff] %v7061_v62  ;;  %9142 = vst [vmem:[#allocation102_spill] sm:$0xff] %v7065_v63  ;;  %v185_v39 = vsub.f32 %v7052_v42, %v8823_v26  ;;  %5283 = vmatpush3.msra.mxu1 %v7083_v49  ;;  %v7107_v62 = vand.u32 4294901760, %v398_v44  ;;  %v7115_v26 = vsub.f32 %v6928_v1, %v6969_v41  ;;  %v9153_v51 = vand.u32 4294901760, %v7077_v36 }
  0x38   :  { %9143 = vst [vmem:[#allocation103_spill] sm:$0xff] %v7069_v57  ;;  %9144 = vst [vmem:[#allocation104_spill] sm:$0xff] %v7072_v20  ;;  %v286_v20 = vsub.f32 %v7065_v63, %v7088_v53  ;;  %v7123_v44 = vand.u32 4294901760, %v7104_v18 }
  0x39   :  { %9145 = vst [vmem:[#allocation105_spill] sm:$0xff] %v7081_v37  ;;  %9146 = vst [vmem:[#allocation106_spill] sm:$0xff] %v7083_v49  ;;  %v186_v58 = vand.u32 4294901760, %v185_v39  ;;  %v191_v33 = vsub.f32 %v7077_v36, %v9153_v51  ;;  %v293_v49 = vsub.f32 %v7081_v37, %v7100_v27  ;;  %5284 = vmatprep.subr.mxu1 %v7107_v62  ;;  %v7131_v1 = vand.u32 4294901760, %v7115_v26 }
  0x3a   :  { %9147 = vst [vmem:[#allocation107_spill] sm:$0xff] %v7088_v53  ;;  %9148 = vst [vmem:[#allocation108_spill] sm:$0xff] %v7091_v32  ;;  %v7126_v53 = vand.u32 4294901760, %v286_v20  ;;  %v7128_v32 = vand.u32 4294901760, %v405_v38  ;;  %v7135_v39 = vsub.f32 %v6947_v60, %v6990_v13  ;;  %v7143_v20 = vsub.f32 %v6978_v2, %v7014_v30 }
  0x3b   :  { %9149 = vst [vmem:[#allocation109_spill] sm:$0xff] %v7100_v27  ;;  %9150 = vst [vmem:[#allocation110_spill] sm:$0xff] %v7104_v18  ;;  %187 = vmatprep.mubr.f32.mxu0 %v186_v58  ;;  %v192_v51 = vand.u32 4294901760, %v191_v33  ;;  %v7137_v41 = vand.u32 4294901760, %v293_v49  ;;  %v412_v27 = vsub.f32 %v7104_v18, %v7123_v44  ;;  %v300_v38 = vsub.f32 %v7115_v26, %v7131_v1 }
  0x3c   :  { %9151 = vst [vmem:[#allocation111_spill] sm:$0xff] %v7107_v62  ;;  %9152 = vst [vmem:[#allocation112_spill] sm:$0xff] %v7115_v26  ;;  %5285 = vmatpush3.msra.mxu1 %v7126_v53  ;;  %v7149_v62 = vand.u32 4294901760, %v7135_v39  ;;  %v7155_v49 = vand.u32 4294901760, %v7143_v20 }
  0x3d   :  { %9154 = vst [vmem:[#allocation113_spill] sm:$0xff] %v7123_v44  ;;  %9155 = vst [vmem:[#allocation114_spill] sm:$0xff] %v7126_v53  ;;  %193 = vmatmul.mubr.f32.vlgmr.msra.gmra.mxu0 %v192_v51  ;;  %5286 = vmatprep.subr.mxu1 %v7128_v32  ;;  %v7152_v60 = vand.u32 4294901760, %v412_v27  ;;  %v7159_v2 = vand.u32 4294901760, %v300_v38  ;;  %v9167_v38 = vld [vmem:[#allocation12_spill] sm:$0xff]  ;;  %v59_v53 = vld [vmem:[%s8711_s3 + $0x108] sm:$0xff] }
  0x3e   :  { %9156 = vst [vmem:[#allocation115_spill] sm:$0xff] %v7128_v32  ;;  %9157 = vst [vmem:[#allocation116_spill] sm:$0xff] %v7131_v1  ;;  %5296 = vmatpush3.msra.mxu0 %v6579_v23  ;;  %5287 = vmatpush3.msra.mxu1 %v7137_v41  ;;  %v419_v58 = vsub.f32 %v7135_v39, %v7149_v62  ;;  %v307_v27 = vsub.f32 %v7143_v20, %v7155_v49 }
  0x3f   :  { %9158 = vst [vmem:[#allocation117_spill] sm:$0xff] %v7135_v39  ;;  %9159 = vst [vmem:[#allocation118_spill] sm:$0xff] %v7137_v41  ;;  %5297 = vmatprep.subr.mxu0 %v6585_v25  ;;  %5288 = vmatprep.subr.mxu1 %v7152_v60 }
  0x40   :  { %9160 = vst [vmem:[#allocation119_spill] sm:$0xff] %v7143_v20  ;;  %9161 = vst [vmem:[#allocation120_spill] sm:$0xff] %v7149_v62  ;;  %5298 = vmatpush3.msra.mxu0 %v6610_v31  ;;  %5289 = vmatpush3.msra.mxu1 %v7159_v2  ;;  %v7169_v33 = vand.u32 4294901760, %v419_v58  ;;  %v7172_v51 = vand.u32 4294901760, %v307_v27  ;;  %v9168_v58 = vld [vmem:[#allocation14_spill] sm:$0xff]  ;;  %v65_v31 = vld [vmem:[%s8711_s3 + $0x138] sm:$0xff] }
  0x41   :  { %9162 = vst [vmem:[#allocation121_spill] sm:$0xff] %v7152_v60  ;;  %9163 = vst [vmem:[#allocation122_spill] sm:$0xff] %v7155_v49  ;;  %5299 = vmatprep.subr.mxu0 %v6623_v35  ;;  %560 = vmatprep.mubr.f32.mxu0 %v7052_v42  ;;  %v9169_v27 = vld [vmem:[#allocation18_spill] sm:$0xff] }
  0x42   :  { %9164 = vst [vmem:[#allocation123_spill] sm:$0xff] %v7159_v2  ;;  %9165 = vst [vmem:[#allocation124_spill] sm:$0xff] %v7169_v33  ;;  %5300 = vmatpush3.msra.mxu0 %v6640_v40  ;;  %5290 = vmatprep.subr.mxu1 %v7169_v33 }
  0x43   :  { %9166 = vst [vmem:[#allocation125_spill] sm:$0xff] %v7172_v51  ;;  %5301 = vmatprep.subr.mxu0 %v6654_v45  ;;  %5291 = vmatpush3.msra.mxu1 %v7172_v51  ;;  %v66_v45 = vld [vmem:[%s8711_s3 + $0x140] sm:$0xff] }
  0x44   :  { %5302 = vmatpush3.msra.mxu0 %v6699_v59  ;;  %425 = vmatmul.mubr.f32.vlgmr.msra.gmra.mxu1 %v7054_v52 }
  0x45   :  { %5303 = vmatprep.subr.mxu0 %v6716_v0  ;;  %5330 = vmatprep.subr.mxu1 %v6519_v3 }
  0x46   :  { %5304 = vmatpush3.msra.mxu0 %v6735_v8  ;;  %5331 = vmatpush3.msra.mxu1 %v6521_v4  ;;  %v8876_v8 = vmov 0.0  }
  0x47   :  { %5305 = vmatprep.subr.mxu0 %v6754_v19  ;;  %5332 = vmatprep.subr.mxu1 %v6523_v5 }
  0x48   :  { %5306 = vmatpush3.msra.mxu0 %v6768_v54  ;;  %5333 = vmatpush3.msra.mxu1 %v6534_v9 }
  0x49   :  { %5307 = vmatprep.subr.mxu0 %v6787_v21  ;;  %5334 = vmatprep.subr.mxu1 %v6536_v10  ;;  %v9193_v21 = vld [vmem:[#allocation41_spill] sm:$0xff] }
  0x4a   :  { %5308 = vmatpush3.msra.mxu0 %v6803_v47  ;;  %5335 = vmatpush3.msra.mxu1 %v6538_v11  ;;  %v9188_v47 = vld [vmem:[#allocation25_spill] sm:$0xff] }
  0x4b   :  { %5309 = vmatprep.subr.mxu0 %v6837_v55  ;;  %5336 = vmatprep.subr.mxu1 %v6550_v15  ;;  %v9187_v55 = vld [vmem:[#allocation83_spill] sm:$0xff] }
  0x4c   :  { %5310 = vmatpush3.msra.mxu0 %v6855_v28  ;;  %5337 = vmatpush3.msra.mxu1 %v6552_v16  ;;  %v9185_v28 = vld [vmem:[#allocation19_spill] sm:$0xff] }
  0x4d   :  { %5311 = vmatprep.subr.mxu0 %v6888_v7  ;;  %5338 = vmatprep.subr.mxu1 %v6554_v17  ;;  %v9181_v7 = vld [vmem:[#allocation11_spill] sm:$0xff] }
  0x4e   :  { %5312 = vmatpush3.msra.mxu0 %v6906_v46  ;;  %5339 = vmatpush3.msra.mxu1 %v6576_v22  ;;  %v9170_v46 = vld [vmem:[#allocation21_spill] sm:$0xff] }
  0x4f   :  { %5313 = vmatprep.subr.mxu0 %v6920_v48  ;;  %5340 = vmatprep.subr.mxu1 %v6582_v24  ;;  %v9171_v48 = vld [vmem:[#allocation26_spill] sm:$0xff] }
  0x50   :  { %5314 = vmatpush3.msra.mxu0 %v6939_v56  ;;  %5341 = vmatpush3.msra.mxu1 %v9167_v38  ;;  %v9172_v56 = vld [vmem:[#allocation32_spill] sm:$0xff] }
  0x51   :  { %5315 = vmatprep.subr.mxu0 %v6959_v61  ;;  %5342 = vmatprep.subr.mxu1 %v9168_v58  ;;  %v9173_v61 = vld [vmem:[#allocation35_spill] sm:$0xff] }
  0x52   :  { %5316 = vmatpush3.msra.mxu0 %v6973_v14  ;;  %5343 = vmatpush3.msra.mxu1 %v9169_v27  ;;  %v9174_v14 = vld [vmem:[#allocation39_spill] sm:$0xff] }
  0x53   :  { %5317 = vmatprep.subr.mxu0 %v7005_v50  ;;  %5344 = vmatprep.subr.mxu1 %v9170_v46  ;;  %v9175_v50 = vld [vmem:[#allocation43_spill] sm:$0xff] }
  0x54   :  { %5318 = vmatpush3.msra.mxu0 %v7018_v43  ;;  %5345 = vmatpush3.msra.mxu1 %v9171_v48  ;;  %v9176_v43 = vld [vmem:[#allocation46_spill] sm:$0xff] }
  0x55   :  { %5319 = vmatprep.subr.mxu0 %v7043_v6  ;;  %5346 = vmatprep.subr.mxu1 %v9172_v56  ;;  %v9177_v6 = vld [vmem:[#allocation49_spill] sm:$0xff] }
  0x56   :  { %5320 = vmatpush3.msra.mxu0 %v7065_v63  ;;  %5347 = vmatpush3.msra.mxu1 %v9173_v61  ;;  %v9178_v63 = vld [vmem:[#allocation55_spill] sm:$0xff] }
  0x57   :  { %5321 = vmatprep.subr.mxu0 %v7069_v57  ;;  %5348 = vmatprep.subr.mxu1 %v9174_v14  ;;  %v9179_v57 = vld [vmem:[#allocation60_spill] sm:$0xff] }
  0x58   :  { %5322 = vmatpush3.msra.mxu0 %v7081_v37  ;;  %5349 = vmatpush3.msra.mxu1 %v9175_v50  ;;  %v9180_v37 = vld [vmem:[#allocation64_spill] sm:$0xff] }
  0x59   :  { %5323 = vmatprep.subr.mxu0 %v7104_v18  ;;  %5350 = vmatprep.subr.mxu1 %v9176_v43  ;;  %v9182_v18 = vld [vmem:[#allocation15_spill] sm:$0xff] }
  0x5a   :  { %5324 = vmatpush3.msra.mxu0 %v7115_v26  ;;  %5351 = vmatpush3.msra.mxu1 %v9177_v6  ;;  %v9183_v26 = vld [vmem:[#allocation16_spill] sm:$0xff] }
  0x5b   :  { %5325 = vmatprep.subr.mxu0 %v7135_v39  ;;  %5352 = vmatprep.subr.mxu1 %v9178_v63  ;;  %v9184_v39 = vld [vmem:[#allocation74_spill] sm:$0xff] }
  0x5c   :  { %5326 = vmatpush3.msra.mxu0 %v7143_v20  ;;  %5353 = vmatpush3.msra.mxu1 %v9179_v57  ;;  %v9186_v20 = vld [vmem:[#allocation22_spill] sm:$0xff] }
  0x5d   :  { %563 = vmatmul.mubr.f32.vlgmr.msra.gmra.mxu0 %v7077_v36  ;;  %5354 = vmatprep.subr.mxu1 %v9180_v37 }
  0x5e   :  { %5365 = vmatprep.subr.mxu0 %v9181_v7  ;;  %5355 = vmatpush3.msra.mxu1 %v6891_v34  ;;  %v9189_v7 = vld [vmem:[#allocation29_spill] sm:$0xff] }
  0x5f   :  { %5366 = vmatpush3.msra.mxu0 %v9182_v18  ;;  %5356 = vmatprep.subr.mxu1 %v6909_v29  ;;  %v9191_v18 = vld [vmem:[#allocation37_spill] sm:$0xff] }
  0x60   :  { %5367 = vmatprep.subr.mxu0 %v9183_v26  ;;  %5357 = vmatpush3.msra.mxu1 %v9184_v39  ;;  %v9190_v26 = vand.u32 4294901760, %v7052_v42  ;;  %v9200_v42 = vld [vmem:[#allocation66_spill] sm:$0xff] }
  0x61   :  { %5368 = vmatpush3.msra.mxu0 %v9185_v28  ;;  %5358 = vmatprep.subr.mxu1 %v6942_v12  ;;  %v9192_v28 = vand.u32 4294901760, %v7077_v36  ;;  %v9198_v36 = vld [vmem:[#allocation57_spill] sm:$0xff] }
  0x62   :  { %5369 = vmatprep.subr.mxu0 %v9186_v20  ;;  %5359 = vmatpush3.msra.mxu1 %v9187_v55  ;;  %v9194_v20 = vld [vmem:[#allocation44_spill] sm:$0xff] }
  0x63   :  { %5370 = vmatpush3.msra.mxu0 %v9188_v47  ;;  %5360 = vmatprep.subr.mxu1 %v6990_v13  ;;  %v9195_v47 = vld [vmem:[#allocation47_spill] sm:$0xff] }
  0x64   :  { %5371 = vmatprep.subr.mxu0 %v9189_v7  ;;  %5361 = vmatpush3.msra.mxu1 %v7014_v30  ;;  %v9196_v7 = vld [vmem:[#allocation51_spill] sm:$0xff] }
  0x65   :  { %667 = vmatprep.mubr.f32.mxu1 %v9190_v26  ;;  %5372 = vmatpush3.msra.mxu0 %v9191_v18  ;;  %v9197_v26 = vld [vmem:[#allocation54_spill] sm:$0xff]  ;;  %v9212_v18 = vld [vmem:[#allocation109_spill] sm:$0xff] }
  0x66   :  { %671 = vmatmul.mubr.f32.vlgmr.msra.gmra.mxu1 %v9192_v28  ;;  %5373 = vmatprep.subr.mxu0 %v9193_v21  ;;  %v9199_v28 = vld [vmem:[#allocation63_spill] sm:$0xff] }
  0x67   :  { %5400 = vmatprep.subr.mxu1 %v6519_v3  ;;  %5374 = vmatpush3.msra.mxu0 %v9194_v20  ;;  %v9210_v20 = vld [vmem:[#allocation107_spill] sm:$0xff] }
  0x68   :  { %5401 = vmatpush3.msra.mxu1 %v6521_v4  ;;  %5375 = vmatprep.subr.mxu0 %v9195_v47  ;;  %v9201_v47 = vld [vmem:[#allocation72_spill] sm:$0xff] }
  0x69   :  { %5402 = vmatprep.subr.mxu1 %v6523_v5  ;;  %5376 = vmatpush3.msra.mxu0 %v9196_v7  ;;  %v9202_v7 = vld [vmem:[#allocation76_spill] sm:$0xff] }
  0x6a   :  { %5403 = vmatpush3.msra.mxu1 %v6534_v9  ;;  %5377 = vmatprep.subr.mxu0 %v9197_v26  ;;  %v9203_v26 = vld [vmem:[#allocation80_spill] sm:$0xff] }
  0x6b   :  { %5404 = vmatprep.subr.mxu1 %v6536_v10  ;;  %5378 = vmatpush3.msra.mxu0 %v9198_v36  ;;  %v9204_v36 = vld [vmem:[#allocation82_spill] sm:$0xff] }
  0x6c   :  { %5405 = vmatpush3.msra.mxu1 %v6538_v11  ;;  %5379 = vmatprep.subr.mxu0 %v9199_v28  ;;  %v9205_v28 = vld [vmem:[#allocation86_spill] sm:$0xff] }
  0x6d   :  { %5406 = vmatprep.subr.mxu1 %v6550_v15  ;;  %5380 = vmatpush3.msra.mxu0 %v9200_v42  ;;  %v9206_v42 = vld [vmem:[#allocation89_spill] sm:$0xff] }
  0x6e   :  { %5407 = vmatpush3.msra.mxu1 %v6552_v16  ;;  %5381 = vmatprep.subr.mxu0 %v9201_v47  ;;  %v9207_v47 = vld [vmem:[#allocation95_spill] sm:$0xff] }
  0x6f   :  { %5408 = vmatprep.subr.mxu1 %v6554_v17  ;;  %5382 = vmatpush3.msra.mxu0 %v9202_v7  ;;  %v73_v7 = vld [vmem:[%s8711_s3 + $0x178] sm:$0xff] }
  0x70   :  { %5409 = vmatpush3.msra.mxu1 %v6576_v22  ;;  %5383 = vmatprep.subr.mxu0 %v9203_v26  ;;  %v9208_v26 = vld [vmem:[#allocation98_spill] sm:$0xff] }
  0x71   :  { %5410 = vmatprep.subr.mxu1 %v6582_v24  ;;  %5384 = vmatpush3.msra.mxu0 %v9204_v36  ;;  %v9209_v36 = vld [vmem:[#allocation101_spill] sm:$0xff] }
  0x72   :  { %5411 = vmatpush3.msra.mxu1 %v9167_v38  ;;  %5385 = vmatprep.subr.mxu0 %v9205_v28  ;;  %v72_v28 = vld [vmem:[%s8711_s3 + $0x170] sm:$0xff] }
  0x73   :  { %5412 = vmatprep.subr.mxu1 %v9168_v58  ;;  %5386 = vmatpush3.msra.mxu0 %v9206_v42  ;;  %v7289_v42 = vand.u32 4294901760, %v73_v7  ;;  %v7298_v21 = vand.u32 4294901760, %v72_v28 }
  0x74   :  { %5413 = vmatpush3.msra.mxu1 %v9169_v27  ;;  %5387 = vmatprep.subr.mxu0 %v9207_v47  ;;  %v71_v47 = vld [vmem:[%s8711_s3 + $0x168] sm:$0xff] }
  0x75   :  { %5414 = vmatprep.subr.mxu1 %v9170_v46  ;;  %5388 = vmatpush3.msra.mxu0 %v9208_v26  ;;  %v9211_v26 = vld [vmem:[#allocation108_spill] sm:$0xff]  ;;  %v7310_v54 = vsub.f32 %v73_v7, %v7289_v42 }
  0x76   :  { %5415 = vmatpush3.msra.mxu1 %v9171_v48  ;;  %5389 = vmatprep.subr.mxu0 %v9209_v36  ;;  %v70_v36 = vld [vmem:[%s8711_s3 + $0x160] sm:$0xff]  ;;  %v68_v7 = vld [vmem:[%s8711_s3 + $0x150] sm:$0xff] }
  0x77   :  { %5416 = vmatprep.subr.mxu1 %v9172_v56  ;;  %5390 = vmatpush3.msra.mxu0 %v9210_v20  ;;  %v7307_v20 = vand.u32 4294901760, %v71_v47  ;;  %9213 = vst [vmem:[#allocation126_spill] sm:$0xff] %v7310_v54  ;;  %v7346_v0 = vand.u32 4294901760, %v68_v7 }
  0x78   :  { %5417 = vmatpush3.msra.mxu1 %v9173_v61  ;;  %5391 = vmatprep.subr.mxu0 %v9211_v26  ;;  %v7319_v26 = vand.u32 4294901760, %v70_v36 }
  0x79   :  { %5418 = vmatprep.subr.mxu1 %v9174_v14  ;;  %5392 = vmatpush3.msra.mxu0 %v9212_v18  ;;  %v69_v18 = vld [vmem:[%s8711_s3 + $0x158] sm:$0xff] }
  0x7a   :  { %5419 = vmatpush3.msra.mxu1 %v9175_v50  ;;  %5393 = vmatprep.subr.mxu0 %v7123_v44  ;;  %v7322_v44 = vsub.f32 %v72_v28, %v7298_v21  ;;  %v7331_v19 = vand.u32 4294901760, %v69_v18  ;;  %v7337_v28 = vsub.f32 %v71_v47, %v7307_v20  ;;  %v7352_v47 = vsub.f32 %v70_v36, %v7319_v26 }
  0x7b   :  { %5420 = vmatprep.subr.mxu1 %v9176_v43  ;;  %5394 = vmatpush3.msra.mxu0 %v7131_v1  ;;  %v9215_v1 = vld [vmem:[#allocation96_spill] sm:$0xff] }
  0x7c   :  { %5421 = vmatpush3.msra.mxu1 %v9177_v6  ;;  %5395 = vmatprep.subr.mxu0 %v7149_v62  ;;  %9214 = vst [vmem:[#allocation127_spill] sm:$0xff] %v7322_v44  ;;  %v7334_v62 = vand.u32 4294901760, %v7310_v54  ;;  %9217 = vst [vmem:[#allocation128_spill] sm:$0xff] %v7337_v28  ;;  %v7349_v59 = vand.u32 4294901760, %v7322_v44  ;;  %v7366_v36 = vand.u32 4294901760, %v7337_v28  ;;  %v7372_v25 = vsub.f32 %v69_v18, %v7331_v19  ;;  %v64_v18 = vld [vmem:[%s8711_s3 + $0x130] sm:$0xff] }
  0x7d   :  { %5422 = vmatprep.subr.mxu1 %v9178_v63  ;;  %5396 = vmatpush3.msra.mxu0 %v7155_v49  ;;  %v67_v49 = vld [vmem:[%s8711_s3 + $0x148] sm:$0xff]  ;;  %9219 = vst [vmem:[#allocation130_spill] sm:$0xff] %v7352_v47  ;;  %v61_v6 = vld [vmem:[%s8711_s3 + $0x118] sm:$0xff] }
  0x7e   :  { %837 = vmatprep.mubr.f32.mxu0 %v9215_v1  ;;  %5423 = vmatpush3.msra.mxu1 %v9179_v57  ;;  %9216 = vst [vmem:[#allocation96_spill] sm:$0xff] %v7334_v62  ;;  %9218 = vst [vmem:[#allocation129_spill] sm:$0xff] %v7349_v59  ;;  %v1043_v40 = vsub.f32 %v7310_v54, %v7334_v62  ;;  %v7363_v35 = vand.u32 4294901760, %v67_v49  ;;  %v1050_v23 = vsub.f32 %v7322_v44, %v7349_v59 }
  0x7f   :  { %839 = vmatmul.mubr.f32.vlgmr.msra.gmra.mxu0 %v7054_v52  ;;  %5424 = vmatprep.subr.mxu1 %v9180_v37  ;;  %9220 = vst [vmem:[#allocation131_spill] sm:$0xff] %v7366_v36  ;;  %9221 = vst [vmem:[#allocation132_spill] sm:$0xff] %v7372_v25  ;;  %v1057_v37 = vsub.f32 %v7337_v28, %v7366_v36  ;;  %v7402_v51 = vand.u32 4294901760, %v7372_v25 }
  0x80   :  { %5909 = vmatprep.subr.mxu0 %v8876_v8  ;;  %5425 = vmatpush3.msra.mxu1 %v6891_v34  ;;  %v7389_v34 = vsub.f32 %v68_v7, %v7346_v0  ;;  %v63_v7 = vld [vmem:[%s8711_s3 + $0x128] sm:$0xff] }
  0x81   :  { %5910 = vmatpush3.msra.mxu0 %v7289_v42  ;;  %5426 = vmatprep.subr.mxu1 %v6909_v29  ;;  %v7383_v29 = vand.u32 4294901760, %v7352_v47  ;;  %9227 = vst [vmem:[#allocation137_spill] sm:$0xff] %v7402_v51  ;;  %v7438_v63 = vand.u32 4294901760, %v1057_v37 }
  0x82   :  { %5911 = vmatprep.subr.mxu0 %v8876_v8  ;;  %5427 = vmatpush3.msra.mxu1 %v9184_v39  ;;  %v7380_v39 = vand.u32 4294901760, %v66_v45  ;;  %9223 = vst [vmem:[#allocation134_spill] sm:$0xff] %v7389_v34  ;;  %v7421_v33 = vand.u32 4294901760, %v7389_v34 }
  0x83   :  { %5912 = vmatpush3.msra.mxu0 %v7298_v21  ;;  %5428 = vmatprep.subr.mxu1 %v6942_v12  ;;  %9222 = vst [vmem:[#allocation133_spill] sm:$0xff] %v7383_v29  ;;  %v7397_v12 = vand.u32 4294901760, %v1043_v40  ;;  %v7416_v40 = vand.u32 4294901760, %v1050_v23  ;;  %v1064_v57 = vsub.f32 %v7352_v47, %v7383_v29  ;;  %v25_v23 = vld [vmem:[%s8712_s0 + $0x10] sm:$0xff]  ;;  %9234 = vst [vmem:[#allocation144_spill] sm:$0xff] %v7438_v63 }
  0x84   :  { %5913 = vmatprep.subr.mxu0 %v8876_v8  ;;  %5429 = vmatpush3.msra.mxu1 %v9187_v55  ;;  %v7393_v8 = vand.u32 4294901760, %v65_v31  ;;  %v9225_v55 = vmov 0.0   ;;  %9231 = vst [vmem:[#allocation141_spill] sm:$0xff] %v7421_v33  ;;  %v1078_v43 = vsub.f32 %v7389_v34, %v7421_v33  ;;  %v7470_v32 = vand.u32 4294901760, %v25_v23 }
  0x85   :  { %5914 = vmatpush3.msra.mxu0 %v7307_v20  ;;  %5430 = vmatprep.subr.mxu1 %v6990_v13  ;;  %9226 = vst [vmem:[#allocation136_spill] sm:$0xff] %v7397_v12  ;;  %v7408_v13 = vsub.f32 %v67_v49, %v7363_v35  ;;  %9230 = vst [vmem:[#allocation140_spill] sm:$0xff] %v7416_v40  ;;  %v7427_v49 = vsub.f32 %v66_v45, %v7380_v39  ;;  %v7457_v37 = vand.u32 4294901760, %v1064_v57 }
  0x86   :  { %9224 = vst [vmem:[#allocation135_spill] sm:$0xff] %v7393_v8  ;;  %5915 = vmatprep.subr.mxu0 %v9225_v55  ;;  %5431 = vmatpush3.msra.mxu1 %v7014_v30  ;;  %v7412_v30 = vand.u32 4294901760, %v64_v18  ;;  %v1071_v45 = vsub.f32 %v7372_v25, %v7402_v51  ;;  %v7449_v60 = vsub.f32 %v65_v31, %v7393_v8  ;;  %v60_v31 = vld [vmem:[%s8711_s3 + $0x110] sm:$0xff]  ;;  %v7474_v57 = vand.u32 4294901760, %v61_v6 }
  0x87   :  { %9228 = vst [vmem:[#allocation138_spill] sm:$0xff] %v7408_v13  ;;  %941 = vmatprep.mubr.f32.mxu1 %v9215_v1  ;;  %5916 = vmatpush3.msra.mxu0 %v7319_v26  ;;  %v62_v1 = vld [vmem:[%s8711_s3 + $0x120] sm:$0xff]  ;;  %9232 = vst [vmem:[#allocation142_spill] sm:$0xff] %v7427_v49  ;;  %v7443_v2 = vand.u32 4294901760, %v7408_v13  ;;  %v7462_v41 = vand.u32 4294901760, %v7427_v49 }
  0x88   :  { %9229 = vst [vmem:[#allocation139_spill] sm:$0xff] %v7412_v30  ;;  %943 = vmatmul.mubr.f32.vlgmr.msra.gmra.mxu1 %v7054_v52  ;;  %5917 = vmatprep.subr.mxu0 %v9225_v55  ;;  %v7431_v52 = vand.u32 4294901760, %v63_v7  ;;  %9236 = vst [vmem:[#allocation146_spill] sm:$0xff] %v7449_v60  ;;  %v7468_v50 = vsub.f32 %v64_v18, %v7412_v30  ;;  %v7483_v18 = vand.u32 4294901760, %v7449_v60 }
  0x89   :  { %5944 = vmatprep.subr.mxu1 %v9225_v55  ;;  %5918 = vmatpush3.msra.mxu0 %v7331_v19  ;;  %9235 = vst [vmem:[#allocation145_spill] sm:$0xff] %v7443_v2  ;;  %9238 = vst [vmem:[#allocation148_spill] sm:$0xff] %v7457_v37  ;;  %v1085_v14 = vsub.f32 %v7408_v13, %v7443_v2  ;;  %v1092_v56 = vsub.f32 %v7427_v49, %v7462_v41 }
  0x8a   :  { %9233 = vst [vmem:[#allocation143_spill] sm:$0xff] %v7431_v52  ;;  %5945 = vmatpush3.msra.mxu1 %v7397_v12  ;;  %5919 = vmatprep.subr.mxu0 %v9225_v55  ;;  %v7453_v12 = vand.u32 4294901760, %v62_v1  ;;  %9239 = vst [vmem:[#allocation149_spill] sm:$0xff] %v7462_v41  ;;  %v7489_v61 = vsub.f32 %v63_v7, %v7431_v52  ;;  %v7502_v48 = vand.u32 4294901760, %v7468_v50  ;;  %v58_v7 = vld [vmem:[%s8711_s3 + $0x100] sm:$0xff] }
  0x8b   :  { %5946 = vmatprep.subr.mxu1 %v9225_v55  ;;  %5920 = vmatpush3.msra.mxu0 %v7346_v0  ;;  %9240 = vst [vmem:[#allocation150_spill] sm:$0xff] %v7468_v50  ;;  %9241 = vst [vmem:[#allocation151_spill] sm:$0xff] %v7474_v57  ;;  %v7519_v27 = vand.u32 4294901760, %v1085_v14  ;;  %v1099_v58 = vsub.f32 %v7449_v60, %v7483_v18  ;;  %v7527_v38 = vsub.f32 %v61_v6, %v7474_v57 }
  0x8c   :  { %9237 = vst [vmem:[#allocation147_spill] sm:$0xff] %v7453_v12  ;;  %5947 = vmatpush3.msra.mxu1 %v7416_v40  ;;  %5921 = vmatprep.subr.mxu0 %v9225_v55  ;;  %v7478_v40 = vand.u32 4294901760, %v1071_v45  ;;  %9243 = vst [vmem:[#allocation153_spill] sm:$0xff] %v7483_v18  ;;  %v7497_v45 = vand.u32 4294901760, %v1078_v43  ;;  %v7508_v46 = vsub.f32 %v62_v1, %v7453_v12  ;;  %v7524_v1 = vand.u32 4294901760, %v7489_v61 }
  0x8d   :  { %5948 = vmatprep.subr.mxu1 %v9225_v55  ;;  %5922 = vmatpush3.msra.mxu0 %v7363_v35  ;;  %9244 = vst [vmem:[#allocation154_spill] sm:$0xff] %v7489_v61  ;;  %9247 = vst [vmem:[#allocation157_spill] sm:$0xff] %v7502_v48  ;;  %v7515_v43 = vsub.f32 %v25_v23, %v7470_v32  ;;  %v7531_v23 = vand.u32 4294901760, %v58_v7  ;;  %v7535_v14 = vand.u32 4294901760, %v1092_v56  ;;  %v7550_v56 = vand.u32 4294901760, %v1099_v58 }
  0x8e   :  { %5949 = vmatpush3.msra.mxu1 %v7438_v63  ;;  %5923 = vmatprep.subr.mxu0 %v9225_v55  ;;  %9242 = vst [vmem:[#allocation152_spill] sm:$0xff] %v7478_v40  ;;  %v7493_v63 = vand.u32 4294901760, %v60_v31  ;;  %9246 = vst [vmem:[#allocation156_spill] sm:$0xff] %v7497_v45  ;;  %v7540_v24 = vand.u32 4294901760, %v7508_v46  ;;  %v7555_v17 = vand.u32 4294901760, %v7527_v38 }
  0x8f   :  { %5950 = vmatprep.subr.mxu1 %v9225_v55  ;;  %5924 = vmatpush3.msra.mxu0 %v7380_v39  ;;  %9248 = vst [vmem:[#allocation158_spill] sm:$0xff] %v7508_v46  ;;  %9250 = vst [vmem:[#allocation160_spill] sm:$0xff] %v7519_v27  ;;  %v7572_v16 = vsub.f32 %v58_v7, %v7531_v23 }
  0x90   :  { %9245 = vst [vmem:[#allocation155_spill] sm:$0xff] %v7493_v63  ;;  %5951 = vmatpush3.msra.mxu1 %v7457_v37  ;;  %5925 = vmatprep.subr.mxu0 %v9225_v55  ;;  %v7512_v37 = vand.u32 4294901760, %v59_v53  ;;  %9251 = vst [vmem:[#allocation161_spill] sm:$0xff] %v7524_v1  ;;  %v7543_v6 = vsub.f32 %v60_v31, %v7493_v63  ;;  %v1120_v58 = vsub.f32 %v7508_v46, %v7540_v24 }
  0x91   :  { %5952 = vmatprep.subr.mxu1 %v9225_v55  ;;  %5926 = vmatpush3.msra.mxu0 %v7393_v8  ;;  %9252 = vst [vmem:[#allocation162_spill] sm:$0xff] %v7527_v38  ;;  %9253 = vst [vmem:[#allocation163_spill] sm:$0xff] %v7531_v23  ;;  %v1127_v15 = vsub.f32 %v7527_v38, %v7555_v17 }
  0x92   :  { %9249 = vst [vmem:[#allocation159_spill] sm:$0xff] %v7512_v37  ;;  %5953 = vmatpush3.msra.mxu1 %v7478_v40  ;;  %5927 = vmatprep.subr.mxu0 %v9225_v55  ;;  %9254 = vst [vmem:[#allocation164_spill] sm:$0xff] %v7535_v14  ;;  %v1106_v40 = vsub.f32 %v7468_v50, %v7502_v48  ;;  %v7558_v31 = vsub.f32 %v59_v53, %v7512_v37  ;;  %v9263_v53 = vand.u32 4294901760, %v7515_v43 }
  0x93   :  { %5954 = vmatprep.subr.mxu1 %v9225_v55  ;;  %5928 = vmatpush3.msra.mxu0 %v7412_v30  ;;  %9255 = vst [vmem:[#allocation165_spill] sm:$0xff] %v7540_v24  ;;  %9256 = vst [vmem:[#allocation166_spill] sm:$0xff] %v7543_v6 }
  0x94   :  { %5955 = vmatpush3.msra.mxu1 %v7497_v45  ;;  %5929 = vmatprep.subr.mxu0 %v9225_v55  ;;  %9257 = vst [vmem:[#allocation167_spill] sm:$0xff] %v7550_v56  ;;  %v1113_v45 = vsub.f32 %v7489_v61, %v7524_v1  ;;  %9258 = vst [vmem:[#allocation168_spill] sm:$0xff] %v7555_v17  ;;  %v7564_v22 = vand.u32 4294901760, %v1106_v40  ;;  %v7586_v7 = vand.u32 4294901760, %v7558_v31 }
  0x95   :  { %5956 = vmatprep.subr.mxu1 %v9225_v55  ;;  %5930 = vmatpush3.msra.mxu0 %v7431_v52  ;;  %9259 = vst [vmem:[#allocation169_spill] sm:$0xff] %v7558_v31  ;;  %9262 = vst [vmem:[#allocation172_spill] sm:$0xff] %v7572_v16 }
  0x96   :  { %5957 = vmatpush3.msra.mxu1 %v7519_v27  ;;  %5931 = vmatprep.subr.mxu0 %v9225_v55  ;;  %9260 = vst [vmem:[#allocation170_spill] sm:$0xff] %v7564_v22  ;;  %v7569_v27 = vand.u32 4294901760, %v7543_v6  ;;  %v7581_v40 = vand.u32 4294901760, %v1113_v45  ;;  %9265 = vst [vmem:[#allocation174_spill] sm:$0xff] %v7586_v7 }
  0x97   :  { %5958 = vmatprep.subr.mxu1 %v9225_v55  ;;  %5932 = vmatpush3.msra.mxu0 %v7453_v12 }
  0x98   :  { %5959 = vmatpush3.msra.mxu1 %v7535_v14  ;;  %5933 = vmatprep.subr.mxu0 %v9225_v55  ;;  %9261 = vst [vmem:[#allocation171_spill] sm:$0xff] %v7569_v27  ;;  %v1032_v14 = vsub.f32 %v7515_v43, %v9263_v53  ;;  %9264 = vst [vmem:[#allocation173_spill] sm:$0xff] %v7581_v40  ;;  %v7592_v53 = vand.u32 4294901760, %v1120_v58  ;;  %v1134_v45 = vsub.f32 %v7543_v6, %v7569_v27 }
  0x99   :  { %5960 = vmatprep.subr.mxu1 %v9225_v55  ;;  %5934 = vmatpush3.msra.mxu0 %v7474_v57  ;;  %v1141_v58 = vsub.f32 %v7558_v31, %v7586_v7 }
  0x9a   :  { %5961 = vmatpush3.msra.mxu1 %v7550_v56  ;;  %5935 = vmatprep.subr.mxu0 %v9225_v55  ;;  %9266 = vst [vmem:[#allocation175_spill] sm:$0xff] %v7592_v53  ;;  %v7597_v56 = vand.u32 4294901760, %v7572_v16  ;;  %v1033_v11 = vand.u32 4294901760, %v1032_v14  ;;  %v7612_v14 = vand.u32 4294901760, %v1134_v45 }
  0x9b   :  { %5962 = vmatprep.subr.mxu1 %v9225_v55  ;;  %5936 = vmatpush3.msra.mxu0 %v7493_v63 }
  0x9c   :  { %5963 = vmatpush3.msra.mxu1 %v7564_v22  ;;  %5937 = vmatprep.subr.mxu0 %v9225_v55  ;;  %9267 = vst [vmem:[#allocation176_spill] sm:$0xff] %v7597_v56  ;;  %v7603_v22 = vand.u32 4294901760, %v1127_v15  ;;  %9269 = vst [vmem:[#allocation178_spill] sm:$0xff] %v7612_v14  ;;  %v7619_v15 = vand.u32 4294901760, %v1141_v58 }
  0x9d   :  { %5964 = vmatprep.subr.mxu1 %v9225_v55  ;;  %5938 = vmatpush3.msra.mxu0 %v7512_v37 }
  0x9e   :  { %5965 = vmatpush3.msra.mxu1 %v7581_v40  ;;  %5939 = vmatprep.subr.mxu0 %v9225_v55  ;;  %9268 = vst [vmem:[#allocation177_spill] sm:$0xff] %v7603_v22  ;;  %v1148_v40 = vsub.f32 %v7572_v16, %v7597_v56  ;;  %9270 = vst [vmem:[#allocation179_spill] sm:$0xff] %v7619_v15 }
  0x9f   :  { %5966 = vmatprep.subr.mxu1 %v9225_v55  ;;  %5940 = vmatpush3.msra.mxu0 %v7531_v23 }
  0xa0   :  { %5941 = vmatprep.mubr.msk.f32.mxu0 %vm6469_vm0, %v9225_v55  ;;  %5967 = vmatpush3.msra.mxu1 %v7592_v53  ;;  %v7625_v45 = vand.u32 4294901760, %v1148_v40 }
  0xa1   :  { %5942 = vmatmul.mubr.f32.vlgmr.msra.gmra.mxu0 %v1033_v11  ;;  %5968 = vmatprep.subr.mxu1 %v9225_v55  ;;  %v9272_v11 = vand.u32 4294901760, %v7515_v43 }
  0xa2   :  { %5979 = vmatprep.subr.mxu0 %v9225_v55  ;;  %5969 = vmatpush3.msra.mxu1 %v7603_v22  ;;  %9271 = vst [vmem:[#allocation180_spill] sm:$0xff] %v7625_v45 }
  0xa3   :  { %5980 = vmatpush3.msra.mxu0 %v7310_v54  ;;  %5970 = vmatprep.subr.mxu1 %v9225_v55 }
  0xa4   :  { %5981 = vmatprep.subr.mxu0 %v9225_v55  ;;  %5971 = vmatpush3.msra.mxu1 %v7612_v14 }
  0xa5   :  { %5982 = vmatpush3.msra.mxu0 %v7322_v44  ;;  %5972 = vmatprep.subr.mxu1 %v9225_v55 }
  0xa6   :  { %5983 = vmatprep.subr.mxu0 %v9225_v55  ;;  %5973 = vmatpush3.msra.mxu1 %v7619_v15 }
  0xa7   :  { %5984 = vmatpush3.msra.mxu0 %v7337_v28  ;;  %5974 = vmatprep.subr.mxu1 %v9225_v55 }
  0xa8   :  { %5985 = vmatprep.subr.mxu0 %v9225_v55  ;;  %5975 = vmatpush3.msra.mxu1 %v7625_v45 }
  0xa9   :  { %5976 = vmatprep.mubr.msk.f32.mxu1 %vm6469_vm0, %v9225_v55  ;;  %5986 = vmatpush3.msra.mxu0 %v7352_v47 }
  0xaa   :  { %5977 = vmatmul.mubr.f32.vlgmr.msra.gmra.mxu1 %v7470_v32  ;;  %5987 = vmatprep.subr.mxu0 %v9225_v55 }
  0xab   :  { %6014 = vmatprep.subr.mxu1 %v9225_v55  ;;  %5988 = vmatpush3.msra.mxu0 %v7372_v25 }
  0xac   :  { %6015 = vmatpush3.msra.mxu1 %v7289_v42  ;;  %5989 = vmatprep.subr.mxu0 %v9225_v55 }
  0xad   :  { %6016 = vmatprep.subr.mxu1 %v9225_v55  ;;  %5990 = vmatpush3.msra.mxu0 %v7389_v34 }
  0xae   :  { %6017 = vmatpush3.msra.mxu1 %v7298_v21  ;;  %5991 = vmatprep.subr.mxu0 %v9225_v55 }
  0xaf   :  { %6018 = vmatprep.subr.mxu1 %v9225_v55  ;;  %5992 = vmatpush3.msra.mxu0 %v7408_v13 }
  0xb0   :  { %6019 = vmatpush3.msra.mxu1 %v7307_v20  ;;  %5993 = vmatprep.subr.mxu0 %v9225_v55 }
  0xb1   :  { %6020 = vmatprep.subr.mxu1 %v9225_v55  ;;  %5994 = vmatpush3.msra.mxu0 %v7427_v49 }
  0xb2   :  { %6021 = vmatpush3.msra.mxu1 %v7319_v26  ;;  %5995 = vmatprep.subr.mxu0 %v9225_v55 }
  0xb3   :  { %6022 = vmatprep.subr.mxu1 %v9225_v55  ;;  %5996 = vmatpush3.msra.mxu0 %v7449_v60 }
  0xb4   :  { %6023 = vmatpush3.msra.mxu1 %v7331_v19  ;;  %5997 = vmatprep.subr.mxu0 %v9225_v55 }
  0xb5   :  { %6024 = vmatprep.subr.mxu1 %v9225_v55  ;;  %5998 = vmatpush3.msra.mxu0 %v7468_v50 }
  0xb6   :  { %6025 = vmatpush3.msra.mxu1 %v7346_v0  ;;  %5999 = vmatprep.subr.mxu0 %v9225_v55 }
  0xb7   :  { %6026 = vmatprep.subr.mxu1 %v9225_v55  ;;  %6000 = vmatpush3.msra.mxu0 %v7489_v61 }
  0xb8   :  { %6027 = vmatpush3.msra.mxu1 %v7363_v35  ;;  %6001 = vmatprep.subr.mxu0 %v9225_v55 }
  0xb9   :  { %6028 = vmatprep.subr.mxu1 %v9225_v55  ;;  %6002 = vmatpush3.msra.mxu0 %v7508_v46 }
  0xba   :  { %6029 = vmatpush3.msra.mxu1 %v7380_v39  ;;  %6003 = vmatprep.subr.mxu0 %v9225_v55 }
  0xbb   :  { %6030 = vmatprep.subr.mxu1 %v9225_v55  ;;  %6004 = vmatpush3.msra.mxu0 %v7527_v38 }
  0xbc   :  { %6031 = vmatpush3.msra.mxu1 %v7393_v8  ;;  %6005 = vmatprep.subr.mxu0 %v9225_v55 }
  0xbd   :  { %6032 = vmatprep.subr.mxu1 %v9225_v55  ;;  %6006 = vmatpush3.msra.mxu0 %v7543_v6  ;;  %v74_v6 = vld [vmem:[%s8713_s4] sm:$0xff] }
  0xbe   :  { %6033 = vmatpush3.msra.mxu1 %v7412_v30  ;;  %6007 = vmatprep.subr.mxu0 %v9225_v55  ;;  %v7880_v13 = vand.u32 4294901760, %v74_v6 }
  0xbf   :  { %6034 = vmatprep.subr.mxu1 %v9225_v55  ;;  %6008 = vmatpush3.msra.mxu0 %v7558_v31 }
  0xc0   :  { %6035 = vmatpush3.msra.mxu1 %v7431_v52  ;;  %6009 = vmatprep.subr.mxu0 %v9225_v55  ;;  %9297 = vst [vmem:[#allocation205_spill] sm:$0xff] %v7880_v13  ;;  %v7893_v25 = vsub.f32 %v74_v6, %v7880_v13 }
  0xc1   :  { %6036 = vmatprep.subr.mxu1 %v9225_v55  ;;  %6010 = vmatpush3.msra.mxu0 %v7572_v16 }
  0xc2   :  { %6011 = vmatprep.mubr.msk.f32.mxu0 %vm6469_vm0, %v9225_v55  ;;  %6037 = vmatpush3.msra.mxu1 %v7453_v12  ;;  %9300 = vst [vmem:[#allocation208_spill] sm:$0xff] %v7893_v25 }
  0xc3   :  { %6012 = vmatmul.mubr.f32.vlgmr.msra.gmra.mxu0 %v7515_v43  ;;  %6038 = vmatprep.subr.mxu1 %v9225_v55 }
  0xc4   :  { %6049 = vmatprep.subr.mxu0 %v9225_v55  ;;  %6039 = vmatpush3.msra.mxu1 %v7474_v57 }
  0xc5   :  { %6050 = vmatpush3.msra.mxu0 %v7334_v62  ;;  %6040 = vmatprep.subr.mxu1 %v9225_v55 }
  0xc6   :  { %6051 = vmatprep.subr.mxu0 %v9225_v55  ;;  %6041 = vmatpush3.msra.mxu1 %v7493_v63 }
  0xc7   :  { %6052 = vmatpush3.msra.mxu0 %v7349_v59  ;;  %6042 = vmatprep.subr.mxu1 %v9225_v55 }
  0xc8   :  { %6053 = vmatprep.subr.mxu0 %v9225_v55  ;;  %6043 = vmatpush3.msra.mxu1 %v7512_v37 }
  0xc9   :  { %6054 = vmatpush3.msra.mxu0 %v7366_v36  ;;  %6044 = vmatprep.subr.mxu1 %v9225_v55 }
  0xca   :  { %6055 = vmatprep.subr.mxu0 %v9225_v55  ;;  %6045 = vmatpush3.msra.mxu1 %v7531_v23 }
  0xcb   :  { %6046 = vmatprep.mubr.msk.f32.mxu1 %vm6469_vm0, %v9225_v55  ;;  %6056 = vmatpush3.msra.mxu0 %v7383_v29 }
  0xcc   :  { %6047 = vmatmul.mubr.f32.vlgmr.msra.gmra.mxu1 %v9272_v11  ;;  %6057 = vmatprep.subr.mxu0 %v9225_v55 }
  0xcd   :  { %6084 = vmatprep.subr.mxu1 %v9225_v55  ;;  %6058 = vmatpush3.msra.mxu0 %v7402_v51 }
  0xce   :  { %6085 = vmatpush3.msra.mxu1 %v7289_v42  ;;  %6059 = vmatprep.subr.mxu0 %v9225_v55 }
  0xcf   :  { %6086 = vmatprep.subr.mxu1 %v9225_v55  ;;  %6060 = vmatpush3.msra.mxu0 %v7421_v33 }
  0xd0   :  { %6087 = vmatpush3.msra.mxu1 %v7298_v21  ;;  %6061 = vmatprep.subr.mxu0 %v9225_v55 }
  0xd1   :  { %6088 = vmatprep.subr.mxu1 %v9225_v55  ;;  %6062 = vmatpush3.msra.mxu0 %v7443_v2 }
  0xd2   :  { %6089 = vmatpush3.msra.mxu1 %v7307_v20  ;;  %6063 = vmatprep.subr.mxu0 %v9225_v55 }
  0xd3   :  { %6090 = vmatprep.subr.mxu1 %v9225_v55  ;;  %6064 = vmatpush3.msra.mxu0 %v7462_v41 }
  0xd4   :  { %6091 = vmatpush3.msra.mxu1 %v7319_v26  ;;  %6065 = vmatprep.subr.mxu0 %v9225_v55 }
  0xd5   :  { %6092 = vmatprep.subr.mxu1 %v9225_v55  ;;  %6066 = vmatpush3.msra.mxu0 %v7483_v18 }
  0xd6   :  { %6093 = vmatpush3.msra.mxu1 %v7331_v19  ;;  %6067 = vmatprep.subr.mxu0 %v9225_v55 }
  0xd7   :  { %6094 = vmatprep.subr.mxu1 %v9225_v55  ;;  %6068 = vmatpush3.msra.mxu0 %v7502_v48  ;;  %v84_v48 = vld [vmem:[%s8713_s4 + $0x50] sm:$0xff] }
  0xd8   :  { %6095 = vmatpush3.msra.mxu1 %v7346_v0  ;;  %6069 = vmatprep.subr.mxu0 %v9225_v55  ;;  %v7779_v41 = vand.u32 4294901760, %v84_v48 }
  0xd9   :  { %6096 = vmatprep.subr.mxu1 %v9225_v55  ;;  %6070 = vmatpush3.msra.mxu0 %v7524_v1 }
  0xda   :  { %6097 = vmatpush3.msra.mxu1 %v7363_v35  ;;  %6071 = vmatprep.subr.mxu0 %v9225_v55  ;;  %9273 = vst [vmem:[#allocation181_spill] sm:$0xff] %v7779_v41 }
  0xdb   :  { %6098 = vmatprep.subr.mxu1 %v9225_v55  ;;  %6072 = vmatpush3.msra.mxu0 %v7540_v24 }
  0xdc   :  { %6099 = vmatpush3.msra.mxu1 %v7380_v39  ;;  %6073 = vmatprep.subr.mxu0 %v9225_v55 }
  0xdd   :  { %6100 = vmatprep.subr.mxu1 %v9225_v55  ;;  %6074 = vmatpush3.msra.mxu0 %v7555_v17 }
  0xde   :  { %6101 = vmatpush3.msra.mxu1 %v7393_v8  ;;  %6075 = vmatprep.subr.mxu0 %v9225_v55 }
  0xdf   :  { %6102 = vmatprep.subr.mxu1 %v9225_v55  ;;  %6076 = vmatpush3.msra.mxu0 %v7569_v27 }
  0xe0   :  { %6103 = vmatpush3.msra.mxu1 %v7412_v30  ;;  %6077 = vmatprep.subr.mxu0 %v9225_v55 }
  0xe1   :  { %6104 = vmatprep.subr.mxu1 %v9225_v55  ;;  %6078 = vmatpush3.msra.mxu0 %v7586_v7 }
  0xe2   :  { %6105 = vmatpush3.msra.mxu1 %v7431_v52  ;;  %6079 = vmatprep.subr.mxu0 %v9225_v55 }
  0xe3   :  { %6106 = vmatprep.subr.mxu1 %v9225_v55  ;;  %6080 = vmatpush3.msra.mxu0 %v7597_v56 }
  0xe4   :  { %6081 = vmatprep.mubr.msk.f32.mxu0 %vm6469_vm0, %v9225_v55  ;;  %6107 = vmatpush3.msra.mxu1 %v7453_v12 }
  0xe5   :  { %6082 = vmatmul.mubr.f32.vlgmr.msra.gmra.mxu0 %v7470_v32  ;;  %6108 = vmatprep.subr.mxu1 %v9225_v55 }
  0xe6   :  { %6109 = vmatpush3.msra.mxu1 %v7474_v57  ;;  %6116 = vmatprep.mubr.msk.f32.mxu1 %vm6469_vm0, %v9225_v55 }
  0xe7   :  { %6110 = vmatprep.subr.mxu1 %v9225_v55  ;;  %1666 = vmatprep.mubr.f32.mxu0 %v9225_v55 }
  0xe8   :  { %6111 = vmatpush3.msra.mxu1 %v7493_v63  ;;  %1619 = vmatprep.subr.mxu0 %v7779_v41 }
  0xe9   :  { %6112 = vmatprep.subr.mxu1 %v9225_v55 }
  0xea   :  { %6113 = vmatpush3.msra.mxu1 %v7512_v37 }
  0xeb   :  { %6114 = vmatprep.subr.mxu1 %v9225_v55 }
  0xec   :  { %6115 = vmatpush3.msra.mxu1 %v7531_v23 }
  0xed   :  { %6117 = vmatmul.mubr.f32.vlgmr.msra.gmra.mxu1 %v7470_v32  ;;  %v83_v32 = vld [vmem:[%s8713_s4 + $0x48] sm:$0xff] }
  0xee   :  { %1782 = vmatprep.mubr.f32.mxu1 %v9225_v55 }
  0xfd   :  { %v5257_v43 = vpop.f32.mrf.mxu0 }
  0xff   :  { %v5258_v40 = vpop.f32.mrf.mxu0 }
 0x100   :  { %v5259_v58 = vadd.f32 %v5258_v40, %v5257_v43  ;;  %v7784_v43 = vand.u32 4294901760, %v83_v32  ;;  %v78_v40 = vld [vmem:[%s8713_s4 + $0x20] sm:$0xff] }
 0x102   :  { %9274 = vst [vmem:[#allocation182_spill] sm:$0xff] %v7784_v43  ;;  %1621 = vmatpush1.msra.mxu0 %v7784_v43 }
 0x104   :  { %v5292_v11 = vpop.f32.mrf.mxu1 }
 0x106   :  { %v5293_v56 = vpop.f32.mrf.mxu1 }
 0x107   :  { %v5294_v7 = vadd.f32 %v5293_v56, %v5292_v11  ;;  %v81_v56 = vld [vmem:[%s8713_s4 + $0x38] sm:$0xff]  ;;  %v7813_v11 = vand.u32 4294901760, %v78_v40 }
 0x109   :  { %v427_v24 = vadd.f32 %v5294_v7, %v5259_v58  ;;  %9281 = vst [vmem:[#allocation189_spill] sm:$0xff] %v7813_v11  ;;  %v7837_v59 = vsub.f32 %v78_v40, %v7813_v11 }
 0x10b   :  { %9286 = vst [vmem:[#allocation194_spill] sm:$0xff] %v7837_v59  ;;  %v7859_v46 = vand.u32 4294901760, %v7837_v59 }
 0x10d   :  { %9291 = vst [vmem:[#allocation199_spill] sm:$0xff] %v7859_v46  ;;  %v1729_v49 = vsub.f32 %v7837_v59, %v7859_v46 }
 0x11d   :  { %v5327_v27 = vpop.f32.mrf.mxu0 }
 0x11f   :  { %v5328_v17 = vpop.f32.mrf.mxu0 }
 0x120   :  { %v5329_v1 = vadd.f32 %v5328_v17, %v5327_v27  ;;  %v7790_v17 = vsub.f32 %v84_v48, %v7779_v41  ;;  %v7792_v27 = vand.u32 4294901760, %v81_v56 }
 0x122   :  { %v7777_v18 = vadd.f32 %v5329_v1, %v427_v24  ;;  %9275 = vst [vmem:[#allocation183_spill] sm:$0xff] %v7790_v17  ;;  %9276 = vst [vmem:[#allocation184_spill] sm:$0xff] %v7792_v27  ;;  %v80_v24 = vld [vmem:[%s8713_s4 + $0x30] sm:$0xff]  ;;  %v7799_v1 = vsub.f32 %v83_v32, %v7784_v43  ;;  %v7808_v48 = vand.u32 4294901760, %v7790_v17  ;;  %v7811_v58 = vsub.f32 %v81_v56, %v7792_v27  ;;  %v77_v32 = vld [vmem:[%s8713_s4 + $0x18] sm:$0xff] }
 0x123   :  { %v7801_v7 = vand.u32 4294901760, %v80_v24  ;;  %1623 = vmatprep.subr.mxu0 %v7792_v27  ;;  %v7825_v51 = vand.u32 4294901760, %v77_v32  ;;  %v75_v56 = vld [vmem:[%s8713_s4 + $0x8] sm:$0xff] }
 0x124   :  { %9277 = vst [vmem:[#allocation185_spill] sm:$0xff] %v7799_v1  ;;  %9279 = vst [vmem:[#allocation187_spill] sm:$0xff] %v7808_v48  ;;  %v7820_v2 = vand.u32 4294901760, %v7799_v1  ;;  %v1705_v29 = vsub.f32 %v7790_v17, %v7808_v48  ;;  %v7834_v36 = vand.u32 4294901760, %v7811_v58  ;;  %v7839_v62 = vand.u32 4294901760, %v75_v56 }
 0x125   :  { %9278 = vst [vmem:[#allocation186_spill] sm:$0xff] %v7801_v7  ;;  %9280 = vst [vmem:[#allocation188_spill] sm:$0xff] %v7811_v58  ;;  %v7823_v33 = vsub.f32 %v80_v24, %v7801_v7  ;;  %1625 = vmatpush1.msra.mxu0 %v7801_v7  ;;  %v7848_v31 = vsub.f32 %v77_v32, %v7825_v51 }
 0x126   :  { %9282 = vst [vmem:[#allocation190_spill] sm:$0xff] %v7820_v2  ;;  %9284 = vst [vmem:[#allocation192_spill] sm:$0xff] %v7825_v51  ;;  %1627 = vmatprep.subr.mxu0 %v7813_v11  ;;  %v1711_v24 = vsub.f32 %v7799_v1, %v7820_v2  ;;  %v7854_v40 = vand.u32 4294901760, %v1705_v29  ;;  %v1717_v38 = vsub.f32 %v7811_v58, %v7834_v36 }
 0x127   :  { %9283 = vst [vmem:[#allocation191_spill] sm:$0xff] %v7823_v33  ;;  %9285 = vst [vmem:[#allocation193_spill] sm:$0xff] %v7834_v36  ;;  %v7845_v16 = vand.u32 4294901760, %v7823_v33  ;;  %1629 = vmatpush1.msra.mxu0 %v7825_v51  ;;  %v7862_v61 = vsub.f32 %v75_v56, %v7839_v62  ;;  %v7870_v60 = vand.u32 4294901760, %v7848_v31 }
 0x128   :  { %9287 = vst [vmem:[#allocation195_spill] sm:$0xff] %v7839_v62  ;;  %9289 = vst [vmem:[#allocation197_spill] sm:$0xff] %v7848_v31  ;;  %1631 = vmatprep.subr.mxu0 %v7839_v62  ;;  %v7865_v32 = vand.u32 4294901760, %v1711_v24  ;;  %1707 = vmatprep.subr.mxu1 %v7854_v40  ;;  %v7873_v29 = vand.u32 4294901760, %v1717_v38 }
 0x129   :  { %9288 = vst [vmem:[#allocation196_spill] sm:$0xff] %v7845_v16  ;;  %9290 = vst [vmem:[#allocation198_spill] sm:$0xff] %v7854_v40  ;;  %v1723_v50 = vsub.f32 %v7823_v33, %v7845_v16  ;;  %v7878_v56 = vand.u32 4294901760, %v7862_v61  ;;  %v1735_v34 = vsub.f32 %v7848_v31, %v7870_v60  ;;  %v7888_v40 = vand.u32 4294901760, %v1729_v49  ;;  %1633 = vmatpush1.msra.mxu0 %v7880_v13 }
 0x12a   :  { %9292 = vst [vmem:[#allocation200_spill] sm:$0xff] %v7862_v61  ;;  %9293 = vst [vmem:[#allocation201_spill] sm:$0xff] %v7865_v32  ;;  %1713 = vmatpush1.msra.mxu1 %v7865_v32  ;;  %1816 = vmatprep.subr.mxu0 %v7790_v17  ;;  %v7904_v49 = vand.u32 4294901760, %v7893_v25 }
 0x12b   :  { %9294 = vst [vmem:[#allocation202_spill] sm:$0xff] %v7870_v60  ;;  %9295 = vst [vmem:[#allocation203_spill] sm:$0xff] %v7873_v29  ;;  %v7883_v24 = vand.u32 4294901760, %v1723_v50  ;;  %1719 = vmatprep.subr.mxu1 %v7873_v29  ;;  %v1741_v38 = vsub.f32 %v7862_v61, %v7878_v56  ;;  %v7897_v32 = vand.u32 4294901760, %v1735_v34  ;;  %v5362_v34 = vpop.f32.mrf.mxu1 }
 0x12c   :  { %9296 = vst [vmem:[#allocation204_spill] sm:$0xff] %v7878_v56  ;;  %9299 = vst [vmem:[#allocation207_spill] sm:$0xff] %v7888_v40  ;;  %v1747_v6 = vsub.f32 %v7893_v25, %v7904_v49 }
 0x12d   :  { %9298 = vst [vmem:[#allocation206_spill] sm:$0xff] %v7883_v24  ;;  %1725 = vmatpush1.msra.mxu1 %v7883_v24  ;;  %9301 = vst [vmem:[#allocation209_spill] sm:$0xff] %v7897_v32  ;;  %v7901_v50 = vand.u32 4294901760, %v1741_v38  ;;  %v5363_v17 = vpop.f32.mrf.mxu1 }
 0x12e   :  { %1731 = vmatprep.subr.mxu1 %v7888_v40  ;;  %9303 = vst [vmem:[#allocation211_spill] sm:$0xff] %v7904_v49  ;;  %v7910_v29 = vand.u32 4294901760, %v1747_v6  ;;  %v5364_v38 = vadd.f32 %v5363_v17, %v5362_v34 }
 0x12f   :  { %9302 = vst [vmem:[#allocation210_spill] sm:$0xff] %v7901_v50  ;;  %1737 = vmatpush1.msra.mxu1 %v7897_v32 }
 0x130   :  { %1743 = vmatprep.subr.mxu1 %v7901_v50  ;;  %9304 = vst [vmem:[#allocation212_spill] sm:$0xff] %v7910_v29  ;;  %v673_v47 = vadd.f32 %v5364_v38, %v7777_v18 }
 0x131   :  { %1749 = vmatpush1.msra.mxu1 %v7910_v29 }
 0x132   :  { %1904 = vmatprep.subr.mxu1 %v7779_v41 }
 0x13f   :  { %v5397_v40 = vpop.f32.mrf.mxu0 }
 0x141   :  { %v5398_v24 = vpop.f32.mrf.mxu0 }
 0x142   :  { %v5399_v28 = vadd.f32 %v5398_v24, %v5397_v40 }
 0x144   :  { %v841_v32 = vadd.f32 %v5399_v28, %v673_v47 }
 0x148   :  { %v5432_v44 = vpop.f32.mrf.mxu1 }
 0x14a   :  { %v5433_v50 = vpop.f32.mrf.mxu1 }
 0x14b   :  { %v5434_v54 = vadd.f32 %v5433_v50, %v5432_v44 }
 0x14d   :  { %v945_v23 = vadd.f32 %v5434_v54, %v841_v32 }
 0x161   :  { %v1035_v37 = vpop.f32.mrf.mxu0 }
 0x162   :  { %v1036_v6 = vadd.f32 %v1035_v37, %v945_v23  ;;  %v79_v23 = vld [vmem:[%s8713_s4 + $0x28] sm:$0xff] }
 0x163   :  { %v5943_v63 = vpop.f32.mrf.mxu0  ;;  %v7955_v24 = vand.u32 4294901760, %v79_v23 }
 0x165   :  { %9308 = vst [vmem:[#allocation216_spill] sm:$0xff] %v7955_v24 }
 0x16a   :  { %v1186_v57 = vpop.f32.mrf.mxu1 }
 0x16b   :  { %v1187_v34 = vadd.f32 %v1186_v57, %v1036_v6 }
 0x16c   :  { %v5978_v29 = vpop.f32.mrf.mxu1 }
 0x183   :  { %v1290_v45 = vpop.f32.mrf.mxu0 }
 0x184   :  { %v1291_v30 = vadd.f32 %v1290_v45, %v1187_v34  ;;  %v76_v45 = vld [vmem:[%s8713_s4 + $0x10] sm:$0xff]  ;;  %v7973_v34 = vsub.f32 %v79_v23, %v7955_v24 }
 0x185   :  { %v6013_v12 = vpop.f32.mrf.mxu0  ;;  %v7964_v6 = vand.u32 4294901760, %v76_v45 }
 0x186   :  { %v85_v12 = vld [vmem:[%s8713_s4 + $0x58] sm:$0xff]  ;;  %9312 = vst [vmem:[#allocation220_spill] sm:$0xff] %v7973_v34 }
 0x187   :  { %v7932_v57 = vand.u32 4294901760, %v85_v12  ;;  %9310 = vst [vmem:[#allocation218_spill] sm:$0xff] %v7964_v6 }
 0x189   :  { %9305 = vst [vmem:[#allocation213_spill] sm:$0xff] %v7932_v57  ;;  %v7953_v29 = vsub.f32 %v85_v12, %v7932_v57 }
 0x18b   :  { %9307 = vst [vmem:[#allocation215_spill] sm:$0xff] %v7953_v29 }
 0x18c   :  { %v1379_v15 = vpop.f32.mrf.mxu1 }
 0x18d   :  { %v1380_v18 = vadd.f32 %v1379_v15, %v1291_v30  ;;  %v82_v30 = vld [vmem:[%s8713_s4 + $0x40] sm:$0xff] }
 0x18e   :  { %v6048_v52 = vpop.f32.mrf.mxu1  ;;  %v7943_v15 = vand.u32 4294901760, %v82_v30 }
 0x190   :  { %9306 = vst [vmem:[#allocation214_spill] sm:$0xff] %v7943_v15  ;;  %v7962_v38 = vsub.f32 %v82_v30, %v7943_v15 }
 0x192   :  { %9309 = vst [vmem:[#allocation217_spill] sm:$0xff] %v7962_v38 }
 0x1a5   :  { %v1498_v17 = vpop.f32.mrf.mxu0 }
 0x1a6   :  { %v1499_v40 = vadd.f32 %v1498_v17, %v1380_v18  ;;  %v7970_v17 = vand.u32 4294901760, %v7953_v29  ;;  %v7980_v18 = vand.u32 4294901760, %v7962_v38 }
 0x1a7   :  { %v6083_v14 = vpop.f32.mrf.mxu0 }
 0x1a8   :  { %9311 = vst [vmem:[#allocation219_spill] sm:$0xff] %v7970_v17  ;;  %9313 = vst [vmem:[#allocation221_spill] sm:$0xff] %v7980_v18 }
 0x1ad   :  { %v1585_v28 = vpop.f32.mrf.mxu1 }
 0x1ae   :  { %v1586_v47 = vadd.f32 %v1585_v28, %v1499_v40  ;;  %v7983_v40 = vsub.f32 %v76_v45, %v7964_v6  ;;  %v2244_v28 = vsub.f32 %v7953_v29, %v7970_v17 }
 0x1af   :  { %v6118_v44 = vpop.f32.mrf.mxu1 }
 0x1b0   :  { %v1589_v54 = vmul.f32 0.083333336, %v1586_v47  ;;  %9314 = vst [vmem:[#allocation222_spill] sm:$0xff] %v7983_v40  ;;  %v7992_v47 = vand.u32 4294901760, %v7973_v34  ;;  %v2251_v44 = vsub.f32 %v7962_v38, %v7980_v18 }
 0x1b2   :  { %v1592_v37 = vsel %vm1590_vm1, %v1589_v54, 0  ;;  %5211 = vst.msk [vmem:[%s8714_s6] sm:$0xff] %vm1590_vm1, %v1589_v54  ;;  %9315 = vst [vmem:[#allocation223_spill] sm:$0xff] %v7992_v47  ;;  %v8001_v54 = vand.u32 4294901760, %v7983_v40  ;;  %v2258_v12 = vsub.f32 %v7973_v34, %v7992_v47  ;;  %v8015_v30 = vand.u32 4294901760, %v2251_v44  ;;  %v9325_v44 = vld [vmem:[#allocation33_spill] sm:$0xff] }
 0x1b3   :  { %v7923_v63 = vand.u32 4294901760, %v1592_v37 }
 0x1b4   :  { %9316 = vst [vmem:[#allocation224_spill] sm:$0xff] %v8001_v54  ;;  %9318 = vst [vmem:[#allocation226_spill] sm:$0xff] %v8015_v30  ;;  %v2265_v23 = vsub.f32 %v7983_v40, %v8001_v54  ;;  %v8023_v45 = vand.u32 4294901760, %v2258_v12  ;;  %v9326_v12 = vld [vmem:[#allocation36_spill] sm:$0xff] }
 0x1b5   :  { %v7929_v52 = vsub.f32 %v1592_v37, %v7923_v63  ;;  %1784 = vmatmul.mubr.f32.vlgmr.msra.gmra.mxu1 %v7923_v63  ;;  %v8007_v37 = vand.u32 4294901760, %v2244_v28  ;;  %v9324_v28 = vld [vmem:[#allocation30_spill] sm:$0xff] }
 0x1b6   :  { %1906 = vmatpush1.msra.mxu1 %v7784_v43  ;;  %1951 = vmatprep.mubr.f32.mxu1 %v9225_v55  ;;  %9319 = vst [vmem:[#allocation227_spill] sm:$0xff] %v8023_v45 }
 0x1b7   :  { %1908 = vmatprep.subr.mxu1 %v7792_v27  ;;  %v7941_v14 = vand.u32 4294901760, %v7929_v52  ;;  %9317 = vst [vmem:[#allocation225_spill] sm:$0xff] %v8007_v37 }
 0x1b8   :  { %1910 = vmatpush1.msra.mxu1 %v7801_v7 }
 0x1b9   :  { %1912 = vmatprep.subr.mxu1 %v7813_v11  ;;  %v1670_v32 = vsub.f32 %v7929_v52, %v7941_v14 }
 0x1ba   :  { %1914 = vmatpush1.msra.mxu1 %v7825_v51 }
 0x1bb   :  { %1916 = vmatprep.subr.mxu1 %v7839_v62  ;;  %v7959_v50 = vand.u32 4294901760, %v1670_v32  ;;  %v8029_v32 = vand.u32 4294901760, %v2265_v23  ;;  %v9327_v23 = vld [vmem:[#allocation40_spill] sm:$0xff] }
 0x1bc   :  { %1918 = vmatpush1.msra.mxu1 %v7880_v13 }
 0x1bd   :  { %1955 = vmatmul.mubr.f32.vlgmr.msra.gmra.mxu1 %v7941_v14  ;;  %2082 = vmatprep.subr.mxu1 %v7779_v41  ;;  %9320 = vst [vmem:[#allocation228_spill] sm:$0xff] %v8029_v32 }
 0x1be   :  { %1672 = vmatmul.mubr.f32.vlgmr.msra.gmra.mxu0 %v7959_v50  ;;  %2084 = vmatpush1.msra.mxu1 %v7784_v43 }
 0x1bf   :  { %1819 = vmatpush1.msra.mxu0 %v7799_v1  ;;  %2086 = vmatprep.subr.mxu1 %v7792_v27 }
 0x1c0   :  { %1822 = vmatprep.subr.mxu0 %v7811_v58  ;;  %2088 = vmatpush1.msra.mxu1 %v7801_v7 }
 0x1c1   :  { %1825 = vmatpush1.msra.mxu0 %v7823_v33  ;;  %2090 = vmatprep.subr.mxu1 %v7813_v11 }
 0x1c2   :  { %1828 = vmatprep.subr.mxu0 %v7837_v59  ;;  %2092 = vmatpush1.msra.mxu1 %v7825_v51 }
 0x1c3   :  { %1831 = vmatpush1.msra.mxu0 %v7848_v31  ;;  %2094 = vmatprep.subr.mxu1 %v7839_v62 }
 0x1c4   :  { %1834 = vmatprep.subr.mxu0 %v7862_v61  ;;  %1870 = vmatprep.mubr.f32.mxu0 %v9225_v55 }
 0x1c5   :  { %1837 = vmatpush1.msra.mxu0 %v7893_v25  ;;  %2096 = vmatpush1.msra.mxu1 %v7880_v13 }
 0x1c6   :  { %2129 = vmatprep.mubr.f32.mxu1 %v9225_v55  ;;  %1873 = vmatmul.mubr.f32.vlgmr.msra.gmra.mxu0 %v7929_v52 }
 0x1c7   :  { %1988 = vmatprep.subr.mxu0 %v7808_v48  ;;  %2131 = vmatmul.mubr.f32.vlgmr.msra.gmra.mxu1 %v7923_v63 }
 0x1c8   :  { %6130 = vmatprep.subr.mxu1 %v9225_v55  ;;  %1992 = vmatpush1.msra.mxu0 %v7820_v2 }
 0x1c9   :  { %6131 = vmatpush3.msra.mxu1 %v8007_v37  ;;  %1996 = vmatprep.subr.mxu0 %v7834_v36  ;;  %v9380_v36 = vld [vmem:[#allocation6_spill] sm:$0xff] }
 0x1ca   :  { %6132 = vmatprep.subr.mxu1 %v9225_v55  ;;  %2000 = vmatpush1.msra.mxu0 %v7845_v16  ;;  %v9378_v16 = vld [vmem:[#allocation87_spill] sm:$0xff] }
 0x1cb   :  { %6133 = vmatpush3.msra.mxu1 %v8015_v30  ;;  %2004 = vmatprep.subr.mxu0 %v7859_v46  ;;  %v9374_v46 = vld [vmem:[#allocation71_spill] sm:$0xff]  ;;  %v9376_v30 = vld [vmem:[#allocation78_spill] sm:$0xff] }
 0x1cc   :  { %6134 = vmatprep.subr.mxu1 %v9225_v55  ;;  %2008 = vmatpush1.msra.mxu0 %v7870_v60  ;;  %v9371_v60 = vld [vmem:[#allocation125_spill] sm:$0xff] }
 0x1cd   :  { %6135 = vmatpush3.msra.mxu1 %v8023_v45  ;;  %2012 = vmatprep.subr.mxu0 %v7878_v56  ;;  %v9367_v56 = vld [vmem:[#allocation123_spill] sm:$0xff]  ;;  %v9369_v45 = vld [vmem:[#allocation124_spill] sm:$0xff] }
 0x1ce   :  { %6136 = vmatprep.subr.mxu1 %v9225_v55  ;;  %2016 = vmatpush1.msra.mxu0 %v7904_v49  ;;  %v9365_v49 = vld [vmem:[#allocation121_spill] sm:$0xff] }
 0x1cf   :  { %2049 = vmatprep.mubr.f32.mxu0 %v9225_v55  ;;  %6137 = vmatpush3.msra.mxu1 %v8029_v32  ;;  %v9363_v32 = vld [vmem:[#allocation118_spill] sm:$0xff] }
 0x1d0   :  { %6138 = vmatprep.mubr.msk.f32.mxu1 %vm6469_vm0, %v9225_v55  ;;  %2051 = vmatmul.mubr.f32.vlgmr.msra.gmra.mxu0 %v7923_v63 }
 0x1d1   :  { %6119 = vmatprep.subr.mxu0 %v9225_v55  ;;  %6139 = vmatmul.mubr.f32.vlgmr.msra.gmra.mxu1 %v7923_v63 }
 0x1d2   :  { %6152 = vmatprep.subr.mxu1 %v9225_v55  ;;  %6120 = vmatpush3.msra.mxu0 %v7932_v57 }
 0x1d3   :  { %6153 = vmatpush3.msra.mxu1 %v7932_v57  ;;  %6121 = vmatprep.subr.mxu0 %v9225_v55 }
 0x1d4   :  { %6154 = vmatprep.subr.mxu1 %v9225_v55  ;;  %6122 = vmatpush3.msra.mxu0 %v7943_v15 }
 0x1d5   :  { %6155 = vmatpush3.msra.mxu1 %v7943_v15  ;;  %6123 = vmatprep.subr.mxu0 %v9225_v55 }
 0x1d6   :  { %6156 = vmatprep.subr.mxu1 %v9225_v55  ;;  %6124 = vmatpush3.msra.mxu0 %v7955_v24 }
 0x1d7   :  { %6157 = vmatpush3.msra.mxu1 %v7955_v24  ;;  %6125 = vmatprep.subr.mxu0 %v9225_v55 }
 0x1d8   :  { %6158 = vmatprep.subr.mxu1 %v9225_v55  ;;  %6126 = vmatpush3.msra.mxu0 %v7964_v6 }
 0x1d9   :  { %6127 = vmatprep.mubr.msk.f32.mxu0 %vm6469_vm0, %v9225_v55  ;;  %6159 = vmatpush3.msra.mxu1 %v7964_v6 }
 0x1da   :  { %6160 = vmatprep.mubr.msk.f32.mxu1 %vm6469_vm0, %v9225_v55  ;;  %6128 = vmatmul.mubr.f32.vlgmr.msra.gmra.mxu0 %v7959_v50  ;;  %v9322_v50 = vld [vmem:[#allocation27_spill] sm:$0xff] }
 0x1db   :  { %6141 = vmatprep.subr.mxu0 %v9225_v55  ;;  %6161 = vmatmul.mubr.f32.vlgmr.msra.gmra.mxu1 %v7941_v14  ;;  %v9321_v14 = vld [vmem:[#allocation24_spill] sm:$0xff] }
 0x1dc   :  { %6174 = vmatprep.subr.mxu1 %v9225_v55  ;;  %6142 = vmatpush3.msra.mxu0 %v7953_v29  ;;  %v9353_v29 = vld [vmem:[#allocation104_spill] sm:$0xff] }
 0x1dd   :  { %6175 = vmatpush3.msra.mxu1 %v7932_v57  ;;  %6143 = vmatprep.subr.mxu0 %v9225_v55  ;;  %v9361_v57 = vld [vmem:[#allocation115_spill] sm:$0xff] }
 0x1de   :  { %6176 = vmatprep.subr.mxu1 %v9225_v55  ;;  %6144 = vmatpush3.msra.mxu0 %v7962_v38  ;;  %v9351_v38 = vld [vmem:[#allocation100_spill] sm:$0xff] }
 0x1df   :  { %6177 = vmatpush3.msra.mxu1 %v7943_v15  ;;  %6145 = vmatprep.subr.mxu0 %v9225_v55  ;;  %v9359_v15 = vld [vmem:[#allocation114_spill] sm:$0xff] }
 0x1e0   :  { %6178 = vmatprep.subr.mxu1 %v9225_v55  ;;  %6146 = vmatpush3.msra.mxu0 %v7973_v34  ;;  %v9349_v34 = vld [vmem:[#allocation97_spill] sm:$0xff] }
 0x1e1   :  { %6179 = vmatpush3.msra.mxu1 %v7955_v24  ;;  %6147 = vmatprep.subr.mxu0 %v9225_v55  ;;  %v9357_v24 = vld [vmem:[#allocation111_spill] sm:$0xff] }
 0x1e2   :  { %6180 = vmatprep.subr.mxu1 %v9225_v55  ;;  %6148 = vmatpush3.msra.mxu0 %v7983_v40  ;;  %v9347_v40 = vld [vmem:[#allocation94_spill] sm:$0xff] }
 0x1e3   :  { %6149 = vmatprep.mubr.msk.f32.mxu0 %vm6469_vm0, %v9225_v55  ;;  %6181 = vmatpush3.msra.mxu1 %v7964_v6  ;;  %v9355_v6 = vld [vmem:[#allocation106_spill] sm:$0xff] }
 0x1e4   :  { %6182 = vmatprep.mubr.msk.f32.mxu1 %vm6469_vm0, %v9225_v55  ;;  %6150 = vmatmul.mubr.f32.vlgmr.msra.gmra.mxu0 %v7929_v52  ;;  %v9323_v52 = vld [vmem:[#allocation28_spill] sm:$0xff] }
 0x1e5   :  { %6163 = vmatprep.subr.mxu0 %v9225_v55  ;;  %6183 = vmatmul.mubr.f32.vlgmr.msra.gmra.mxu1 %v7923_v63 }
 0x1e6   :  { %6164 = vmatpush3.msra.mxu0 %v7970_v17  ;;  %6171 = vmatprep.mubr.msk.f32.mxu0 %vm6469_vm0, %v9225_v55  ;;  %v9345_v17 = vld [vmem:[#allocation91_spill] sm:$0xff] }
 0x1e7   :  { %6165 = vmatprep.subr.mxu0 %v9225_v55  ;;  %5602 = vmatprep.subr.mxu1 %v9321_v14  ;;  %v9328_v14 = vld [vmem:[#allocation50_spill] sm:$0xff] }
 0x1e8   :  { %6166 = vmatpush3.msra.mxu0 %v7980_v18  ;;  %5603 = vmatpush3.msra.mxu1 %v9322_v50  ;;  %v9329_v50 = vld [vmem:[#allocation53_spill] sm:$0xff]  ;;  %v9343_v18 = vld [vmem:[#allocation88_spill] sm:$0xff] }
 0x1e9   :  { %6167 = vmatprep.subr.mxu0 %v9225_v55  ;;  %5604 = vmatprep.subr.mxu1 %v9323_v52  ;;  %v9330_v52 = vld [vmem:[#allocation56_spill] sm:$0xff] }
 0x1ea   :  { %6168 = vmatpush3.msra.mxu0 %v7992_v47  ;;  %5605 = vmatpush3.msra.mxu1 %v9324_v28  ;;  %v9331_v28 = vld [vmem:[#allocation59_spill] sm:$0xff]  ;;  %v9341_v47 = vld [vmem:[#allocation85_spill] sm:$0xff] }
 0x1eb   :  { %6169 = vmatprep.subr.mxu0 %v9225_v55  ;;  %5606 = vmatprep.subr.mxu1 %v9325_v44  ;;  %v9332_v44 = vld [vmem:[#allocation62_spill] sm:$0xff] }
 0x1ec   :  { %6170 = vmatpush3.msra.mxu0 %v8001_v54  ;;  %5607 = vmatpush3.msra.mxu1 %v9326_v12  ;;  %v9334_v12 = vld [vmem:[#allocation2_spill] sm:$0xff]  ;;  %v9339_v54 = vld [vmem:[#allocation79_spill] sm:$0xff] }
 0x1ed   :  { %6172 = vmatmul.mubr.f32.vlgmr.msra.gmra.mxu0 %v7923_v63  ;;  %5608 = vmatprep.subr.mxu1 %v9327_v23  ;;  %v9333_v63 = vld [vmem:[#allocation65_spill] sm:$0xff] }
 0x1ee   :  { %5609 = vmatpush3.msra.mxu1 %v9328_v14  ;;  %5567 = vmatprep.subr.mxu0 %v6519_v3  ;;  %v9335_v23 = vld [vmem:[#allocation69_spill] sm:$0xff]  ;;  %v9336_v14 = vld [vmem:[#allocation3_spill] sm:$0xff] }
 0x1ef   :  { %5610 = vmatprep.subr.mxu1 %v9329_v50  ;;  %5568 = vmatpush3.msra.mxu0 %v6521_v4  ;;  %v9337_v50 = vld [vmem:[#allocation75_spill] sm:$0xff] }
 0x1f0   :  { %5611 = vmatpush3.msra.mxu1 %v9330_v52  ;;  %5569 = vmatprep.subr.mxu0 %v6523_v5  ;;  %v9338_v52 = vld [vmem:[#allocation4_spill] sm:$0xff] }
 0x1f1   :  { %5612 = vmatprep.subr.mxu1 %v9331_v28  ;;  %5570 = vmatpush3.msra.mxu0 %v6534_v9  ;;  %v9340_v28 = vld [vmem:[#allocation5_spill] sm:$0xff] }
 0x1f2   :  { %5613 = vmatpush3.msra.mxu1 %v9332_v44  ;;  %5571 = vmatprep.subr.mxu0 %v6536_v10  ;;  %v9342_v44 = vld [vmem:[#allocation7_spill] sm:$0xff] }
 0x1f3   :  { %5614 = vmatprep.subr.mxu1 %v9333_v63  ;;  %5572 = vmatpush3.msra.mxu0 %v9334_v12  ;;  %v9344_v63 = vld [vmem:[#allocation9_spill] sm:$0xff] }
 0x1f4   :  { %5615 = vmatpush3.msra.mxu1 %v9335_v23  ;;  %5573 = vmatprep.subr.mxu0 %v9336_v14  ;;  %v9346_v23 = vld [vmem:[#allocation12_spill] sm:$0xff] }
 0x1f5   :  { %5616 = vmatprep.subr.mxu1 %v9337_v50  ;;  %5574 = vmatpush3.msra.mxu0 %v9338_v52  ;;  %v9348_v50 = vld [vmem:[#allocation14_spill] sm:$0xff] }
 0x1f6   :  { %5617 = vmatpush3.msra.mxu1 %v9339_v54  ;;  %5575 = vmatprep.subr.mxu0 %v9340_v28  ;;  %v9350_v54 = vld [vmem:[#allocation18_spill] sm:$0xff] }
 0x1f7   :  { %5618 = vmatprep.subr.mxu1 %v9341_v47  ;;  %5576 = vmatpush3.msra.mxu0 %v9342_v44  ;;  %v9352_v47 = vld [vmem:[#allocation21_spill] sm:$0xff] }
 0x1f8   :  { %5619 = vmatpush3.msra.mxu1 %v9343_v18  ;;  %5577 = vmatprep.subr.mxu0 %v9344_v63  ;;  %v9354_v18 = vld [vmem:[#allocation26_spill] sm:$0xff] }
 0x1f9   :  { %5620 = vmatprep.subr.mxu1 %v9345_v17  ;;  %5578 = vmatpush3.msra.mxu0 %v9346_v23  ;;  %v9356_v17 = vld [vmem:[#allocation32_spill] sm:$0xff] }
 0x1fa   :  { %5621 = vmatpush3.msra.mxu1 %v9347_v40  ;;  %5579 = vmatprep.subr.mxu0 %v9348_v50  ;;  %v9358_v40 = vld [vmem:[#allocation35_spill] sm:$0xff] }
 0x1fb   :  { %5622 = vmatprep.subr.mxu1 %v9349_v34  ;;  %5580 = vmatpush3.msra.mxu0 %v9350_v54  ;;  %v9360_v34 = vld [vmem:[#allocation39_spill] sm:$0xff] }
 0x1fc   :  { %5623 = vmatpush3.msra.mxu1 %v9351_v38  ;;  %5581 = vmatprep.subr.mxu0 %v9352_v47  ;;  %v9362_v38 = vld [vmem:[#allocation43_spill] sm:$0xff] }
 0x1fd   :  { %5624 = vmatprep.subr.mxu1 %v9353_v29  ;;  %5582 = vmatpush3.msra.mxu0 %v9354_v18  ;;  %v9364_v29 = vld [vmem:[#allocation46_spill] sm:$0xff] }
 0x1fe   :  { %5625 = vmatpush3.msra.mxu1 %v9355_v6  ;;  %5583 = vmatprep.subr.mxu0 %v9356_v17  ;;  %v9366_v6 = vld [vmem:[#allocation49_spill] sm:$0xff] }
 0x1ff   :  { %5626 = vmatprep.subr.mxu1 %v9357_v24  ;;  %5584 = vmatpush3.msra.mxu0 %v9358_v40  ;;  %v9368_v24 = vld [vmem:[#allocation55_spill] sm:$0xff] }
 0x200   :  { %5627 = vmatpush3.msra.mxu1 %v9359_v15  ;;  %5585 = vmatprep.subr.mxu0 %v9360_v34  ;;  %v9370_v15 = vld [vmem:[#allocation60_spill] sm:$0xff] }
 0x201   :  { %5628 = vmatprep.subr.mxu1 %v9361_v57  ;;  %5586 = vmatpush3.msra.mxu0 %v9362_v38  ;;  %v9372_v57 = vld [vmem:[#allocation64_spill] sm:$0xff] }
 0x202   :  { %5629 = vmatpush3.msra.mxu1 %v9363_v32  ;;  %5587 = vmatprep.subr.mxu0 %v9364_v29  ;;  %v9373_v32 = vld [vmem:[#allocation68_spill] sm:$0xff] }
 0x203   :  { %5630 = vmatprep.subr.mxu1 %v9365_v49  ;;  %5588 = vmatpush3.msra.mxu0 %v9366_v6  ;;  %v9375_v49 = vld [vmem:[#allocation74_spill] sm:$0xff] }
 0x204   :  { %5631 = vmatpush3.msra.mxu1 %v9367_v56  ;;  %5589 = vmatprep.subr.mxu0 %v9368_v24  ;;  %v9377_v56 = vld [vmem:[#allocation83_spill] sm:$0xff] }
 0x205   :  { %5632 = vmatprep.subr.mxu1 %v9369_v45  ;;  %5590 = vmatpush3.msra.mxu0 %v9370_v15  ;;  %v9379_v45 = vld [vmem:[#allocation92_spill] sm:$0xff] }
 0x206   :  { %5633 = vmatpush3.msra.mxu1 %v9371_v60  ;;  %5591 = vmatprep.subr.mxu0 %v9372_v57 }
 0x207   :  { %5672 = vmatprep.subr.mxu1 %v6519_v3  ;;  %5592 = vmatpush3.msra.mxu0 %v9373_v32 }
 0x208   :  { %5593 = vmatprep.subr.mxu0 %v9374_v46 }
 0x209   :  { %5594 = vmatpush3.msra.mxu0 %v9375_v49 }
 0x20a   :  { %5595 = vmatprep.subr.mxu0 %v9376_v30 }
 0x20b   :  { %5596 = vmatpush3.msra.mxu0 %v9377_v56 }
 0x20c   :  { %5597 = vmatprep.subr.mxu0 %v9378_v16 }
 0x20d   :  { %5598 = vmatpush3.msra.mxu0 %v9379_v45 }
 0x20e   :  { %5637 = vmatprep.subr.mxu0 %v9380_v36 }
 0x275   :  { %v1785_v60 = vpop.f32.mrf.mxu1 }
 0x277   :  { %v1787_v2 = vpop.f32.mrf.mxu1 }
 0x27d   :  { %v1956_v25 = vpop.f32.mrf.mxu1 }
 0x27e   :  { %v1673_v37 = vpop.f32.mrf.mxu0 }
 0x27f   :  { %v1786_v31 = vadd.f32 %v1785_v60, %v1673_v37  ;;  %v1958_v59 = vpop.f32.mrf.mxu1  ;;  %v6465_v37 = vld [vmem:[%s8712_s0] sm:$0xff] }
 0x280   :  { %v1675_v48 = vpop.f32.mrf.mxu0 }
 0x281   :  { %v1788_v58 = vadd.f32 %v1787_v2, %v1675_v48 }
 0x286   :  { %v1874_v61 = vpop.f32.mrf.mxu0 }
 0x287   :  { %v1875_v1 = vadd.f32 %v1874_v61, %v1786_v31  ;;  %v2132_v13 = vpop.f32.mrf.mxu1 }
 0x288   :  { %v1876_v33 = vpop.f32.mrf.mxu0 }
 0x289   :  { %v1877_v62 = vadd.f32 %v1876_v33, %v1788_v58  ;;  %v2134_v51 = vpop.f32.mrf.mxu1  ;;  %v1957_v11 = vadd.f32 %v1956_v25, %v1875_v1  ;;  %v6466_v25 = vld [vmem:[%s8712_s0 + $0x8] sm:$0xff] }
 0x28b   :  { %v1959_v41 = vadd.f32 %v1958_v59, %v1877_v62 }
 0x290   :  { %v2052_v7 = vpop.f32.mrf.mxu0 }
 0x291   :  { %v2053_v27 = vadd.f32 %v2052_v7, %v1957_v11  ;;  %v2303_v43 = vpop.f32.mrf.mxu1 }
 0x292   :  { %v2054_v36 = vpop.f32.mrf.mxu0 }
 0x293   :  { %v2133_v22 = vadd.f32 %v2132_v13, %v2053_v27  ;;  %v2055_v8 = vadd.f32 %v2054_v36, %v1959_v41  ;;  %v6140_v53 = vpop.f32.mrf.mxu1 }
 0x295   :  { %v8167_v60 = vsub.f32 %v6465_v37, %v2133_v22  ;;  %v2135_v2 = vadd.f32 %v2134_v51, %v2055_v8 }
 0x297   :  { %v2625_v61 = vmul.f32 %v8167_v60, %v8167_v60  ;;  %v8174_v33 = vsub.f32 %v6466_v25, %v2135_v2 }
 0x299   :  { %v2626_v41 = vmul.f32 %v8174_v33, %v8174_v33  ;;  %v8178_v59 = vand.u32 4294901760, %v2625_v61 }
 0x29a   :  { %v2212_v13 = vpop.f32.mrf.mxu0 }
 0x29b   :  { %v2304_v62 = vadd.f32 %v2303_v43, %v2212_v13  ;;  %v2460_v31 = vpop.f32.mrf.mxu1  ;;  %v8180_v22 = vand.u32 4294901760, %v2626_v41  ;;  %v8183_v8 = vsub.f32 %v2625_v61, %v8178_v59 }
 0x29c   :  { %v6129_v51 = vpop.f32.mrf.mxu0 }
 0x29d   :  { %v6162_v53 = vpop.f32.mrf.mxu1  ;;  %2965 = vmatprep.mubr.f32.mxu1 %v8180_v22  ;;  %v2725_v27 = vsub.f32 %v2626_v41, %v8180_v22  ;;  %v2732_v1 = vand.u32 4294901760, %v8183_v8  ;;  %v9381_v41 = vld [vmem:[#allocation8_spill] sm:$0xff]  ;;  %v9382_v51 = vld [vmem:[#allocation10_spill] sm:$0xff] }
 0x29e   :  { %2967 = vmatmul.mubr.f32.vlgmr.msra.gmra.mxu1 %v8178_v59  ;;  %v9384_v53 = vld [vmem:[#allocation17_spill] sm:$0xff] }
 0x29f   :  { %5673 = vmatpush3.msra.mxu1 %v6521_v4  ;;  %v2726_v7 = vand.u32 4294901760, %v2725_v27  ;;  %v2733_v43 = vsub.f32 %v8183_v8, %v2732_v1 }
 0x2a0   :  { %5674 = vmatprep.subr.mxu1 %v6523_v5 }
 0x2a1   :  { %5675 = vmatpush3.msra.mxu1 %v6534_v9  ;;  %3209 = vmatprep.mubr.f32.mxu1 %v2726_v7  ;;  %v2727_v48 = vsub.f32 %v2725_v27, %v2726_v7  ;;  %v2734_v36 = vand.u32 4294901760, %v2733_v43  ;;  %v9385_v7 = vld [vmem:[#allocation20_spill] sm:$0xff]  ;;  %v9386_v43 = vld [vmem:[#allocation23_spill] sm:$0xff] }
 0x2a2   :  { %5676 = vmatprep.subr.mxu1 %v6536_v10 }
 0x2a3   :  { %5677 = vmatpush3.msra.mxu1 %v9334_v12  ;;  %v2728_v58 = vand.u32 4294901760, %v2727_v48 }
 0x2a4   :  { %v2383_v11 = vpop.f32.mrf.mxu0  ;;  %5678 = vmatprep.subr.mxu1 %v9336_v14 }
 0x2a5   :  { %v2384_v37 = vadd.f32 %v2383_v11, %v2304_v62  ;;  %v2618_v2 = vpop.f32.mrf.mxu1  ;;  %5679 = vmatpush3.msra.mxu1 %v9338_v52  ;;  %2729 = vmatprep.mubr.f32.mxu0 %v2728_v58  ;;  %v9383_v62 = vld [vmem:[#allocation13_spill] sm:$0xff]  ;;  %v9388_v58 = vld [vmem:[#allocation34_spill] sm:$0xff] }
 0x2a6   :  { %v6151_v61 = vpop.f32.mrf.mxu0  ;;  %5680 = vmatprep.subr.mxu1 %v9340_v28  ;;  %2735 = vmatmul.mubr.f32.vlgmr.msra.gmra.mxu0 %v2734_v36  ;;  %v9389_v36 = vld [vmem:[#allocation38_spill] sm:$0xff] }
 0x2a7   :  { %v6184_v25 = vpop.f32.mrf.mxu1  ;;  %5638 = vmatpush3.msra.mxu0 %v9381_v41  ;;  %5681 = vmatpush3.msra.mxu1 %v9342_v44  ;;  %v2461_v13 = vadd.f32 %v2460_v31, %v2384_v37  ;;  %v9390_v61 = vld [vmem:[#allocation42_spill] sm:$0xff]  ;;  %v9392_v41 = vld [vmem:[#allocation48_spill] sm:$0xff] }
 0x2a8   :  { %5639 = vmatprep.subr.mxu0 %v9382_v51  ;;  %3102 = vmatprep.mubr.f32.mxu0 %v2725_v27  ;;  %v9387_v27 = vld [vmem:[#allocation31_spill] sm:$0xff]  ;;  %v9391_v25 = vld [vmem:[#allocation45_spill] sm:$0xff] }
 0x2a9   :  { %5682 = vmatprep.subr.mxu1 %v9344_v63  ;;  %5640 = vmatpush3.msra.mxu0 %v9383_v62  ;;  %v9395_v51 = vld [vmem:[#allocation61_spill] sm:$0xff]  ;;  %v9396_v62 = vld [vmem:[#allocation67_spill] sm:$0xff] }
 0x2aa   :  { %5683 = vmatpush3.msra.mxu1 %v9346_v23  ;;  %5641 = vmatprep.subr.mxu0 %v9384_v53  ;;  %v9397_v53 = vld [vmem:[#allocation70_spill] sm:$0xff] }
 0x2ab   :  { %5684 = vmatprep.subr.mxu1 %v9348_v50  ;;  %5642 = vmatpush3.msra.mxu0 %v9385_v7  ;;  %v9398_v7 = vld [vmem:[#allocation73_spill] sm:$0xff] }
 0x2ac   :  { %5685 = vmatpush3.msra.mxu1 %v9350_v54  ;;  %5643 = vmatprep.subr.mxu0 %v9386_v43  ;;  %v9399_v43 = vld [vmem:[#allocation77_spill] sm:$0xff] }
 0x2ad   :  { %v2543_v31 = vpop.f32.mrf.mxu0  ;;  %5686 = vmatprep.subr.mxu1 %v9352_v47  ;;  %5644 = vmatpush3.msra.mxu0 %v9387_v27  ;;  %v9401_v27 = vld [vmem:[#allocation84_spill] sm:$0xff] }
 0x2ae   :  { %v2544_v48 = vadd.f32 %v2543_v31, %v2461_v13  ;;  %5687 = vmatpush3.msra.mxu1 %v9354_v18  ;;  %5645 = vmatprep.subr.mxu0 %v9388_v58  ;;  %v9393_v13 = vld [vmem:[#allocation52_spill] sm:$0xff]  ;;  %v9400_v31 = vld [vmem:[#allocation81_spill] sm:$0xff] }
 0x2af   :  { %v6173_v11 = vpop.f32.mrf.mxu0  ;;  %5688 = vmatprep.subr.mxu1 %v9356_v17  ;;  %5646 = vmatpush3.msra.mxu0 %v9389_v36  ;;  %v9403_v58 = vld [vmem:[#allocation93_spill] sm:$0xff]  ;;  %v9405_v36 = vld [vmem:[#allocation102_spill] sm:$0xff] }
 0x2b0   :  { %v8217_v37 = vadd.f32 %v2618_v2, %v2544_v48  ;;  %5689 = vmatpush3.msra.mxu1 %v9358_v40  ;;  %5647 = vmatprep.subr.mxu0 %v9390_v61  ;;  %v9394_v2 = vld [vmem:[#allocation58_spill] sm:$0xff]  ;;  %v9404_v11 = vld [vmem:[#allocation99_spill] sm:$0xff] }
 0x2b1   :  { %5690 = vmatprep.subr.mxu1 %v9360_v34  ;;  %5648 = vmatpush3.msra.mxu0 %v9391_v25  ;;  %v9402_v48 = vld [vmem:[#allocation90_spill] sm:$0xff]  ;;  %v9406_v61 = vld [vmem:[#allocation103_spill] sm:$0xff]  ;;  %v9407_v25 = vld [vmem:[#allocation105_spill] sm:$0xff] }
 0x2b2   :  { %5691 = vmatpush3.msra.mxu1 %v9362_v38  ;;  %5649 = vmatprep.subr.mxu0 %v9392_v41  ;;  %v9408_v41 = vld [vmem:[#allocation110_spill] sm:$0xff] }
 0x2b3   :  { %5692 = vmatprep.subr.mxu1 %v9364_v29  ;;  %5650 = vmatpush3.msra.mxu0 %v9393_v13  ;;  %v9444_v13 = vld [vmem:[#allocation144_spill] sm:$0xff] }
 0x2b4   :  { %5693 = vmatpush3.msra.mxu1 %v9366_v6  ;;  %5651 = vmatprep.subr.mxu0 %v9394_v2  ;;  %v9445_v2 = vld [vmem:[#allocation120_spill] sm:$0xff] }
 0x2b5   :  { %5694 = vmatprep.subr.mxu1 %v9368_v24  ;;  %5652 = vmatpush3.msra.mxu0 %v9395_v51  ;;  %v9446_v51 = vld [vmem:[#allocation122_spill] sm:$0xff] }
 0x2b6   :  { %5695 = vmatpush3.msra.mxu1 %v9370_v15  ;;  %5653 = vmatprep.subr.mxu0 %v9396_v62  ;;  %v9447_v62 = vld [vmem:[#allocation148_spill] sm:$0xff] }
 0x2b7   :  { %5696 = vmatprep.subr.mxu1 %v9372_v57  ;;  %5654 = vmatpush3.msra.mxu0 %v9397_v53  ;;  %v9448_v53 = vld [vmem:[#allocation152_spill] sm:$0xff] }
 0x2b8   :  { %5697 = vmatpush3.msra.mxu1 %v9373_v32  ;;  %5655 = vmatprep.subr.mxu0 %v9398_v7  ;;  %v9449_v7 = vld [vmem:[#allocation156_spill] sm:$0xff] }
 0x2b9   :  { %5698 = vmatprep.subr.mxu1 %v9374_v46  ;;  %5656 = vmatpush3.msra.mxu0 %v9399_v43  ;;  %v6467_v43 = vld [vmem:[%s8712_s0 + $0x10] sm:$0xff] }
 0x2ba   :  { %5699 = vmatpush3.msra.mxu1 %v9375_v49  ;;  %5657 = vmatprep.subr.mxu0 %v9400_v31  ;;  %v8354_v31 = vsub.f32 %v6467_v43, %v8217_v37  ;;  %v9504_v43 = vld [vmem:[#allocation176_spill] sm:$0xff] }
 0x2bb   :  { %5700 = vmatprep.subr.mxu1 %v9376_v30  ;;  %5658 = vmatpush3.msra.mxu0 %v9401_v27  ;;  %v9451_v27 = vld [vmem:[#allocation164_spill] sm:$0xff] }
 0x2bc   :  { %5701 = vmatpush3.msra.mxu1 %v9377_v56  ;;  %5659 = vmatprep.subr.mxu0 %v9402_v48  ;;  %v9452_v48 = vld [vmem:[#allocation167_spill] sm:$0xff]  ;;  %v2627_v37 = vmul.f32 %v8354_v31, %v8354_v31 }
 0x2bd   :  { %5702 = vmatprep.subr.mxu1 %v9378_v16  ;;  %5660 = vmatpush3.msra.mxu0 %v9403_v58  ;;  %v9453_v58 = vld [vmem:[#allocation170_spill] sm:$0xff] }
 0x2be   :  { %5703 = vmatpush3.msra.mxu1 %v9379_v45  ;;  %5661 = vmatprep.subr.mxu0 %v9404_v11  ;;  %v9454_v11 = vld [vmem:[#allocation173_spill] sm:$0xff] }
 0x2bf   :  { %3213 = vmatmul.mubr.f32.vlgmr.msra.gmra.mxu1 %v2732_v1  ;;  %5742 = vmatprep.subr.mxu1 %v6519_v3  ;;  %v9409_v1 = vld [vmem:[#allocation112_spill] sm:$0xff]  ;;  %v9410_v3 = vld [vmem:[#allocation117_spill] sm:$0xff] }
 0x2c0   :  { %5662 = vmatpush3.msra.mxu0 %v9405_v36  ;;  %5743 = vmatpush3.msra.mxu1 %v6521_v4  ;;  %v9411_v4 = vld [vmem:[#allocation119_spill] sm:$0xff] }
 0x2c1   :  { %3483 = vmatprep.mubr.f32.mxu1 %v8180_v22  ;;  %5663 = vmatprep.subr.mxu0 %v9406_v61  ;;  %v9455_v36 = vld [vmem:[#allocation175_spill] sm:$0xff]  ;;  %v8376_v61 = vand.u32 4294901760, %v2627_v37 }
 0x2c2   :  { %5744 = vmatprep.subr.mxu1 %v6523_v5  ;;  %5664 = vmatpush3.msra.mxu0 %v9407_v25  ;;  %v9412_v5 = vld [vmem:[#allocation11_spill] sm:$0xff] }
 0x2c3   :  { %5745 = vmatpush3.msra.mxu1 %v6534_v9  ;;  %5665 = vmatprep.subr.mxu0 %v9408_v41  ;;  %v9413_v9 = vld [vmem:[#allocation15_spill] sm:$0xff]  ;;  %v9457_v41 = vld [vmem:[#allocation177_spill] sm:$0xff] }
 0x2c4   :  { %5746 = vmatprep.subr.mxu1 %v6536_v10  ;;  %5666 = vmatpush3.msra.mxu0 %v9409_v1  ;;  %v9414_v10 = vld [vmem:[#allocation16_spill] sm:$0xff]  ;;  %v9456_v25 = vld [vmem:[#allocation135_spill] sm:$0xff] }
 0x2c5   :  { %5747 = vmatpush3.msra.mxu1 %v9334_v12  ;;  %5667 = vmatprep.subr.mxu0 %v9410_v3  ;;  %v9415_v12 = vld [vmem:[#allocation19_spill] sm:$0xff]  ;;  %v9459_v3 = vld [vmem:[#allocation178_spill] sm:$0xff] }
 0x2c6   :  { %5748 = vmatprep.subr.mxu1 %v9336_v14  ;;  %5668 = vmatpush3.msra.mxu0 %v9411_v4  ;;  %v9416_v14 = vld [vmem:[#allocation22_spill] sm:$0xff]  ;;  %v9458_v1 = vld [vmem:[#allocation139_spill] sm:$0xff]  ;;  %v8387_v4 = vsub.f32 %v2627_v37, %v8376_v61  ;;  %v9507_v37 = vld [vmem:[#allocation212_spill] sm:$0xff] }
 0x2c7   :  { %5749 = vmatpush3.msra.mxu1 %v9338_v52  ;;  %3105 = vmatmul.mubr.f32.vlgmr.msra.gmra.mxu0 %v8183_v8  ;;  %v9417_v52 = vld [vmem:[#allocation25_spill] sm:$0xff] }
 0x2c8   :  { %5707 = vmatprep.subr.mxu0 %v9412_v5  ;;  %5750 = vmatprep.subr.mxu1 %v9340_v28  ;;  %v9418_v28 = vld [vmem:[#allocation29_spill] sm:$0xff]  ;;  %v9460_v5 = vld [vmem:[#allocation143_spill] sm:$0xff] }
 0x2c9   :  { %5708 = vmatpush3.msra.mxu0 %v9413_v9  ;;  %3379 = vmatprep.mubr.f32.mxu0 %v8180_v22  ;;  %v9439_v22 = vld [vmem:[#allocation108_spill] sm:$0xff]  ;;  %v9442_v8 = vld [vmem:[#allocation113_spill] sm:$0xff]  ;;  %v9461_v9 = vld [vmem:[#allocation179_spill] sm:$0xff] }
 0x2ca   :  { %5751 = vmatpush3.msra.mxu1 %v9342_v44  ;;  %5709 = vmatprep.subr.mxu0 %v9414_v10  ;;  %v9419_v44 = vld [vmem:[#allocation37_spill] sm:$0xff]  ;;  %v9462_v10 = vld [vmem:[#allocation147_spill] sm:$0xff] }
 0x2cb   :  { %5752 = vmatprep.subr.mxu1 %v9344_v63  ;;  %5710 = vmatpush3.msra.mxu0 %v9415_v12  ;;  %v9420_v63 = vld [vmem:[#allocation41_spill] sm:$0xff]  ;;  %v9463_v12 = vld [vmem:[#allocation180_spill] sm:$0xff] }
 0x2cc   :  { %5753 = vmatpush3.msra.mxu1 %v9346_v23  ;;  %5711 = vmatprep.subr.mxu0 %v9416_v14  ;;  %v9421_v23 = vld [vmem:[#allocation44_spill] sm:$0xff]  ;;  %v3573_v14 = vand.u32 4294901760, %v8387_v4 }
 0x2cd   :  { %5754 = vmatprep.subr.mxu1 %v9348_v50  ;;  %5712 = vmatpush3.msra.mxu0 %v9417_v52  ;;  %v9422_v50 = vld [vmem:[#allocation47_spill] sm:$0xff] }
 0x2ce   :  { %5755 = vmatpush3.msra.mxu1 %v9350_v54  ;;  %5713 = vmatprep.subr.mxu0 %v9418_v28  ;;  %v9423_v54 = vld [vmem:[#allocation51_spill] sm:$0xff] }
 0x2cf   :  { %5756 = vmatprep.subr.mxu1 %v9352_v47  ;;  %5714 = vmatpush3.msra.mxu0 %v9419_v44  ;;  %v9424_v47 = vld [vmem:[#allocation54_spill] sm:$0xff]  ;;  %v9464_v52 = vld [vmem:[#allocation151_spill] sm:$0xff]  ;;  %v3574_v44 = vsub.f32 %v8387_v4, %v3573_v14 }
 0x2d0   :  { %5757 = vmatpush3.msra.mxu1 %v9354_v18  ;;  %5715 = vmatprep.subr.mxu0 %v9420_v63  ;;  %v9425_v18 = vld [vmem:[#allocation57_spill] sm:$0xff]  ;;  %v9465_v28 = vld [vmem:[#allocation155_spill] sm:$0xff] }
 0x2d1   :  { %5758 = vmatprep.subr.mxu1 %v9356_v17  ;;  %5716 = vmatpush3.msra.mxu0 %v9421_v23  ;;  %v9426_v17 = vld [vmem:[#allocation63_spill] sm:$0xff] }
 0x2d2   :  { %5759 = vmatpush3.msra.mxu1 %v9358_v40  ;;  %5717 = vmatprep.subr.mxu0 %v9422_v50  ;;  %v9427_v40 = vld [vmem:[#allocation66_spill] sm:$0xff]  ;;  %v9466_v63 = vld [vmem:[#allocation159_spill] sm:$0xff]  ;;  %v3575_v50 = vand.u32 4294901760, %v3574_v44 }
 0x2d3   :  { %5760 = vmatprep.subr.mxu1 %v9360_v34  ;;  %5718 = vmatpush3.msra.mxu0 %v9423_v54  ;;  %v9428_v34 = vld [vmem:[#allocation72_spill] sm:$0xff]  ;;  %v9467_v23 = vld [vmem:[#allocation163_spill] sm:$0xff]  ;;  %v9468_v54 = vld [vmem:[#allocation126_spill] sm:$0xff] }
 0x2d4   :  { %5761 = vmatpush3.msra.mxu1 %v9362_v38  ;;  %5719 = vmatprep.subr.mxu0 %v9424_v47  ;;  %v9429_v38 = vld [vmem:[#allocation76_spill] sm:$0xff]  ;;  %v9469_v47 = vld [vmem:[#allocation127_spill] sm:$0xff] }
 0x2d5   :  { %5762 = vmatprep.subr.mxu1 %v9364_v29  ;;  %5720 = vmatpush3.msra.mxu0 %v9425_v18  ;;  %v9430_v29 = vld [vmem:[#allocation80_spill] sm:$0xff] }
 0x2d6   :  { %5763 = vmatpush3.msra.mxu1 %v9366_v6  ;;  %5721 = vmatprep.subr.mxu0 %v9426_v17  ;;  %v9431_v6 = vld [vmem:[#allocation82_spill] sm:$0xff]  ;;  %v9470_v18 = vld [vmem:[#allocation128_spill] sm:$0xff] }
 0x2d7   :  { %5764 = vmatprep.subr.mxu1 %v9368_v24  ;;  %5722 = vmatpush3.msra.mxu0 %v9427_v40  ;;  %v9432_v24 = vld [vmem:[#allocation86_spill] sm:$0xff]  ;;  %v9472_v40 = vld [vmem:[#allocation132_spill] sm:$0xff] }
 0x2d8   :  { %5765 = vmatpush3.msra.mxu1 %v9370_v15  ;;  %5723 = vmatprep.subr.mxu0 %v9428_v34  ;;  %v9433_v15 = vld [vmem:[#allocation89_spill] sm:$0xff]  ;;  %v9471_v17 = vld [vmem:[#allocation130_spill] sm:$0xff] }
 0x2d9   :  { %5766 = vmatprep.subr.mxu1 %v9372_v57  ;;  %5724 = vmatpush3.msra.mxu0 %v9429_v38  ;;  %v9434_v57 = vld [vmem:[#allocation95_spill] sm:$0xff]  ;;  %v9473_v34 = vld [vmem:[#allocation134_spill] sm:$0xff] }
 0x2da   :  { %5767 = vmatpush3.msra.mxu1 %v9373_v32  ;;  %5725 = vmatprep.subr.mxu0 %v9430_v29  ;;  %v9435_v32 = vld [vmem:[#allocation98_spill] sm:$0xff] }
 0x2db   :  { %5768 = vmatprep.subr.mxu1 %v9374_v46  ;;  %5726 = vmatpush3.msra.mxu0 %v9431_v6  ;;  %v9436_v46 = vld [vmem:[#allocation101_spill] sm:$0xff]  ;;  %v9474_v38 = vld [vmem:[#allocation138_spill] sm:$0xff] }
 0x2dc   :  { %5769 = vmatpush3.msra.mxu1 %v9375_v49  ;;  %5727 = vmatprep.subr.mxu0 %v9432_v24  ;;  %v9437_v49 = vld [vmem:[#allocation107_spill] sm:$0xff]  ;;  %v9475_v29 = vld [vmem:[#allocation142_spill] sm:$0xff] }
 0x2dd   :  { %5770 = vmatprep.subr.mxu1 %v9376_v30  ;;  %5728 = vmatpush3.msra.mxu0 %v9433_v15  ;;  %v9438_v30 = vld [vmem:[#allocation136_spill] sm:$0xff]  ;;  %v9476_v6 = vld [vmem:[#allocation146_spill] sm:$0xff] }
 0x2de   :  { %5771 = vmatpush3.msra.mxu1 %v9377_v56  ;;  %5729 = vmatprep.subr.mxu0 %v9434_v57  ;;  %v9440_v56 = vld [vmem:[#allocation109_spill] sm:$0xff]  ;;  %v9477_v24 = vld [vmem:[#allocation150_spill] sm:$0xff] }
 0x2df   :  { %5772 = vmatprep.subr.mxu1 %v9378_v16  ;;  %5730 = vmatpush3.msra.mxu0 %v9435_v32  ;;  %v9441_v16 = vld [vmem:[#allocation140_spill] sm:$0xff]  ;;  %v9478_v15 = vld [vmem:[#allocation154_spill] sm:$0xff] }
 0x2e0   :  { %5773 = vmatpush3.msra.mxu1 %v9379_v45  ;;  %5731 = vmatprep.subr.mxu0 %v9436_v46  ;;  %v9443_v45 = vld [vmem:[#allocation116_spill] sm:$0xff]  ;;  %v9479_v57 = vld [vmem:[#allocation158_spill] sm:$0xff] }
 0x2e1   :  { %3485 = vmatmul.mubr.f32.vlgmr.msra.gmra.mxu1 %v8178_v59  ;;  %6220 = vmatprep.subr.mxu1 %v9225_v55  ;;  %v9480_v32 = vld [vmem:[#allocation162_spill] sm:$0xff] }
 0x2e2   :  { %5732 = vmatpush3.msra.mxu0 %v9437_v49  ;;  %6221 = vmatpush3.msra.mxu1 %v9438_v30  ;;  %v9481_v46 = vld [vmem:[#allocation166_spill] sm:$0xff]  ;;  %v9482_v49 = vld [vmem:[#allocation169_spill] sm:$0xff] }
 0x2e3   :  { %5733 = vmatprep.subr.mxu0 %v9439_v22  ;;  %6222 = vmatprep.subr.mxu1 %v9225_v55  ;;  %v9491_v30 = vld [vmem:[#allocation149_spill] sm:$0xff] }
 0x2e4   :  { %5734 = vmatpush3.msra.mxu0 %v9440_v56  ;;  %6223 = vmatpush3.msra.mxu1 %v9441_v16  ;;  %v9492_v22 = vld [vmem:[#allocation153_spill] sm:$0xff] }
 0x2e5   :  { %5735 = vmatprep.subr.mxu0 %v9442_v8  ;;  %6224 = vmatprep.subr.mxu1 %v9225_v55  ;;  %v9493_v56 = vld [vmem:[#allocation157_spill] sm:$0xff] }
 0x2e6   :  { %5736 = vmatpush3.msra.mxu0 %v9443_v45  ;;  %6225 = vmatpush3.msra.mxu1 %v9444_v13  ;;  %v9494_v16 = vld [vmem:[#allocation161_spill] sm:$0xff]  ;;  %v9496_v45 = vld [vmem:[#allocation168_spill] sm:$0xff]  ;;  %v9497_v13 = vld [vmem:[#allocation198_spill] sm:$0xff] }
 0x2e7   :  { %5737 = vmatprep.subr.mxu0 %v9445_v2  ;;  %6226 = vmatprep.subr.mxu1 %v9225_v55  ;;  %v9495_v8 = vld [vmem:[#allocation165_spill] sm:$0xff]  ;;  %v9498_v2 = vld [vmem:[#allocation171_spill] sm:$0xff] }
 0x2e8   :  { %5738 = vmatpush3.msra.mxu0 %v9446_v51  ;;  %6227 = vmatpush3.msra.mxu1 %v9447_v62  ;;  %v9499_v51 = vld [vmem:[#allocation201_spill] sm:$0xff]  ;;  %v9500_v62 = vld [vmem:[#allocation203_spill] sm:$0xff] }
 0x2e9   :  { %3381 = vmatmul.mubr.f32.vlgmr.msra.gmra.mxu0 %v8178_v59  ;;  %6185 = vmatprep.subr.mxu0 %v9225_v55  ;;  %v9450_v59 = vld [vmem:[#allocation160_spill] sm:$0xff] }
 0x2ea   :  { %6228 = vmatprep.subr.mxu1 %v9225_v55  ;;  %6186 = vmatpush3.msra.mxu0 %v7289_v42 }
 0x2eb   :  { %6229 = vmatpush3.msra.mxu1 %v9448_v53  ;;  %6187 = vmatprep.subr.mxu0 %v9225_v55  ;;  %v9501_v53 = vld [vmem:[#allocation174_spill] sm:$0xff] }
 0x2ec   :  { %6230 = vmatprep.subr.mxu1 %v9225_v55  ;;  %6188 = vmatpush3.msra.mxu0 %v7298_v21 }
 0x2ed   :  { %6231 = vmatpush3.msra.mxu1 %v9449_v7  ;;  %6189 = vmatprep.subr.mxu0 %v9225_v55  ;;  %v9502_v7 = vld [vmem:[#allocation206_spill] sm:$0xff] }
 0x2ee   :  { %6232 = vmatprep.subr.mxu1 %v9225_v55  ;;  %6190 = vmatpush3.msra.mxu0 %v7307_v20 }
 0x2ef   :  { %6233 = vmatpush3.msra.mxu1 %v9450_v59  ;;  %6191 = vmatprep.subr.mxu0 %v9225_v55  ;;  %v9503_v59 = vld [vmem:[#allocation207_spill] sm:$0xff] }
 0x2f0   :  { %6234 = vmatprep.subr.mxu1 %v9225_v55  ;;  %6192 = vmatpush3.msra.mxu0 %v7319_v26 }
 0x2f1   :  { %6235 = vmatpush3.msra.mxu1 %v9451_v27  ;;  %6193 = vmatprep.subr.mxu0 %v9225_v55  ;;  %v9505_v27 = vld [vmem:[#allocation209_spill] sm:$0xff] }
 0x2f2   :  { %6236 = vmatprep.subr.mxu1 %v9225_v55  ;;  %6194 = vmatpush3.msra.mxu0 %v7331_v19 }
 0x2f3   :  { %6237 = vmatpush3.msra.mxu1 %v9452_v48  ;;  %6195 = vmatprep.subr.mxu0 %v9225_v55  ;;  %v9506_v48 = vld [vmem:[#allocation210_spill] sm:$0xff] }
 0x2f4   :  { %6238 = vmatprep.subr.mxu1 %v9225_v55  ;;  %6196 = vmatpush3.msra.mxu0 %v7346_v0 }
 0x2f5   :  { %6239 = vmatpush3.msra.mxu1 %v9453_v58  ;;  %6197 = vmatprep.subr.mxu0 %v9225_v55  ;;  %v9508_v58 = vld [vmem:[#allocation181_spill] sm:$0xff] }
 0x2f6   :  { %6240 = vmatprep.subr.mxu1 %v9225_v55  ;;  %6198 = vmatpush3.msra.mxu0 %v7363_v35 }
 0x2f7   :  { %6241 = vmatpush3.msra.mxu1 %v9454_v11  ;;  %6199 = vmatprep.subr.mxu0 %v9225_v55  ;;  %v9509_v11 = vld [vmem:[#allocation182_spill] sm:$0xff] }
 0x2f8   :  { %6242 = vmatprep.subr.mxu1 %v9225_v55  ;;  %6200 = vmatpush3.msra.mxu0 %v7380_v39 }
 0x2f9   :  { %6243 = vmatpush3.msra.mxu1 %v9455_v36  ;;  %6201 = vmatprep.subr.mxu0 %v9225_v55  ;;  %v9510_v36 = vld [vmem:[#allocation184_spill] sm:$0xff] }
 0x2fa   :  { %6244 = vmatprep.subr.mxu1 %v9225_v55  ;;  %6202 = vmatpush3.msra.mxu0 %v9456_v25 }
 0x2fb   :  { %6245 = vmatpush3.msra.mxu1 %v9457_v41  ;;  %6203 = vmatprep.subr.mxu0 %v9225_v55  ;;  %v9512_v41 = vld [vmem:[#allocation189_spill] sm:$0xff] }
 0x2fc   :  { %6246 = vmatprep.subr.mxu1 %v9225_v55  ;;  %6204 = vmatpush3.msra.mxu0 %v9458_v1 }
 0x2fd   :  { %6247 = vmatpush3.msra.mxu1 %v9459_v3  ;;  %6205 = vmatprep.subr.mxu0 %v9225_v55  ;;  %v9515_v3 = vld [vmem:[#allocation205_spill] sm:$0xff] }
 0x2fe   :  { %6248 = vmatprep.subr.mxu1 %v9225_v55  ;;  %6206 = vmatpush3.msra.mxu0 %v9460_v5 }
 0x2ff   :  { %6249 = vmatpush3.msra.mxu1 %v9461_v9  ;;  %6207 = vmatprep.subr.mxu0 %v9225_v55 }
 0x300   :  { %6250 = vmatprep.subr.mxu1 %v9225_v55  ;;  %6208 = vmatpush3.msra.mxu0 %v9462_v10 }
 0x301   :  { %6251 = vmatpush3.msra.mxu1 %v9463_v12  ;;  %6252 = vmatprep.mubr.msk.f32.mxu1 %vm6469_vm0, %v9225_v55 }
 0x302   :  { %6209 = vmatprep.subr.mxu0 %v9225_v55  ;;  %6253 = vmatmul.mubr.f32.vlgmr.msra.gmra.mxu1 %v8376_v61 }
 0x303   :  { %6290 = vmatprep.subr.mxu1 %v9225_v55  ;;  %6210 = vmatpush3.msra.mxu0 %v9464_v52 }
 0x304   :  { %6291 = vmatpush3.msra.mxu1 %v7289_v42  ;;  %6211 = vmatprep.subr.mxu0 %v9225_v55 }
 0x305   :  { %6292 = vmatprep.subr.mxu1 %v9225_v55  ;;  %6212 = vmatpush3.msra.mxu0 %v9465_v28 }
 0x306   :  { %6293 = vmatpush3.msra.mxu1 %v7298_v21  ;;  %6213 = vmatprep.subr.mxu0 %v9225_v55 }
 0x307   :  { %6294 = vmatprep.subr.mxu1 %v9225_v55  ;;  %6214 = vmatpush3.msra.mxu0 %v9466_v63 }
 0x308   :  { %6295 = vmatpush3.msra.mxu1 %v7307_v20  ;;  %6215 = vmatprep.subr.mxu0 %v9225_v55 }
 0x309   :  { %6296 = vmatprep.subr.mxu1 %v9225_v55  ;;  %6216 = vmatpush3.msra.mxu0 %v9467_v23 }
 0x30a   :  { %6217 = vmatprep.mubr.msk.f32.mxu0 %vm6469_vm0, %v9225_v55  ;;  %6297 = vmatpush3.msra.mxu1 %v7319_v26 }
 0x30b   :  { %6218 = vmatmul.mubr.f32.vlgmr.msra.gmra.mxu0 %v3575_v50  ;;  %6255 = vmatprep.subr.mxu0 %v9225_v55 }
 0x30c   :  { %6298 = vmatprep.subr.mxu1 %v9225_v55  ;;  %6256 = vmatpush3.msra.mxu0 %v9468_v54 }
 0x30d   :  { %6299 = vmatpush3.msra.mxu1 %v7331_v19  ;;  %6257 = vmatprep.subr.mxu0 %v9225_v55 }
 0x30e   :  { %6300 = vmatprep.subr.mxu1 %v9225_v55  ;;  %6258 = vmatpush3.msra.mxu0 %v9469_v47 }
 0x30f   :  { %6301 = vmatpush3.msra.mxu1 %v7346_v0  ;;  %6259 = vmatprep.subr.mxu0 %v9225_v55 }
 0x310   :  { %6302 = vmatprep.subr.mxu1 %v9225_v55  ;;  %6260 = vmatpush3.msra.mxu0 %v9470_v18 }
 0x311   :  { %6303 = vmatpush3.msra.mxu1 %v7363_v35  ;;  %6261 = vmatprep.subr.mxu0 %v9225_v55 }
 0x312   :  { %6304 = vmatprep.subr.mxu1 %v9225_v55  ;;  %6262 = vmatpush3.msra.mxu0 %v9471_v17 }
 0x313   :  { %6305 = vmatpush3.msra.mxu1 %v7380_v39  ;;  %6263 = vmatprep.subr.mxu0 %v9225_v55 }
 0x314   :  { %6306 = vmatprep.subr.mxu1 %v9225_v55  ;;  %6264 = vmatpush3.msra.mxu0 %v9472_v40 }
 0x315   :  { %6307 = vmatpush3.msra.mxu1 %v9456_v25  ;;  %6265 = vmatprep.subr.mxu0 %v9225_v55 }
 0x316   :  { %6308 = vmatprep.subr.mxu1 %v9225_v55  ;;  %6266 = vmatpush3.msra.mxu0 %v9473_v34 }
 0x317   :  { %6309 = vmatpush3.msra.mxu1 %v9458_v1  ;;  %6267 = vmatprep.subr.mxu0 %v9225_v55 }
 0x318   :  { %6310 = vmatprep.subr.mxu1 %v9225_v55  ;;  %6268 = vmatpush3.msra.mxu0 %v9474_v38 }
 0x319   :  { %6311 = vmatpush3.msra.mxu1 %v9460_v5  ;;  %6269 = vmatprep.subr.mxu0 %v9225_v55 }
 0x31a   :  { %6312 = vmatprep.subr.mxu1 %v9225_v55  ;;  %6270 = vmatpush3.msra.mxu0 %v9475_v29 }
 0x31b   :  { %6313 = vmatpush3.msra.mxu1 %v9462_v10  ;;  %6271 = vmatprep.subr.mxu0 %v9225_v55 }
 0x31c   :  { %6314 = vmatprep.subr.mxu1 %v9225_v55  ;;  %6272 = vmatpush3.msra.mxu0 %v9476_v6 }
 0x31d   :  { %6315 = vmatpush3.msra.mxu1 %v9464_v52  ;;  %6273 = vmatprep.subr.mxu0 %v9225_v55 }
 0x31e   :  { %6316 = vmatprep.subr.mxu1 %v9225_v55  ;;  %6274 = vmatpush3.msra.mxu0 %v9477_v24 }
 0x31f   :  { %6317 = vmatpush3.msra.mxu1 %v9465_v28  ;;  %6275 = vmatprep.subr.mxu0 %v9225_v55 }
 0x320   :  { %6318 = vmatprep.subr.mxu1 %v9225_v55  ;;  %6276 = vmatpush3.msra.mxu0 %v9478_v15 }
 0x321   :  { %6319 = vmatpush3.msra.mxu1 %v9466_v63  ;;  %6277 = vmatprep.subr.mxu0 %v9225_v55 }
 0x322   :  { %6320 = vmatprep.subr.mxu1 %v9225_v55  ;;  %6278 = vmatpush3.msra.mxu0 %v9479_v57 }
 0x323   :  { %6321 = vmatpush3.msra.mxu1 %v9467_v23  ;;  %6322 = vmatprep.mubr.msk.f32.mxu1 %vm6469_vm0, %v9225_v55 }
 0x324   :  { %6279 = vmatprep.subr.mxu0 %v9225_v55  ;;  %6323 = vmatmul.mubr.f32.vlgmr.msra.gmra.mxu1 %v3573_v14 }
 0x325   :  { %6360 = vmatprep.subr.mxu1 %v9225_v55  ;;  %6280 = vmatpush3.msra.mxu0 %v9480_v32 }
 0x326   :  { %6361 = vmatpush3.msra.mxu1 %v7289_v42  ;;  %6281 = vmatprep.subr.mxu0 %v9225_v55  ;;  %v9483_v42 = vld [vmem:[#allocation172_spill] sm:$0xff] }
 0x327   :  { %6362 = vmatprep.subr.mxu1 %v9225_v55  ;;  %6282 = vmatpush3.msra.mxu0 %v9481_v46 }
 0x328   :  { %6363 = vmatpush3.msra.mxu1 %v7298_v21  ;;  %6283 = vmatprep.subr.mxu0 %v9225_v55  ;;  %v9484_v21 = vld [vmem:[#allocation96_spill] sm:$0xff] }
 0x329   :  { %6364 = vmatprep.subr.mxu1 %v9225_v55  ;;  %6284 = vmatpush3.msra.mxu0 %v9482_v49 }
 0x32a   :  { %6365 = vmatpush3.msra.mxu1 %v7307_v20  ;;  %6285 = vmatprep.subr.mxu0 %v9225_v55  ;;  %v9485_v20 = vld [vmem:[#allocation129_spill] sm:$0xff] }
 0x32b   :  { %6366 = vmatprep.subr.mxu1 %v9225_v55  ;;  %6286 = vmatpush3.msra.mxu0 %v9483_v42 }
 0x32c   :  { %6287 = vmatprep.mubr.msk.f32.mxu0 %vm6469_vm0, %v9225_v55  ;;  %6367 = vmatpush3.msra.mxu1 %v7319_v26  ;;  %v9486_v26 = vld [vmem:[#allocation131_spill] sm:$0xff] }
 0x32d   :  { %6288 = vmatmul.mubr.f32.vlgmr.msra.gmra.mxu0 %v8387_v4  ;;  %6325 = vmatprep.subr.mxu0 %v9225_v55  ;;  %v9516_v4 = vld [vmem:[#allocation183_spill] sm:$0xff] }
 0x32e   :  { %6368 = vmatprep.subr.mxu1 %v9225_v55  ;;  %6326 = vmatpush3.msra.mxu0 %v9484_v21 }
 0x32f   :  { %6369 = vmatpush3.msra.mxu1 %v7331_v19  ;;  %6327 = vmatprep.subr.mxu0 %v9225_v55  ;;  %v9487_v19 = vld [vmem:[#allocation133_spill] sm:$0xff] }
 0x330   :  { %6370 = vmatprep.subr.mxu1 %v9225_v55  ;;  %6328 = vmatpush3.msra.mxu0 %v9485_v20 }
 0x331   :  { %6371 = vmatpush3.msra.mxu1 %v7346_v0  ;;  %6329 = vmatprep.subr.mxu0 %v9225_v55  ;;  %v9488_v0 = vld [vmem:[#allocation137_spill] sm:$0xff] }
 0x332   :  { %6372 = vmatprep.subr.mxu1 %v9225_v55  ;;  %6330 = vmatpush3.msra.mxu0 %v9486_v26 }
 0x333   :  { %6373 = vmatpush3.msra.mxu1 %v7363_v35  ;;  %6331 = vmatprep.subr.mxu0 %v9225_v55  ;;  %v9489_v35 = vld [vmem:[#allocation141_spill] sm:$0xff] }
 0x334   :  { %6374 = vmatprep.subr.mxu1 %v9225_v55  ;;  %6332 = vmatpush3.msra.mxu0 %v9487_v19 }
 0x335   :  { %6375 = vmatpush3.msra.mxu1 %v7380_v39  ;;  %6333 = vmatprep.subr.mxu0 %v9225_v55  ;;  %v9490_v39 = vld [vmem:[#allocation145_spill] sm:$0xff] }
 0x336   :  { %6376 = vmatprep.subr.mxu1 %v9225_v55  ;;  %6334 = vmatpush3.msra.mxu0 %v9488_v0 }
 0x337   :  { %6377 = vmatpush3.msra.mxu1 %v9456_v25  ;;  %6335 = vmatprep.subr.mxu0 %v9225_v55  ;;  %v9511_v25 = vld [vmem:[#allocation186_spill] sm:$0xff] }
 0x338   :  { %6378 = vmatprep.subr.mxu1 %v9225_v55  ;;  %6336 = vmatpush3.msra.mxu0 %v9489_v35 }
 0x339   :  { %6379 = vmatpush3.msra.mxu1 %v9458_v1  ;;  %6337 = vmatprep.subr.mxu0 %v9225_v55  ;;  %v9514_v1 = vld [vmem:[#allocation195_spill] sm:$0xff] }
 0x33a   :  { %6380 = vmatprep.subr.mxu1 %v9225_v55  ;;  %6338 = vmatpush3.msra.mxu0 %v9490_v39 }
 0x33b   :  { %6381 = vmatpush3.msra.mxu1 %v9460_v5  ;;  %6339 = vmatprep.subr.mxu0 %v9225_v55 }
 0x33c   :  { %6382 = vmatprep.subr.mxu1 %v9225_v55  ;;  %6340 = vmatpush3.msra.mxu0 %v9491_v30 }
 0x33d   :  { %6383 = vmatpush3.msra.mxu1 %v9462_v10  ;;  %6341 = vmatprep.subr.mxu0 %v9225_v55 }
 0x33e   :  { %6384 = vmatprep.subr.mxu1 %v9225_v55  ;;  %6342 = vmatpush3.msra.mxu0 %v9492_v22 }
 0x33f   :  { %6385 = vmatpush3.msra.mxu1 %v9464_v52  ;;  %6343 = vmatprep.subr.mxu0 %v9225_v55 }
 0x340   :  { %6386 = vmatprep.subr.mxu1 %v9225_v55  ;;  %6344 = vmatpush3.msra.mxu0 %v9493_v56 }
 0x341   :  { %6387 = vmatpush3.msra.mxu1 %v9465_v28  ;;  %6345 = vmatprep.subr.mxu0 %v9225_v55 }
 0x342   :  { %6388 = vmatprep.subr.mxu1 %v9225_v55  ;;  %6346 = vmatpush3.msra.mxu0 %v9494_v16 }
 0x343   :  { %6389 = vmatpush3.msra.mxu1 %v9466_v63  ;;  %6347 = vmatprep.subr.mxu0 %v9225_v55 }
 0x344   :  { %6390 = vmatprep.subr.mxu1 %v9225_v55  ;;  %6348 = vmatpush3.msra.mxu0 %v9495_v8 }
 0x345   :  { %6391 = vmatpush3.msra.mxu1 %v9467_v23  ;;  %6392 = vmatprep.mubr.msk.f32.mxu1 %vm6469_vm0, %v9225_v55 }
 0x346   :  { %6349 = vmatprep.subr.mxu0 %v9225_v55  ;;  %6393 = vmatmul.mubr.f32.vlgmr.msra.gmra.mxu1 %v8376_v61 }
 0x347   :  { %6350 = vmatpush3.msra.mxu0 %v9496_v45  ;;  %6357 = vmatprep.mubr.msk.f32.mxu0 %vm6469_vm0, %v9225_v55 }
 0x348   :  { %6351 = vmatprep.subr.mxu0 %v9225_v55  ;;  %4250 = vmatprep.subr.mxu1 %v9497_v13 }
 0x349   :  { %6352 = vmatpush3.msra.mxu0 %v9498_v2  ;;  %4256 = vmatpush1.msra.mxu1 %v9499_v51 }
 0x34a   :  { %6353 = vmatprep.subr.mxu0 %v9225_v55  ;;  %4262 = vmatprep.subr.mxu1 %v9500_v62 }
 0x34b   :  { %6354 = vmatpush3.msra.mxu0 %v9501_v53  ;;  %4268 = vmatpush1.msra.mxu1 %v9502_v7 }
 0x34c   :  { %6355 = vmatprep.subr.mxu0 %v9225_v55  ;;  %4274 = vmatprep.subr.mxu1 %v9503_v59 }
 0x34d   :  { %6356 = vmatpush3.msra.mxu0 %v9504_v43  ;;  %4280 = vmatpush1.msra.mxu1 %v9505_v27 }
 0x34e   :  { %6358 = vmatmul.mubr.f32.vlgmr.msra.gmra.mxu0 %v8376_v61  ;;  %4286 = vmatprep.subr.mxu1 %v9506_v48  ;;  %v9513_v61 = vld [vmem:[#allocation192_spill] sm:$0xff] }
 0x34f   :  { %4292 = vmatpush1.msra.mxu1 %v9507_v37  ;;  %4162 = vmatprep.subr.mxu0 %v9508_v58  ;;  %v9517_v37 = vld [vmem:[#allocation185_spill] sm:$0xff] }
 0x350   :  { %4325 = vmatprep.mubr.f32.mxu1 %v9225_v55  ;;  %4447 = vmatprep.subr.mxu1 %v9508_v58 }
 0x351   :  { %4164 = vmatpush1.msra.mxu0 %v9509_v11  ;;  %4209 = vmatprep.mubr.f32.mxu0 %v9225_v55 }
 0x352   :  { %4166 = vmatprep.subr.mxu0 %v9510_v36 }
 0x353   :  { %4168 = vmatpush1.msra.mxu0 %v9511_v25 }
 0x354   :  { %4170 = vmatprep.subr.mxu0 %v9512_v41 }
 0x355   :  { %4172 = vmatpush1.msra.mxu0 %v9513_v61 }
 0x356   :  { %4174 = vmatprep.subr.mxu0 %v9514_v1 }
 0x357   :  { %4176 = vmatpush1.msra.mxu0 %v9515_v3 }
 0x358   :  { %4359 = vmatprep.subr.mxu0 %v9516_v4  ;;  %v9518_v4 = vld [vmem:[#allocation188_spill] sm:$0xff] }
 0x35e   :  { %v5634_v5 = vpop.f32.mrf.mxu1 }
 0x360   :  { %v5635_v9 = vpop.f32.mrf.mxu1 }
 0x361   :  { %v5636_v10 = vadd.f32 %v5635_v9, %v5634_v5  ;;  %v9519_v5 = vld [vmem:[#allocation191_spill] sm:$0xff]  ;;  %v9520_v9 = vld [vmem:[#allocation194_spill] sm:$0xff] }
 0x366   :  { %v5599_v12 = vpop.f32.mrf.mxu0 }
 0x368   :  { %v5600_v44 = vpop.f32.mrf.mxu0 }
 0x369   :  { %v5601_v63 = vadd.f32 %v5600_v44, %v5599_v12  ;;  %v9530_v12 = vld [vmem:[#allocation199_spill] sm:$0xff] }
 0x36a   :  { %v9534_v44 = vld [vmem:[#allocation211_spill] sm:$0xff] }
 0x36b   :  { %v2969_v54 = vadd.f32 %v5636_v10, %v5601_v63  ;;  %v9528_v10 = vld [vmem:[#allocation196_spill] sm:$0xff] }
 0x36c   :  { %v9535_v63 = vld [vmem:[#allocation228_spill] sm:$0xff] }
 0x37f   :  { %v5704_v14 = vpop.f32.mrf.mxu1 }
 0x381   :  { %v5705_v52 = vpop.f32.mrf.mxu1 }
 0x382   :  { %v5706_v28 = vadd.f32 %v5705_v52, %v5704_v14  ;;  %v9531_v14 = vld [vmem:[#allocation202_spill] sm:$0xff]  ;;  %v9532_v52 = vld [vmem:[#allocation227_spill] sm:$0xff] }
 0x387   :  { %v5669_v23 = vpop.f32.mrf.mxu0 }
 0x389   :  { %v5670_v50 = vpop.f32.mrf.mxu0 }
 0x38a   :  { %v5671_v47 = vadd.f32 %v5670_v50, %v5669_v23  ;;  %v9536_v23 = vld [vmem:[#allocation213_spill] sm:$0xff]  ;;  %v9537_v50 = vld [vmem:[#allocation214_spill] sm:$0xff] }
 0x38c   :  { %v3107_v18 = vadd.f32 %v5671_v47, %v2969_v54  ;;  %v9538_v54 = vld [vmem:[#allocation216_spill] sm:$0xff]  ;;  %v9539_v47 = vld [vmem:[#allocation218_spill] sm:$0xff] }
 0x38e   :  { %v3215_v17 = vadd.f32 %v5706_v28, %v3107_v18  ;;  %v9533_v28 = vld [vmem:[#allocation204_spill] sm:$0xff]  ;;  %v9540_v18 = vld [vmem:[#allocation215_spill] sm:$0xff] }
 0x3a1   :  { %v5774_v40 = vpop.f32.mrf.mxu1 }
 0x3a3   :  { %v5775_v34 = vpop.f32.mrf.mxu1 }
 0x3a4   :  { %v5776_v38 = vadd.f32 %v5775_v34, %v5774_v40  ;;  %v9542_v40 = vld [vmem:[#allocation220_spill] sm:$0xff]  ;;  %v9543_v34 = vld [vmem:[#allocation222_spill] sm:$0xff] }
 0x3a9   :  { %v5739_v29 = vpop.f32.mrf.mxu0 }
 0x3ab   :  { %v5740_v6 = vpop.f32.mrf.mxu0 }
 0x3ac   :  { %v5741_v24 = vadd.f32 %v5740_v6, %v5739_v29  ;;  %v9545_v29 = vld [vmem:[#allocation221_spill] sm:$0xff]  ;;  %v9546_v6 = vld [vmem:[#allocation223_spill] sm:$0xff] }
 0x3ae   :  { %v3383_v15 = vadd.f32 %v5741_v24, %v3215_v17  ;;  %v9541_v17 = vld [vmem:[#allocation217_spill] sm:$0xff]  ;;  %v9547_v24 = vld [vmem:[#allocation224_spill] sm:$0xff] }
 0x3b0   :  { %v3487_v57 = vadd.f32 %v5776_v38, %v3383_v15  ;;  %v9544_v38 = vld [vmem:[#allocation219_spill] sm:$0xff] }
 0x3c2   :  { %v3728_v32 = vpop.f32.mrf.mxu1 }
 0x3c4   :  { %v6254_v46 = vpop.f32.mrf.mxu1 }
 0x3cb   :  { %v3577_v49 = vpop.f32.mrf.mxu0 }
 0x3cc   :  { %v3578_v42 = vadd.f32 %v3577_v49, %v3487_v57 }
 0x3cd   :  { %v6219_v21 = vpop.f32.mrf.mxu0 }
 0x3ce   :  { %v3729_v20 = vadd.f32 %v3728_v32, %v3578_v42  ;;  %v5170_v21 = vlaneseq }
 0x3e4   :  { %v3921_v26 = vpop.f32.mrf.mxu1 }
 0x3e6   :  { %v6324_v19 = vpop.f32.mrf.mxu1 }
 0x3ed   :  { %v3832_v0 = vpop.f32.mrf.mxu0 }
 0x3ee   :  { %v3833_v22 = vadd.f32 %v3832_v0, %v3729_v20 }
 0x3ef   :  { %v6289_v35 = vpop.f32.mrf.mxu0 }
 0x3f0   :  { %v3922_v56 = vadd.f32 %v3921_v26, %v3833_v22 }
 0x406   :  { %v4127_v39 = vpop.f32.mrf.mxu1 }
 0x408   :  { %v6394_v30 = vpop.f32.mrf.mxu1 }
 0x409   :  { %v5171_v30 = vshrl.u32 %v5170_v21, 7 }
 0x40e   :  { %v4040_v16 = vpop.f32.mrf.mxu0 }
 0x40f   :  { %v4041_v8 = vadd.f32 %v4040_v16, %v3922_v56  ;;  %v5172_v16 = vsub.s32 0, %v5171_v30 }
 0x410   :  { %v6359_v45 = vpop.f32.mrf.mxu0 }
 0x411   :  { %v4128_v13 = vadd.f32 %v4127_v39, %v4041_v8  ;;  %v5168_v45 = vld [vmem:[%s8716_s1] sm:$0x7] }
 0x413   :  { %v4131_v2 = vmul.f32 0.083333336, %v4128_v13 }
 0x415   :  { %v4132_v51 = vadd.f32 0.5, %v4131_v2 }
 0x417   :  { %6463 = vrsqrt.f32 %v4132_v51 }
 0x424   :  { %v6464_v62 = vpop.eup %6463 }
 0x425   :  { %v4135_v53 = vsel %vm1590_vm1, %v6464_v62, 0  ;;  %5212 = vst.msk [vmem:[%s8715_s7] sm:$0xff] %vm1590_vm1, %v6464_v62  ;;  %v5176_v62 = vsub.s32 1, %v5171_v30 }
 0x426   :  { %v8579_v7 = vand.u32 4294901760, %v4135_v53 }
 0x428   :  { %4327 = vmatmul.mubr.f32.vlgmr.msra.gmra.mxu1 %v8579_v7  ;;  %v8583_v59 = vsub.f32 %v4135_v53, %v8579_v7  ;;  %v5188_v53 = vld [vmem:[%s8717_s2] sm:$0x7] }
 0x429   :  { %4449 = vmatpush1.msra.mxu1 %v9509_v11  ;;  %4494 = vmatprep.mubr.f32.mxu1 %v9225_v55 }
 0x42a   :  { %4451 = vmatprep.subr.mxu1 %v9510_v36  ;;  %v8589_v43 = vand.u32 4294901760, %v8583_v59 }
 0x42b   :  { %4453 = vmatpush1.msra.mxu1 %v9511_v25 }
 0x42c   :  { %4455 = vmatprep.subr.mxu1 %v9512_v41  ;;  %v4213_v27 = vsub.f32 %v8583_v59, %v8589_v43 }
 0x42d   :  { %4457 = vmatpush1.msra.mxu1 %v9513_v61 }
 0x42e   :  { %4459 = vmatprep.subr.mxu1 %v9514_v1  ;;  %v4214_v48 = vand.u32 4294901760, %v4213_v27 }
 0x42f   :  { %4461 = vmatpush1.msra.mxu1 %v9515_v3 }
 0x430   :  { %4498 = vmatmul.mubr.f32.vlgmr.msra.gmra.mxu1 %v8589_v43  ;;  %4625 = vmatprep.subr.mxu1 %v9508_v58  ;;  %v9521_v58 = vld [vmem:[#allocation197_spill] sm:$0xff] }
 0x431   :  { %4215 = vmatmul.mubr.f32.vlgmr.msra.gmra.mxu0 %v4214_v48  ;;  %4627 = vmatpush1.msra.mxu1 %v9509_v11  ;;  %v9522_v11 = vld [vmem:[#allocation200_spill] sm:$0xff] }
 0x432   :  { %4362 = vmatpush1.msra.mxu0 %v9517_v37  ;;  %4629 = vmatprep.subr.mxu1 %v9510_v36  ;;  %v9523_v36 = vld [vmem:[#allocation208_spill] sm:$0xff] }
 0x433   :  { %4365 = vmatprep.subr.mxu0 %v9518_v4  ;;  %4631 = vmatpush1.msra.mxu1 %v9511_v25  ;;  %v9524_v25 = vld [vmem:[#allocation187_spill] sm:$0xff]  ;;  %v5193_v4 = vrot.slane %v5188_v53, %v5172_v16 }
 0x434   :  { %4368 = vmatpush1.msra.mxu0 %v9519_v5  ;;  %4633 = vmatprep.subr.mxu1 %v9512_v41  ;;  %v9525_v41 = vld [vmem:[#allocation190_spill] sm:$0xff] }
 0x435   :  { %4371 = vmatprep.subr.mxu0 %v9520_v9  ;;  %4635 = vmatpush1.msra.mxu1 %v9513_v61  ;;  %v9526_v61 = vld [vmem:[#allocation225_spill] sm:$0xff]  ;;  %v5177_v9 = vrot.slane %v5168_v45, %v5176_v62 }
 0x436   :  { %4374 = vmatpush1.msra.mxu0 %v9521_v58  ;;  %4637 = vmatprep.subr.mxu1 %v9514_v1  ;;  %v9527_v1 = vld [vmem:[#allocation193_spill] sm:$0xff] }
 0x437   :  { %4377 = vmatprep.subr.mxu0 %v9522_v11  ;;  %4413 = vmatprep.mubr.f32.mxu0 %v9225_v55 }
 0x438   :  { %4380 = vmatpush1.msra.mxu0 %v9523_v36  ;;  %4639 = vmatpush1.msra.mxu1 %v9515_v3  ;;  %v9529_v3 = vld [vmem:[#allocation226_spill] sm:$0xff]  ;;  %v5197_v36 = vrot.slane %v5188_v53, %v5176_v62 }
 0x439   :  { %4672 = vmatprep.mubr.f32.mxu1 %v9225_v55  ;;  %4416 = vmatmul.mubr.f32.vlgmr.msra.gmra.mxu0 %v8583_v59 }
 0x43a   :  { %4531 = vmatprep.subr.mxu0 %v9524_v25  ;;  %4674 = vmatmul.mubr.f32.vlgmr.msra.gmra.mxu1 %v8579_v7 }
 0x43b   :  { %6406 = vmatprep.subr.mxu1 %v9225_v55  ;;  %4535 = vmatpush1.msra.mxu0 %v9525_v41 }
 0x43c   :  { %6407 = vmatpush3.msra.mxu1 %v9526_v61  ;;  %4539 = vmatprep.subr.mxu0 %v9527_v1 }
 0x43d   :  { %6408 = vmatprep.subr.mxu1 %v9225_v55  ;;  %4543 = vmatpush1.msra.mxu0 %v9528_v10 }
 0x43e   :  { %6409 = vmatpush3.msra.mxu1 %v9529_v3  ;;  %4547 = vmatprep.subr.mxu0 %v9530_v12 }
 0x43f   :  { %6410 = vmatprep.subr.mxu1 %v9225_v55  ;;  %4551 = vmatpush1.msra.mxu0 %v9531_v14 }
 0x440   :  { %6411 = vmatpush3.msra.mxu1 %v9532_v52  ;;  %4555 = vmatprep.subr.mxu0 %v9533_v28 }
 0x441   :  { %6412 = vmatprep.subr.mxu1 %v9225_v55  ;;  %4559 = vmatpush1.msra.mxu0 %v9534_v44 }
 0x442   :  { %4592 = vmatprep.mubr.f32.mxu0 %v9225_v55  ;;  %6413 = vmatpush3.msra.mxu1 %v9535_v63 }
 0x443   :  { %6414 = vmatprep.mubr.msk.f32.mxu1 %vm6469_vm0, %v9225_v55  ;;  %4594 = vmatmul.mubr.f32.vlgmr.msra.gmra.mxu0 %v8579_v7 }
 0x444   :  { %6395 = vmatprep.subr.mxu0 %v9225_v55  ;;  %6415 = vmatmul.mubr.f32.vlgmr.msra.gmra.mxu1 %v8579_v7 }
 0x445   :  { %6428 = vmatprep.subr.mxu1 %v9225_v55  ;;  %6396 = vmatpush3.msra.mxu0 %v9536_v23 }
 0x446   :  { %6429 = vmatpush3.msra.mxu1 %v9536_v23  ;;  %6397 = vmatprep.subr.mxu0 %v9225_v55 }
 0x447   :  { %6430 = vmatprep.subr.mxu1 %v9225_v55  ;;  %6398 = vmatpush3.msra.mxu0 %v9537_v50 }
 0x448   :  { %6431 = vmatpush3.msra.mxu1 %v9537_v50  ;;  %6399 = vmatprep.subr.mxu0 %v9225_v55 }
 0x449   :  { %6432 = vmatprep.subr.mxu1 %v9225_v55  ;;  %6400 = vmatpush3.msra.mxu0 %v9538_v54 }
 0x44a   :  { %6433 = vmatpush3.msra.mxu1 %v9538_v54  ;;  %6401 = vmatprep.subr.mxu0 %v9225_v55 }
 0x44b   :  { %6434 = vmatprep.subr.mxu1 %v9225_v55  ;;  %6402 = vmatpush3.msra.mxu0 %v9539_v47 }
 0x44c   :  { %6403 = vmatprep.mubr.msk.f32.mxu0 %vm6469_vm0, %v9225_v55  ;;  %6435 = vmatpush3.msra.mxu1 %v9539_v47 }
 0x44d   :  { %6436 = vmatprep.mubr.msk.f32.mxu1 %vm6469_vm0, %v9225_v55  ;;  %6404 = vmatmul.mubr.f32.vlgmr.msra.gmra.mxu0 %v4214_v48 }
 0x44e   :  { %6417 = vmatprep.subr.mxu0 %v9225_v55  ;;  %6437 = vmatmul.mubr.f32.vlgmr.msra.gmra.mxu1 %v8589_v43  ;;  %v5173_v43 = vrot.slane %v5168_v45, %v5172_v16 }
 0x44f   :  { %6450 = vmatprep.subr.mxu1 %v9225_v55  ;;  %6418 = vmatpush3.msra.mxu0 %v9540_v18 }
 0x450   :  { %6451 = vmatpush3.msra.mxu1 %v9536_v23  ;;  %6419 = vmatprep.subr.mxu0 %v9225_v55  ;;  %v5180_v23 = vsub.s32 2, %v5171_v30 }
 0x451   :  { %6452 = vmatprep.subr.mxu1 %v9225_v55  ;;  %6420 = vmatpush3.msra.mxu0 %v9541_v17 }
 0x452   :  { %6453 = vmatpush3.msra.mxu1 %v9537_v50  ;;  %6421 = vmatprep.subr.mxu0 %v9225_v55  ;;  %v5181_v17 = vrot.slane %v5168_v45, %v5180_v23 }
 0x453   :  { %6454 = vmatprep.subr.mxu1 %v9225_v55  ;;  %6422 = vmatpush3.msra.mxu0 %v9542_v40 }
 0x454   :  { %6455 = vmatpush3.msra.mxu1 %v9538_v54  ;;  %6423 = vmatprep.subr.mxu0 %v9225_v55 }
 0x455   :  { %6456 = vmatprep.subr.mxu1 %v9225_v55  ;;  %6424 = vmatpush3.msra.mxu0 %v9543_v34  ;;  %v5201_v34 = vrot.slane %v5188_v53, %v5180_v23 }
 0x456   :  { %6425 = vmatprep.mubr.msk.f32.mxu0 %vm6469_vm0, %v9225_v55  ;;  %6457 = vmatpush3.msra.mxu1 %v9539_v47 }
 0x457   :  { %6458 = vmatprep.mubr.msk.f32.mxu1 %vm6469_vm0, %v9225_v55  ;;  %6426 = vmatmul.mubr.f32.vlgmr.msra.gmra.mxu0 %v8583_v59 }
 0x458   :  { %6439 = vmatprep.subr.mxu0 %v9225_v55  ;;  %6459 = vmatmul.mubr.f32.vlgmr.msra.gmra.mxu1 %v8579_v7 }
 0x459   :  { %6440 = vmatpush3.msra.mxu0 %v9544_v38  ;;  %6447 = vmatprep.mubr.msk.f32.mxu0 %vm6469_vm0, %v9225_v55 }
 0x45a   :  { %6441 = vmatprep.subr.mxu0 %v9225_v55 }
 0x45b   :  { %6442 = vmatpush3.msra.mxu0 %v9545_v29 }
 0x45c   :  { %6443 = vmatprep.subr.mxu0 %v9225_v55 }
 0x45d   :  { %6444 = vmatpush3.msra.mxu0 %v9546_v6 }
 0x45e   :  { %6445 = vmatprep.subr.mxu0 %v9225_v55 }
 0x45f   :  { %6446 = vmatpush3.msra.mxu0 %v9547_v24 }
 0x460   :  { %6448 = vmatmul.mubr.f32.vlgmr.msra.gmra.mxu0 %v8579_v7 }
 0x4e8   :  { %v4328_v15 = vpop.f32.mrf.mxu1 }
 0x4ea   :  { %v4330_v32 = vpop.f32.mrf.mxu1 }
 0x4f0   :  { %v4499_v49 = vpop.f32.mrf.mxu1 }
 0x4f1   :  { %v4216_v57 = vpop.f32.mrf.mxu0 }
 0x4f2   :  { %v4329_v20 = vadd.f32 %v4328_v15, %v4216_v57  ;;  %v4501_v26 = vpop.f32.mrf.mxu1 }
 0x4f3   :  { %v4218_v46 = vpop.f32.mrf.mxu0 }
 0x4f4   :  { %v4331_v0 = vadd.f32 %v4330_v32, %v4218_v46 }
 0x4f9   :  { %v4417_v42 = vpop.f32.mrf.mxu0 }
 0x4fa   :  { %v4418_v35 = vadd.f32 %v4417_v42, %v4329_v20  ;;  %v4675_v39 = vpop.f32.mrf.mxu1 }
 0x4fb   :  { %v4419_v19 = vpop.f32.mrf.mxu0 }
 0x4fc   :  { %v4420_v22 = vadd.f32 %v4419_v19, %v4331_v0  ;;  %v4677_v55 = vpop.f32.mrf.mxu1  ;;  %v4500_v56 = vadd.f32 %v4499_v49, %v4418_v35 }
 0x4fe   :  { %v4502_v51 = vadd.f32 %v4501_v26, %v4420_v22 }
 0x503   :  { %v4595_v8 = vpop.f32.mrf.mxu0 }
 0x504   :  { %v4596_v13 = vadd.f32 %v4595_v8, %v4500_v56  ;;  %v4846_v2 = vpop.f32.mrf.mxu1 }
 0x505   :  { %v4597_v7 = vpop.f32.mrf.mxu0 }
 0x506   :  { %v4676_v59 = vadd.f32 %v4675_v39, %v4596_v13  ;;  %v4598_v27 = vadd.f32 %v4597_v7, %v4502_v51  ;;  %v6416_v48 = vpop.f32.mrf.mxu1 }
 0x508   :  { %v5165_v37 = vmul.f32 %v4676_v59, %v8167_v60  ;;  %v4678_v5 = vadd.f32 %v4677_v55, %v4598_v27 }
 0x50a   :  { %v5185_v58 = vmul.f32 %v5173_v43, %v5165_v37  ;;  %v5166_v11 = vmul.f32 %v4678_v5, %v8174_v33 }
 0x50c   :  { %v5205_v25 = vadd.f32 %v5193_v4, %v5185_v58  ;;  %v5186_v41 = vmul.f32 %v5177_v9, %v5166_v11 }
 0x50d   :  { %v4755_v61 = vpop.f32.mrf.mxu0 }
 0x50e   :  { %5208 = vst [vmem:[%s8718_s5] sm:$0xff] %v5205_v25  ;;  %v5206_v1 = vadd.f32 %v5197_v36, %v5186_v41  ;;  %v5003_v10 = vpop.f32.mrf.mxu1  ;;  %v4847_v52 = vadd.f32 %v4846_v2, %v4755_v61 }
 0x50f   :  { %v6405_v3 = vpop.f32.mrf.mxu0 }
 0x510   :  { %5209 = vst [vmem:[%s8718_s5 + $0x8] sm:$0xff] %v5206_v1  ;;  %v6438_v60 = vpop.f32.mrf.mxu1 }
 0x517   :  { %v4926_v12 = vpop.f32.mrf.mxu0 }
 0x518   :  { %v5161_v14 = vpop.f32.mrf.mxu1  ;;  %v4927_v44 = vadd.f32 %v4926_v12, %v4847_v52 }
 0x519   :  { %v6427_v33 = vpop.f32.mrf.mxu0 }
 0x51a   :  { %v6460_v28 = vpop.f32.mrf.mxu1  ;;  %v5004_v63 = vadd.f32 %v5003_v10, %v4927_v44 }
 0x520   :  { %v5086_v50 = vpop.f32.mrf.mxu0 }
 0x521   :  { %v5087_v54 = vadd.f32 %v5086_v50, %v5004_v63 }
 0x522   :  { %v6449_v47 = vpop.f32.mrf.mxu0 }
 0x523   :  { %v5162_v18 = vadd.f32 %v5161_v14, %v5087_v54 }
 0x525   :  { %v5167_v40 = vmul.f32 %v5162_v18, %v8354_v31 }
 0x527   :  { %v5187_v38 = vmul.f32 %v5181_v17, %v5167_v40 }
 0x529   :  { %v5207_v29 = vadd.f32 %v5201_v34, %v5187_v38 }
 0x52b   :  { %5210 = vst [vmem:[%s8718_s5 + $0x10] sm:$0xff] %v5207_v29 }

</bundles_post_ra>
